<compile_context>
chip_gen: v6e
topology: v6e:2x2x1
jax: 0.10.0
libtpu: 0.0.40
codegen_flags: <defaults>
</compile_context>

<pallas_src>
import numpy as np

import jax
import jax.numpy as jnp
from jax import lax
from jax.experimental import pallas as pl
from jax.experimental.pallas import tpu as pltpu


_K_PAD = 256  # stem contraction dim padded from 3*49 = 147


# ----------------------------- host-side constant builders -----------------------------

def _maxpool_select_cat(h, w, oh, ow):
    """ONE (9*oh*ow, h*w) row-selection matrix implementing MaxPool2d(kernel=3, stride=2, pad=1).

    Row t*(oh*ow) + p has a single 1 picking tap t of pooling window p; invalid (padded) taps
    are redirected to the always-valid window centre, a no-op under elementwise max (matches
    PyTorch's -inf padding semantics)."""
    mats = np.zeros((9, oh * ow, h * w), np.float32)
    t = 0
    for dh in (-1, 0, 1):
        for dw in (-1, 0, 1):
            for p_h in range(oh):
                for p_w in range(ow):
                    qh, qw = 2 * p_h + dh, 2 * p_w + dw
                    if 0 <= qh < h and 0 <= qw < w:
                        mats[t, p_h * ow + p_w, qh * w + qw] = 1.0
                    else:
                        mats[t, p_h * ow + p_w, (2 * p_h) * w + (2 * p_w)] = 1.0
            t += 1
    return mats.reshape(9 * oh * ow, h * w)


def _conv3x3_shift_select(h, w):
    """9 shift/selection matrices for a same-padding 3x3 conv on a flattened (h*w, C) map:
       conv(x)[p] = sum_t (shift[t] @ (x @ W_tap[t]))[p], zero fill at borders.
    Tap order t = kh*3 + kw matches W.reshape(3,3,Cin,Cout) -> (9, Cin, Cout)."""
    mats = np.zeros((9, h * w, h * w), np.float32)
    t = 0
    for dh in (-1, 0, 1):
        for dw in (-1, 0, 1):
            for hh in range(h):
                for ww in range(w):
                    sh_, sw_ = hh + dh, ww + dw
                    if 0 <= sh_ < h and 0 <= sw_ < w:
                        mats[t, hh * w + ww, sh_ * w + sw_] = 1.0
            t += 1
    return mats


def _pick_images_per_step(bsz):
    """Stack several images along M per grid step to amortize per-step overhead, but keep
    >= 2 grid steps so both v7x TensorCores get work under dimension_semantics=('parallel',)."""
    for bt in (8, 4, 2):
        if bsz % bt == 0 and bsz // bt >= 2:
            return bt
    return 1


# ----------------------------- the fused Pallas kernel -----------------------------

def _fused_resnet_kernel(patch_ref, wstem_ref, poolcat_ref, shift_ref, bnsm_ref,
                         wsc_ref, wc1_ref, wc2cat_ref, wc3_ref, bnhd_ref,
                         wfc_ref, bfc_ref, o_ref):
    f32, bf16 = jnp.float32, jnp.bfloat16
    bt, m_conv, kdim = patch_ref.shape
    c_stem = wstem_ref.shape[1]          # 64
    m_blk = shift_ref.shape[1]           # 8*8 = 64 pooled spatial positions
    c_mid = wc1_ref.shape[1]             # 64

    # --- stem 7x7/2 conv: one MXU matmul on pre-built (K padded to 256) patches ---
    patches = patch_ref[...].reshape(bt * m_conv, kdim)
    conv = jnp.dot(patches, wstem_ref[...], preferred_element_type=f32)   # (bt*m_conv, 64)
    conv_bf = conv.astype(bf16)

    # --- MaxPool2d(3,2,1): ONE merged selection matmul per image, then VPU max over taps ---
    pooled_imgs = []
    for bi in range(bt):
        conv_i = conv_bf if bt == 1 else conv_bf[bi * m_conv:(bi + 1) * m_conv, :]
        taps = jnp.dot(poolcat_ref[...], conv_i, preferred_element_type=f32)   # (9*m_blk, 64)
        taps = taps.reshape(9, m_blk, c_stem)
        p_i = taps[0]
        for t in range(1, 9):
            p_i = jnp.maximum(p_i, taps[t])
        pooled_imgs.append(p_i)
    pooled = pooled_imgs[0] if bt == 1 else jnp.concatenate(pooled_imgs, axis=0)  # (bt*m_blk, 64)

    # --- ResBlock(64 -> 256); BN(+ReLU) folded to f32 scale/shift epilogues (v5e-safe) ---
    s0, t0 = bnsm_ref[0:1, :], bnsm_ref[1:2, :]
    s2, t2 = bnsm_ref[2:3, :], bnsm_ref[3:4, :]
    s3, t3 = bnsm_ref[4:5, :], bnsm_ref[5:6, :]

    h = jnp.maximum(pooled * s0 + t0, 0.0)                               # bn0 + relu
    h_bf = h.astype(bf16)
    r1 = jnp.dot(h_bf, wsc_ref[...], preferred_element_type=f32)         # shortcut 1x1: 64->256
    a1 = jnp.dot(h_bf, wc1_ref[...], preferred_element_type=f32)         # conv1 1x1:   64->64
    b2 = jnp.maximum(a1 * s2 + t2, 0.0)                                  # conv2 BN + relu

    # conv2 3x3 same: ONE (bt*m_blk,64)x(64,576) tap matmul, then 9 border-aware shift applies
    y = jnp.dot(b2.astype(bf16), wc2cat_ref[...], preferred_element_type=f32)   # (bt*m_blk, 576)
    y_bf = y.astype(bf16)
    c_imgs = []
    for bi in range(bt):
        yb = y_bf if bt == 1 else y_bf[bi * m_blk:(bi + 1) * m_blk, :]
        c_i = jnp.dot(shift_ref[0], yb[:, 0:c_mid], preferred_element_type=f32)
        for t in range(1, 9):
            c_i = c_i + jnp.dot(shift_ref[t], yb[:, t * c_mid:(t + 1) * c_mid],
                                preferred_element_type=f32)
        c_imgs.append(c_i)
    c2 = c_imgs[0] if bt == 1 else jnp.concatenate(c_imgs, axis=0)        # (bt*m_blk, 64)

    d = jnp.maximum(c2 * s3 + t3, 0.0)                                    # conv3 BN + relu
    e = jnp.dot(d.astype(bf16), wc3_ref[...], preferred_element_type=f32) + r1  # 0.2 folded in w_c3
    s_hd, t_hd = bnhd_ref[0:1, :], bnhd_ref[1:2, :]
    yact = jnp.maximum(e * s_hd + t_hd, 0.0)                              # head BN + relu

    # --- AdaptiveAvgPool2d(1) + Flatten + Linear(256, 512) ---
    if bt == 1:
        gap = jnp.mean(yact, axis=0, keepdims=True)                       # (1, 256)
    else:
        gap = jnp.mean(yact.reshape(bt, m_blk, yact.shape[1]), axis=1)    # (bt, 256)
    emb = jnp.dot(gap.astype(bf16), wfc_ref[...], preferred_element_type=f32) + bfc_ref[...]
    o_ref[0] = emb                                                        # (bt, 512)


# ----------------------------- one-time weight preparation -----------------------------

def prepare_params(params):
    """Re-layout weights into kernel-ready operands ONCE (kept out of the per-call jit)."""
    f32, bf16 = jnp.float32, jnp.bfloat16
    p = params["block"]

    ksp = params["w_stem"].shape[0] * params["w_stem"].shape[1]            # 49
    cin = params["w_stem"].shape[2]                                        # 3
    # stem: HWIO -> rows ordered c*49 + kh*7 + kw (matches conv_general_dilated_patches), pad K
    w_stem = jnp.transpose(params["w_stem"], (2, 0, 1, 3)).reshape(cin * ksp, -1)
    w_stem = jnp.pad(w_stem, ((0, _K_PAD - cin * ksp), (0, 0))).astype(bf16)   # (256, 64)

    w_sc = p["w_sc"].reshape(p["w_sc"].shape[2], -1).astype(bf16)          # (64, 256)
    w_c1 = p["w_c1"].reshape(p["w_c1"].shape[2], -1).astype(bf16)          # (64, 64)
    c_mid = w_c1.shape[1]
    w_c2 = p["w_c2"].reshape(9, p["w_c2"].shape[2], -1)                    # (9, 64, 64), tap = kh*3+kw
    w_c2cat = jnp.transpose(w_c2, (1, 0, 2)).reshape(c_mid, -1).astype(bf16)  # (64, 576)
    w_c3 = (0.2 * p["w_c3"].reshape(p["w_c3"].shape[2], -1)).astype(bf16)  # (64, 256), 0.2 folded in

    def fold(bn, eps=1e-5):
        gamma, beta, mean, var = bn
        s = gamma / jnp.sqrt(var + eps)
        return s.astype(f32), (beta - mean * s).astype(f32)

    s0, t0 = fold(p["bn0"])
    s2, t2 = fold(p["bn2"])
    s3, t3 = fold(p["bn3"])
    s_hd, t_hd = fold(params["bn_head"])

    return {
        "w_stem": w_stem, "w_sc": w_sc, "w_c1": w_c1, "w_c2cat": w_c2cat, "w_c3": w_c3,
        "bn_small": jnp.stack([s0, t0, s2, t2, s3, t3], axis=0),           # (6, 64)
        "bn_head": jnp.stack([s_hd, t_hd], axis=0),                        # (2, 256)
        "fc_w": params["fc_w"].astype(bf16),                               # (256, 512)
        "fc_b": params["fc_b"].reshape(1, -1).astype(f32),                 # (1, 512)
    }


# ----------------------------- forward pass -----------------------------

@jax.jit
def my_resnet_forward(x_nchw, prepped):
    # x_nchw: (B, 3, H, W) float32  ->  embed: (B, 512) float32
    f32, bf16 = jnp.float32, jnp.bfloat16
    bsz = x_nchw.shape[0]

    # stem im2col: ONE fused XLA op; output channels ordered c*49 + kh*7 + kw
    patches = lax.conv_general_dilated_patches(
        x_nchw.astype(f32), filter_shape=(7, 7), window_strides=(2, 2),
        padding=((3, 3), (3, 3)))                                          # (B, 147, Ho, Wo)
    k_raw, ho, wo = patches.shape[1], patches.shape[2], patches.shape[3]
    m_conv = ho * wo
    patches = jnp.transpose(patches.reshape(bsz, k_raw, m_conv), (0, 2, 1))
    patches = jnp.pad(patches, ((0, 0), (0, 0), (0, _K_PAD - k_raw))).astype(bf16)

    # MaxPool(3,2,1) output geometry
    ph, pw = (ho + 2 - 3) // 2 + 1, (wo + 2 - 3) // 2 + 1
    m_blk = ph * pw

    # host-built 0/1 selection constants (exact in bf16; baked as compile-time constants)
    pool_cat = jnp.asarray(_maxpool_select_cat(ho, wo, ph, pw), bf16)      # (9*m_blk, m_conv)
    shift_sel = jnp.asarray(_conv3x3_shift_select(ph, pw), bf16)           # (9, m_blk, m_blk)

    c_stem = prepped["w_stem"].shape[1]    # 64
    c_mid = prepped["w_c1"].shape[1]       # 64
    c_big = prepped["w_sc"].shape[1]       # 256
    n_out = prepped["fc_w"].shape[1]       # 512

    bt = _pick_images_per_step(bsz)
    n_steps = bsz // bt

    operands = (patches, prepped["w_stem"], pool_cat, shift_sel, prepped["bn_small"],
                prepped["w_sc"], prepped["w_c1"], prepped["w_c2cat"], prepped["w_c3"],
                prepped["bn_head"], prepped["fc_w"], prepped["fc_b"])

    # advisory cost estimate
    flops = 2 * bsz * (
        m_conv * _K_PAD * c_stem            # stem conv
        + 9 * m_blk * m_conv * c_stem       # merged maxpool selection matmul
        + m_blk * c_stem * c_big            # shortcut 1x1
        + m_blk * c_stem * c_mid            # conv1 1x1
        + m_blk * c_mid * 9 * c_mid         # conv2 merged tap matmul (N = 576)
        + 9 * m_blk * m_blk * c_mid         # conv2 shift applications
        + m_blk * c_mid * c_big             # conv3 1x1
        + c_big * n_out)                    # fc
    bytes_accessed = (sum(int(a.size) * a.dtype.itemsize for a in operands)
                      + bsz * n_out * 4)

    fixed2 = lambda i: (0, 0)
    fixed3 = lambda i: (0, 0, 0)

    out = pl.pallas_call(
        _fused_resnet_kernel,
        out_shape=jax.ShapeDtypeStruct((n_steps, bt, n_out), jnp.float32),
        grid=(n_steps,),
        in_specs=[
            pl.BlockSpec((bt, m_conv, _K_PAD), lambda i: (i, 0, 0)),   # per-step stem patches
            pl.BlockSpec((_K_PAD, c_stem), fixed2),                    # w_stem (K padded to 256)
            pl.BlockSpec((9 * m_blk, m_conv), fixed2),                 # merged maxpool selection
            pl.BlockSpec((9, m_blk, m_blk), fixed3),                   # 3x3 shift selection
            pl.BlockSpec((6, c_mid), fixed2),                          # bn0/bn2/bn3 scale+shift
            pl.BlockSpec((c_stem, c_big), fixed2),                     # w_sc
            pl.BlockSpec((c_stem, c_mid), fixed2),                     # w_c1
            pl.BlockSpec((c_mid, 9 * c_mid), fixed2),                  # w_c2 taps (N-concat)
            pl.BlockSpec((c_mid, c_big), fixed2),                      # w_c3 (pre-scaled by 0.2)
            pl.BlockSpec((2, c_big), fixed2),                          # head bn scale+shift
            pl.BlockSpec((c_big, n_out), fixed2),                      # fc weight
            pl.BlockSpec((1, n_out), fixed2),                          # fc bias
        ],
        out_specs=pl.BlockSpec((1, bt, n_out), lambda i: (i, 0, 0)),
        compiler_params=pltpu.CompilerParams(dimension_semantics=("parallel",)),
        cost_estimate=pl.CostEstimate(flops=flops, transcendentals=0,
                                      bytes_accessed=bytes_accessed),
    )(*operands)

    return out.reshape(bsz, n_out)


# ----------------------------- parameters -----------------------------

def init_params(key):
    ks = jax.random.split(key, 16)

    def w_init(k, shape, fan_in):
        return (jax.random.normal(k, shape, jnp.float32) / jnp.sqrt(fan_in)).astype(jnp.float32)

    def bn_init(k, c):
        k1, k2, k3, k4 = jax.random.split(k, 4)
        gamma = 1.0 + 0.1 * jax.random.normal(k1, (c,), jnp.float32)
        beta = 0.1 * jax.random.normal(k2, (c,), jnp.float32)
        mean = 0.1 * jax.random.normal(k3, (c,), jnp.float32)
        var = jax.random.uniform(k4, (c,), jnp.float32, 0.5, 1.5)
        return (gamma, beta, mean, var)

    return {
        "w_stem": w_init(ks[0], (7, 7, 3, 64), 7 * 7 * 3),          # HWIO
        "block": {
            "bn0": bn_init(ks[1], 64),                              # ResBlock.bn (temp=64)
            "w_sc": w_init(ks[2], (1, 1, 64, 256), 64),             # shortcut 1x1, 64->256
            "w_c1": w_init(ks[3], (1, 1, 64, 64), 64),              # conv1 1x1, 64->64
            "bn2": bn_init(ks[4], 64),                              # conv2: BN
            "w_c2": w_init(ks[5], (3, 3, 64, 64), 3 * 3 * 64),      # conv2: 3x3, 64->64
            "bn3": bn_init(ks[6], 64),                              # conv3: BN
            "w_c3": w_init(ks[7], (1, 1, 64, 256), 64),             # conv3: 1x1, 64->256
        },
        "bn_head": bn_init(ks[8], 256),
        "fc_w": w_init(ks[9], (256, 512), 256),
        "fc_b": 0.01 * jax.random.normal(ks[10], (1, 512), jnp.float32),
    }


if __name__ == "__main__":
    key = jax.random.PRNGKey(0)
    k_param, k_x = jax.random.split(key)
    params = init_params(k_param)
    prepped = prepare_params(params)

    # small input consistent with the module: batch=2, 3 channels, 32x32 spatial
    x = jax.random.normal(k_x, (2, 3, 32, 32), jnp.float32)

    embed = my_resnet_forward(x, prepped)
    embed = jax.block_until_ready(embed)

    assert embed.shape == (2, 512), embed.shape
    assert bool(jnp.all(jnp.isfinite(embed)))
    print("KERNEL_OK")
</pallas_src>

<mosaic_0001>
module attributes {stable_mosaic.version = 11 : i64} {
  func.func @_fused_resnet_kernel(%arg0: i32, %arg1: memref<1x256x256xbf16, #tpu.memory_space<vmem>>, %arg2: memref<256x64xbf16, #tpu.memory_space<vmem>>, %arg3: memref<576x256xbf16, #tpu.memory_space<vmem>>, %arg4: memref<9x64x64xbf16, #tpu.memory_space<vmem>>, %arg5: memref<6x64xf32, #tpu.memory_space<vmem>>, %arg6: memref<64x256xbf16, #tpu.memory_space<vmem>>, %arg7: memref<64x64xbf16, #tpu.memory_space<vmem>>, %arg8: memref<64x576xbf16, #tpu.memory_space<vmem>>, %arg9: memref<64x256xbf16, #tpu.memory_space<vmem>>, %arg10: memref<2x256xf32, #tpu.memory_space<vmem>>, %arg11: memref<256x512xbf16, #tpu.memory_space<vmem>>, %arg12: memref<1x512xf32, #tpu.memory_space<vmem>>, %arg13: memref<1x1x512xf32, #tpu.memory_space<vmem>>) attributes {dimension_semantics = [#tpu.dimension_semantics<parallel>], iteration_bounds = array<i64: 2>, scalar_prefetch = 0 : i64, scratch_operands = 0 : i64, tpu.core_type = #tpu.core_type<tc>, window_params = [{transform_indices = @transform_0, window_bounds = array<i64: 1, 256, 256>}, {pipeline_mode = #tpu.pipeline_mode<synchronous>, transform_indices = @transform_1, window_bounds = array<i64: 256, 64>}, {pipeline_mode = #tpu.pipeline_mode<synchronous>, transform_indices = @transform_2, window_bounds = array<i64: 576, 256>}, {pipeline_mode = #tpu.pipeline_mode<synchronous>, transform_indices = @transform_3, window_bounds = array<i64: 9, 64, 64>}, {pipeline_mode = #tpu.pipeline_mode<synchronous>, transform_indices = @transform_4, window_bounds = array<i64: 6, 64>}, {pipeline_mode = #tpu.pipeline_mode<synchronous>, transform_indices = @transform_5, window_bounds = array<i64: 64, 256>}, {pipeline_mode = #tpu.pipeline_mode<synchronous>, transform_indices = @transform_6, window_bounds = array<i64: 64, 64>}, {pipeline_mode = #tpu.pipeline_mode<synchronous>, transform_indices = @transform_7, window_bounds = array<i64: 64, 576>}, {pipeline_mode = #tpu.pipeline_mode<synchronous>, transform_indices = @transform_8, window_bounds = array<i64: 64, 256>}, {pipeline_mode = #tpu.pipeline_mode<synchronous>, transform_indices = @transform_9, window_bounds = array<i64: 2, 256>}, {pipeline_mode = #tpu.pipeline_mode<synchronous>, transform_indices = @transform_10, window_bounds = array<i64: 256, 512>}, {pipeline_mode = #tpu.pipeline_mode<synchronous>, transform_indices = @transform_11, window_bounds = array<i64: 1, 512>}, {transform_indices = @transform_12, window_bounds = array<i64: 1, 1, 512>}]} {
    %c0 = arith.constant 0 : index
    %c0_0 = arith.constant 0 : index
    %c0_1 = arith.constant 0 : index
    %0 = vector.load %arg1[%c0, %c0_0, %c0_1] : memref<1x256x256xbf16, #tpu.memory_space<vmem>>, vector<1x256x256xbf16>
    %1 = vector.shape_cast %0 : vector<1x256x256xbf16> to vector<256x256xbf16>
    %c0_2 = arith.constant 0 : index
    %c0_3 = arith.constant 0 : index
    %2 = vector.load %arg2[%c0_2, %c0_3] : memref<256x64xbf16, #tpu.memory_space<vmem>>, vector<256x64xbf16>
    %cst = arith.constant dense<0.000000e+00> : vector<256x64xf32>
    %3 = tpu.matmul %1, %2, %cst {dimension_numbers = #tpu.dot_dimension_numbers<[1], [0], [0], [1], [0, 0, 1, 1], [], []>} : vector<256x256xbf16>, vector<256x64xbf16>, vector<256x64xf32> -> vector<256x64xf32>
    %4 = arith.truncf %3 : vector<256x64xf32> to vector<256x64xbf16>
    %c0_4 = arith.constant 0 : index
    %c0_5 = arith.constant 0 : index
    %5 = vector.load %arg3[%c0_4, %c0_5] : memref<576x256xbf16, #tpu.memory_space<vmem>>, vector<576x256xbf16>
    %cst_6 = arith.constant dense<0.000000e+00> : vector<576x64xf32>
    %6 = tpu.matmul %5, %4, %cst_6 {dimension_numbers = #tpu.dot_dimension_numbers<[1], [0], [0], [1], [0, 0, 1, 1], [], []>} : vector<576x256xbf16>, vector<256x64xbf16>, vector<576x64xf32> -> vector<576x64xf32>
    %7 = vector.shape_cast %6 : vector<576x64xf32> to vector<9x64x64xf32>
    %8 = vector.extract_strided_slice %7 {offsets = [0, 0, 0], sizes = [1, 64, 64], strides = [1, 1, 1]} : vector<9x64x64xf32> to vector<1x64x64xf32>
    %9 = vector.shape_cast %8 : vector<1x64x64xf32> to vector<64x64xf32>
    %10 = vector.extract_strided_slice %7 {offsets = [1, 0, 0], sizes = [1, 64, 64], strides = [1, 1, 1]} : vector<9x64x64xf32> to vector<1x64x64xf32>
    %11 = vector.shape_cast %10 : vector<1x64x64xf32> to vector<64x64xf32>
    %12 = arith.maximumf %9, %11 : vector<64x64xf32>
    %13 = vector.extract_strided_slice %7 {offsets = [2, 0, 0], sizes = [1, 64, 64], strides = [1, 1, 1]} : vector<9x64x64xf32> to vector<1x64x64xf32>
    %14 = vector.shape_cast %13 : vector<1x64x64xf32> to vector<64x64xf32>
    %15 = arith.maximumf %12, %14 : vector<64x64xf32>
    %16 = vector.extract_strided_slice %7 {offsets = [3, 0, 0], sizes = [1, 64, 64], strides = [1, 1, 1]} : vector<9x64x64xf32> to vector<1x64x64xf32>
    %17 = vector.shape_cast %16 : vector<1x64x64xf32> to vector<64x64xf32>
    %18 = arith.maximumf %15, %17 : vector<64x64xf32>
    %19 = vector.extract_strided_slice %7 {offsets = [4, 0, 0], sizes = [1, 64, 64], strides = [1, 1, 1]} : vector<9x64x64xf32> to vector<1x64x64xf32>
    %20 = vector.shape_cast %19 : vector<1x64x64xf32> to vector<64x64xf32>
    %21 = arith.maximumf %18, %20 : vector<64x64xf32>
    %22 = vector.extract_strided_slice %7 {offsets = [5, 0, 0], sizes = [1, 64, 64], strides = [1, 1, 1]} : vector<9x64x64xf32> to vector<1x64x64xf32>
    %23 = vector.shape_cast %22 : vector<1x64x64xf32> to vector<64x64xf32>
    %24 = arith.maximumf %21, %23 : vector<64x64xf32>
    %25 = vector.extract_strided_slice %7 {offsets = [6, 0, 0], sizes = [1, 64, 64], strides = [1, 1, 1]} : vector<9x64x64xf32> to vector<1x64x64xf32>
    %26 = vector.shape_cast %25 : vector<1x64x64xf32> to vector<64x64xf32>
    %27 = arith.maximumf %24, %26 : vector<64x64xf32>
    %28 = vector.extract_strided_slice %7 {offsets = [7, 0, 0], sizes = [1, 64, 64], strides = [1, 1, 1]} : vector<9x64x64xf32> to vector<1x64x64xf32>
    %29 = vector.shape_cast %28 : vector<1x64x64xf32> to vector<64x64xf32>
    %30 = arith.maximumf %27, %29 : vector<64x64xf32>
    %31 = vector.extract_strided_slice %7 {offsets = [8, 0, 0], sizes = [1, 64, 64], strides = [1, 1, 1]} : vector<9x64x64xf32> to vector<1x64x64xf32>
    %32 = vector.shape_cast %31 : vector<1x64x64xf32> to vector<64x64xf32>
    %33 = arith.maximumf %30, %32 : vector<64x64xf32>
    %c0_7 = arith.constant 0 : index
    %c0_8 = arith.constant 0 : index
    %34 = vector.load %arg5[%c0_7, %c0_8] : memref<6x64xf32, #tpu.memory_space<vmem>>, vector<1x64xf32>
    %c1 = arith.constant 1 : index
    %c0_9 = arith.constant 0 : index
    %35 = vector.load %arg5[%c1, %c0_9] : memref<6x64xf32, #tpu.memory_space<vmem>>, vector<1x64xf32>
    %c2 = arith.constant 2 : index
    %c0_10 = arith.constant 0 : index
    %36 = vector.load %arg5[%c2, %c0_10] : memref<6x64xf32, #tpu.memory_space<vmem>>, vector<1x64xf32>
    %c3 = arith.constant 3 : index
    %c0_11 = arith.constant 0 : index
    %37 = vector.load %arg5[%c3, %c0_11] : memref<6x64xf32, #tpu.memory_space<vmem>>, vector<1x64xf32>
    %c4 = arith.constant 4 : index
    %c0_12 = arith.constant 0 : index
    %38 = vector.load %arg5[%c4, %c0_12] : memref<6x64xf32, #tpu.memory_space<vmem>>, vector<1x64xf32>
    %c5 = arith.constant 5 : index
    %c0_13 = arith.constant 0 : index
    %39 = vector.load %arg5[%c5, %c0_13] : memref<6x64xf32, #tpu.memory_space<vmem>>, vector<1x64xf32>
    %40 = vector.broadcast %34 : vector<1x64xf32> to vector<64x64xf32>
    %41 = arith.mulf %33, %40 : vector<64x64xf32>
    %42 = vector.broadcast %35 : vector<1x64xf32> to vector<64x64xf32>
    %43 = arith.addf %41, %42 : vector<64x64xf32>
    %cst_14 = arith.constant 0.000000e+00 : f32
    %44 = vector.broadcast %cst_14 : f32 to vector<64x64xf32>
    %45 = arith.maximumf %43, %44 : vector<64x64xf32>
    %46 = arith.truncf %45 : vector<64x64xf32> to vector<64x64xbf16>
    %c0_15 = arith.constant 0 : index
    %c0_16 = arith.constant 0 : index
    %47 = vector.load %arg6[%c0_15, %c0_16] : memref<64x256xbf16, #tpu.memory_space<vmem>>, vector<64x256xbf16>
    %cst_17 = arith.constant dense<0.000000e+00> : vector<64x256xf32>
    %48 = tpu.matmul %46, %47, %cst_17 {dimension_numbers = #tpu.dot_dimension_numbers<[1], [0], [0], [1], [0, 0, 1, 1], [], []>} : vector<64x64xbf16>, vector<64x256xbf16>, vector<64x256xf32> -> vector<64x256xf32>
    %c0_18 = arith.constant 0 : index
    %c0_19 = arith.constant 0 : index
    %49 = vector.load %arg7[%c0_18, %c0_19] : memref<64x64xbf16, #tpu.memory_space<vmem>>, vector<64x64xbf16>
    %cst_20 = arith.constant dense<0.000000e+00> : vector<64x64xf32>
    %50 = tpu.matmul %46, %49, %cst_20 {dimension_numbers = #tpu.dot_dimension_numbers<[1], [0], [0], [1], [0, 0, 1, 1], [], []>} : vector<64x64xbf16>, vector<64x64xbf16>, vector<64x64xf32> -> vector<64x64xf32>
    %51 = vector.broadcast %36 : vector<1x64xf32> to vector<64x64xf32>
    %52 = arith.mulf %50, %51 : vector<64x64xf32>
    %53 = vector.broadcast %37 : vector<1x64xf32> to vector<64x64xf32>
    %54 = arith.addf %52, %53 : vector<64x64xf32>
    %cst_21 = arith.constant 0.000000e+00 : f32
    %55 = vector.broadcast %cst_21 : f32 to vector<64x64xf32>
    %56 = arith.maximumf %54, %55 : vector<64x64xf32>
    %57 = arith.truncf %56 : vector<64x64xf32> to vector<64x64xbf16>
    %c0_22 = arith.constant 0 : index
    %c0_23 = arith.constant 0 : index
    %58 = vector.load %arg8[%c0_22, %c0_23] : memref<64x576xbf16, #tpu.memory_space<vmem>>, vector<64x576xbf16>
    %cst_24 = arith.constant dense<0.000000e+00> : vector<64x576xf32>
    %59 = tpu.matmul %57, %58, %cst_24 {dimension_numbers = #tpu.dot_dimension_numbers<[1], [0], [0], [1], [0, 0, 1, 1], [], []>} : vector<64x64xbf16>, vector<64x576xbf16>, vector<64x576xf32> -> vector<64x576xf32>
    %60 = arith.truncf %59 : vector<64x576xf32> to vector<64x576xbf16>
    %c0_25 = arith.constant 0 : index
    %c0_26 = arith.constant 0 : index
    %c0_27 = arith.constant 0 : index
    %61 = vector.load %arg4[%c0_25, %c0_26, %c0_27] : memref<9x64x64xbf16, #tpu.memory_space<vmem>>, vector<1x64x64xbf16>
    %62 = vector.shape_cast %61 : vector<1x64x64xbf16> to vector<64x64xbf16>
    %63 = vector.extract_strided_slice %60 {offsets = [0, 0], sizes = [64, 64], strides = [1, 1]} : vector<64x576xbf16> to vector<64x64xbf16>
    %cst_28 = arith.constant dense<0.000000e+00> : vector<64x64xf32>
    %64 = tpu.matmul %62, %63, %cst_28 {dimension_numbers = #tpu.dot_dimension_numbers<[1], [0], [0], [1], [0, 0, 1, 1], [], []>} : vector<64x64xbf16>, vector<64x64xbf16>, vector<64x64xf32> -> vector<64x64xf32>
    %c1_29 = arith.constant 1 : index
    %c0_30 = arith.constant 0 : index
    %c0_31 = arith.constant 0 : index
    %65 = vector.load %arg4[%c1_29, %c0_30, %c0_31] : memref<9x64x64xbf16, #tpu.memory_space<vmem>>, vector<1x64x64xbf16>
    %66 = vector.shape_cast %65 : vector<1x64x64xbf16> to vector<64x64xbf16>
    %67 = vector.extract_strided_slice %60 {offsets = [0, 64], sizes = [64, 64], strides = [1, 1]} : vector<64x576xbf16> to vector<64x64xbf16>
    %cst_32 = arith.constant dense<0.000000e+00> : vector<64x64xf32>
    %68 = tpu.matmul %66, %67, %cst_32 {dimension_numbers = #tpu.dot_dimension_numbers<[1], [0], [0], [1], [0, 0, 1, 1], [], []>} : vector<64x64xbf16>, vector<64x64xbf16>, vector<64x64xf32> -> vector<64x64xf32>
    %69 = arith.addf %64, %68 : vector<64x64xf32>
    %c2_33 = arith.constant 2 : index
    %c0_34 = arith.constant 0 : index
    %c0_35 = arith.constant 0 : index
    %70 = vector.load %arg4[%c2_33, %c0_34, %c0_35] : memref<9x64x64xbf16, #tpu.memory_space<vmem>>, vector<1x64x64xbf16>
    %71 = vector.shape_cast %70 : vector<1x64x64xbf16> to vector<64x64xbf16>
    %72 = vector.extract_strided_slice %60 {offsets = [0, 128], sizes = [64, 64], strides = [1, 1]} : vector<64x576xbf16> to vector<64x64xbf16>
    %cst_36 = arith.constant dense<0.000000e+00> : vector<64x64xf32>
    %73 = tpu.matmul %71, %72, %cst_36 {dimension_numbers = #tpu.dot_dimension_numbers<[1], [0], [0], [1], [0, 0, 1, 1], [], []>} : vector<64x64xbf16>, vector<64x64xbf16>, vector<64x64xf32> -> vector<64x64xf32>
    %74 = arith.addf %69, %73 : vector<64x64xf32>
    %c3_37 = arith.constant 3 : index
    %c0_38 = arith.constant 0 : index
    %c0_39 = arith.constant 0 : index
    %75 = vector.load %arg4[%c3_37, %c0_38, %c0_39] : memref<9x64x64xbf16, #tpu.memory_space<vmem>>, vector<1x64x64xbf16>
    %76 = vector.shape_cast %75 : vector<1x64x64xbf16> to vector<64x64xbf16>
    %77 = vector.extract_strided_slice %60 {offsets = [0, 192], sizes = [64, 64], strides = [1, 1]} : vector<64x576xbf16> to vector<64x64xbf16>
    %cst_40 = arith.constant dense<0.000000e+00> : vector<64x64xf32>
    %78 = tpu.matmul %76, %77, %cst_40 {dimension_numbers = #tpu.dot_dimension_numbers<[1], [0], [0], [1], [0, 0, 1, 1], [], []>} : vector<64x64xbf16>, vector<64x64xbf16>, vector<64x64xf32> -> vector<64x64xf32>
    %79 = arith.addf %74, %78 : vector<64x64xf32>
    %c4_41 = arith.constant 4 : index
    %c0_42 = arith.constant 0 : index
    %c0_43 = arith.constant 0 : index
    %80 = vector.load %arg4[%c4_41, %c0_42, %c0_43] : memref<9x64x64xbf16, #tpu.memory_space<vmem>>, vector<1x64x64xbf16>
    %81 = vector.shape_cast %80 : vector<1x64x64xbf16> to vector<64x64xbf16>
    %82 = vector.extract_strided_slice %60 {offsets = [0, 256], sizes = [64, 64], strides = [1, 1]} : vector<64x576xbf16> to vector<64x64xbf16>
    %cst_44 = arith.constant dense<0.000000e+00> : vector<64x64xf32>
    %83 = tpu.matmul %81, %82, %cst_44 {dimension_numbers = #tpu.dot_dimension_numbers<[1], [0], [0], [1], [0, 0, 1, 1], [], []>} : vector<64x64xbf16>, vector<64x64xbf16>, vector<64x64xf32> -> vector<64x64xf32>
    %84 = arith.addf %79, %83 : vector<64x64xf32>
    %c5_45 = arith.constant 5 : index
    %c0_46 = arith.constant 0 : index
    %c0_47 = arith.constant 0 : index
    %85 = vector.load %arg4[%c5_45, %c0_46, %c0_47] : memref<9x64x64xbf16, #tpu.memory_space<vmem>>, vector<1x64x64xbf16>
    %86 = vector.shape_cast %85 : vector<1x64x64xbf16> to vector<64x64xbf16>
    %87 = vector.extract_strided_slice %60 {offsets = [0, 320], sizes = [64, 64], strides = [1, 1]} : vector<64x576xbf16> to vector<64x64xbf16>
    %cst_48 = arith.constant dense<0.000000e+00> : vector<64x64xf32>
    %88 = tpu.matmul %86, %87, %cst_48 {dimension_numbers = #tpu.dot_dimension_numbers<[1], [0], [0], [1], [0, 0, 1, 1], [], []>} : vector<64x64xbf16>, vector<64x64xbf16>, vector<64x64xf32> -> vector<64x64xf32>
    %89 = arith.addf %84, %88 : vector<64x64xf32>
    %c6 = arith.constant 6 : index
    %c0_49 = arith.constant 0 : index
    %c0_50 = arith.constant 0 : index
    %90 = vector.load %arg4[%c6, %c0_49, %c0_50] : memref<9x64x64xbf16, #tpu.memory_space<vmem>>, vector<1x64x64xbf16>
    %91 = vector.shape_cast %90 : vector<1x64x64xbf16> to vector<64x64xbf16>
    %92 = vector.extract_strided_slice %60 {offsets = [0, 384], sizes = [64, 64], strides = [1, 1]} : vector<64x576xbf16> to vector<64x64xbf16>
    %cst_51 = arith.constant dense<0.000000e+00> : vector<64x64xf32>
    %93 = tpu.matmul %91, %92, %cst_51 {dimension_numbers = #tpu.dot_dimension_numbers<[1], [0], [0], [1], [0, 0, 1, 1], [], []>} : vector<64x64xbf16>, vector<64x64xbf16>, vector<64x64xf32> -> vector<64x64xf32>
    %94 = arith.addf %89, %93 : vector<64x64xf32>
    %c7 = arith.constant 7 : index
    %c0_52 = arith.constant 0 : index
    %c0_53 = arith.constant 0 : index
    %95 = vector.load %arg4[%c7, %c0_52, %c0_53] : memref<9x64x64xbf16, #tpu.memory_space<vmem>>, vector<1x64x64xbf16>
    %96 = vector.shape_cast %95 : vector<1x64x64xbf16> to vector<64x64xbf16>
    %97 = vector.extract_strided_slice %60 {offsets = [0, 448], sizes = [64, 64], strides = [1, 1]} : vector<64x576xbf16> to vector<64x64xbf16>
    %cst_54 = arith.constant dense<0.000000e+00> : vector<64x64xf32>
    %98 = tpu.matmul %96, %97, %cst_54 {dimension_numbers = #tpu.dot_dimension_numbers<[1], [0], [0], [1], [0, 0, 1, 1], [], []>} : vector<64x64xbf16>, vector<64x64xbf16>, vector<64x64xf32> -> vector<64x64xf32>
    %99 = arith.addf %94, %98 : vector<64x64xf32>
    %c8 = arith.constant 8 : index
    %c0_55 = arith.constant 0 : index
    %c0_56 = arith.constant 0 : index
    %100 = vector.load %arg4[%c8, %c0_55, %c0_56] : memref<9x64x64xbf16, #tpu.memory_space<vmem>>, vector<1x64x64xbf16>
    %101 = vector.shape_cast %100 : vector<1x64x64xbf16> to vector<64x64xbf16>
    %102 = vector.extract_strided_slice %60 {offsets = [0, 512], sizes = [64, 64], strides = [1, 1]} : vector<64x576xbf16> to vector<64x64xbf16>
    %cst_57 = arith.constant dense<0.000000e+00> : vector<64x64xf32>
    %103 = tpu.matmul %101, %102, %cst_57 {dimension_numbers = #tpu.dot_dimension_numbers<[1], [0], [0], [1], [0, 0, 1, 1], [], []>} : vector<64x64xbf16>, vector<64x64xbf16>, vector<64x64xf32> -> vector<64x64xf32>
    %104 = arith.addf %99, %103 : vector<64x64xf32>
    %105 = vector.broadcast %38 : vector<1x64xf32> to vector<64x64xf32>
    %106 = arith.mulf %104, %105 : vector<64x64xf32>
    %107 = vector.broadcast %39 : vector<1x64xf32> to vector<64x64xf32>
    %108 = arith.addf %106, %107 : vector<64x64xf32>
    %cst_58 = arith.constant 0.000000e+00 : f32
    %109 = vector.broadcast %cst_58 : f32 to vector<64x64xf32>
    %110 = arith.maximumf %108, %109 : vector<64x64xf32>
    %111 = arith.truncf %110 : vector<64x64xf32> to vector<64x64xbf16>
    %c0_59 = arith.constant 0 : index
    %c0_60 = arith.constant 0 : index
    %112 = vector.load %arg9[%c0_59, %c0_60] : memref<64x256xbf16, #tpu.memory_space<vmem>>, vector<64x256xbf16>
    %cst_61 = arith.constant dense<0.000000e+00> : vector<64x256xf32>
    %113 = tpu.matmul %111, %112, %cst_61 {dimension_numbers = #tpu.dot_dimension_numbers<[1], [0], [0], [1], [0, 0, 1, 1], [], []>} : vector<64x64xbf16>, vector<64x256xbf16>, vector<64x256xf32> -> vector<64x256xf32>
    %114 = arith.addf %113, %48 : vector<64x256xf32>
    %c0_62 = arith.constant 0 : index
    %c0_63 = arith.constant 0 : index
    %115 = vector.load %arg10[%c0_62, %c0_63] : memref<2x256xf32, #tpu.memory_space<vmem>>, vector<1x256xf32>
    %c1_64 = arith.constant 1 : index
    %c0_65 = arith.constant 0 : index
    %116 = vector.load %arg10[%c1_64, %c0_65] : memref<2x256xf32, #tpu.memory_space<vmem>>, vector<1x256xf32>
    %117 = vector.broadcast %115 : vector<1x256xf32> to vector<64x256xf32>
    %118 = arith.mulf %114, %117 : vector<64x256xf32>
    %119 = vector.broadcast %116 : vector<1x256xf32> to vector<64x256xf32>
    %120 = arith.addf %118, %119 : vector<64x256xf32>
    %cst_66 = arith.constant 0.000000e+00 : f32
    %121 = vector.broadcast %cst_66 : f32 to vector<64x256xf32>
    %122 = arith.maximumf %120, %121 : vector<64x256xf32>
    %cst_67 = arith.constant dense<0.000000e+00> : vector<256xf32>
    %123 = vector.multi_reduction <add>, %122, %cst_67 [0] : vector<64x256xf32> to vector<256xf32>
    %124 = vector.shape_cast %123 : vector<256xf32> to vector<1x256xf32>
    %cst_68 = arith.constant 6.400000e+01 : f32
    %125 = vector.broadcast %cst_68 : f32 to vector<1x256xf32>
    %126 = arith.divf %124, %125 : vector<1x256xf32>
    %127 = arith.truncf %126 : vector<1x256xf32> to vector<1x256xbf16>
    %c0_69 = arith.constant 0 : index
    %c0_70 = arith.constant 0 : index
    %128 = vector.load %arg11[%c0_69, %c0_70] : memref<256x512xbf16, #tpu.memory_space<vmem>>, vector<256x512xbf16>
    %cst_71 = arith.constant dense<0.000000e+00> : vector<1x512xf32>
    %129 = tpu.matmul %127, %128, %cst_71 {dimension_numbers = #tpu.dot_dimension_numbers<[1], [0], [0], [1], [0, 0, 1, 1], [], []>} : vector<1x256xbf16>, vector<256x512xbf16>, vector<1x512xf32> -> vector<1x512xf32>
    %c0_72 = arith.constant 0 : index
    %c0_73 = arith.constant 0 : index
    %130 = vector.load %arg12[%c0_72, %c0_73] : memref<1x512xf32, #tpu.memory_space<vmem>>, vector<1x512xf32>
    %131 = arith.addf %129, %130 : vector<1x512xf32>
    %c0_74 = arith.constant 0 : index
    %c0_75 = arith.constant 0 : index
    %c0_76 = arith.constant 0 : index
    %132 = vector.load %arg13[%c0_74, %c0_75, %c0_76] : memref<1x1x512xf32, #tpu.memory_space<vmem>>, vector<1x1x512xf32>
    %133 = vector.shape_cast %132 : vector<1x1x512xf32> to vector<1x512xf32>
    %134 = vector.shape_cast %131 : vector<1x512xf32> to vector<1x1x512xf32>
    tpu.vector_store %arg13[%c0_74, %c0_75, %c0_76], %134 {strides = array<i32>} : memref<1x1x512xf32, #tpu.memory_space<vmem>>, vector<1x1x512xf32>,
    return
  }
  func.func @transform_0(%arg0: i32) -> (i32, i32, i32) {
    %c0_i32 = arith.constant 0 : i32
    %c0_i32_0 = arith.constant 0 : i32
    %c0_i32_1 = arith.constant 0 : i32
    return %arg0, %c0_i32, %c0_i32_0 : i32, i32, i32
  }
  func.func @transform_1(%arg0: i32) -> (i32, i32) {
    %c0_i32 = arith.constant 0 : i32
    %c0_i32_0 = arith.constant 0 : i32
    %c0_i32_1 = arith.constant 0 : i32
    return %c0_i32, %c0_i32_0 : i32, i32
  }
  func.func @transform_2(%arg0: i32) -> (i32, i32) {
    %c0_i32 = arith.constant 0 : i32
    %c0_i32_0 = arith.constant 0 : i32
    %c0_i32_1 = arith.constant 0 : i32
    return %c0_i32, %c0_i32_0 : i32, i32
  }
  func.func @transform_3(%arg0: i32) -> (i32, i32, i32) {
    %c0_i32 = arith.constant 0 : i32
    %c0_i32_0 = arith.constant 0 : i32
    %c0_i32_1 = arith.constant 0 : i32
    %c0_i32_2 = arith.constant 0 : i32
    return %c0_i32, %c0_i32_0, %c0_i32_1 : i32, i32, i32
  }
  func.func @transform_4(%arg0: i32) -> (i32, i32) {
    %c0_i32 = arith.constant 0 : i32
    %c0_i32_0 = arith.constant 0 : i32
    %c0_i32_1 = arith.constant 0 : i32
    return %c0_i32, %c0_i32_0 : i32, i32
  }
  func.func @transform_5(%arg0: i32) -> (i32, i32) {
    %c0_i32 = arith.constant 0 : i32
    %c0_i32_0 = arith.constant 0 : i32
    %c0_i32_1 = arith.constant 0 : i32
    return %c0_i32, %c0_i32_0 : i32, i32
  }
  func.func @transform_6(%arg0: i32) -> (i32, i32) {
    %c0_i32 = arith.constant 0 : i32
    %c0_i32_0 = arith.constant 0 : i32
    %c0_i32_1 = arith.constant 0 : i32
    return %c0_i32, %c0_i32_0 : i32, i32
  }
  func.func @transform_7(%arg0: i32) -> (i32, i32) {
    %c0_i32 = arith.constant 0 : i32
    %c0_i32_0 = arith.constant 0 : i32
    %c0_i32_1 = arith.constant 0 : i32
    return %c0_i32, %c0_i32_0 : i32, i32
  }
  func.func @transform_8(%arg0: i32) -> (i32, i32) {
    %c0_i32 = arith.constant 0 : i32
    %c0_i32_0 = arith.constant 0 : i32
    %c0_i32_1 = arith.constant 0 : i32
    return %c0_i32, %c0_i32_0 : i32, i32
  }
  func.func @transform_9(%arg0: i32) -> (i32, i32) {
    %c0_i32 = arith.constant 0 : i32
    %c0_i32_0 = arith.constant 0 : i32
    %c0_i32_1 = arith.constant 0 : i32
    return %c0_i32, %c0_i32_0 : i32, i32
  }
  func.func @transform_10(%arg0: i32) -> (i32, i32) {
    %c0_i32 = arith.constant 0 : i32
    %c0_i32_0 = arith.constant 0 : i32
    %c0_i32_1 = arith.constant 0 : i32
    return %c0_i32, %c0_i32_0 : i32, i32
  }
  func.func @transform_11(%arg0: i32) -> (i32, i32) {
    %c0_i32 = arith.constant 0 : i32
    %c0_i32_0 = arith.constant 0 : i32
    %c0_i32_1 = arith.constant 0 : i32
    return %c0_i32, %c0_i32_0 : i32, i32
  }
  func.func @transform_12(%arg0: i32) -> (i32, i32, i32) {
    %c0_i32 = arith.constant 0 : i32
    %c0_i32_0 = arith.constant 0 : i32
    %c0_i32_1 = arith.constant 0 : i32
    return %arg0, %c0_i32, %c0_i32_0 : i32, i32, i32
  }
}

</mosaic_0001>

<bundles_post_ra>
// kernel: my_resnet_forward.1
= control target key start
LH: loop header
LB: loop body
LE: loop exit
PB: predicated region body
PF: predicated region fallthrough
CT: control target
= control target key end

     0   :  { %s5553_s21 = smov 0   ;;  %s6776_s0 = inlined_call_operand.vmem [shape: bf16[2,256,256], index: 0, kind: input, shape index: {}]   ;;  %s6777_s1 = inlined_call_operand.vmem [shape: bf16[256,64], index: 1, kind: input, shape index: {}]   ;;  %s6778_s2 = inlined_call_operand.vmem [shape: bf16[576,256], index: 2, kind: input, shape index: {}]   ;;  %s6779_s3 = inlined_call_operand.vmem [shape: bf16[9,64,64], index: 3, kind: input, shape index: {}]   ;;  %s6780_s4 = inlined_call_operand.vmem [shape: f32[6,64], index: 4, kind: input, shape index: {}]   ;;  %s6781_s5 = inlined_call_operand.vmem [shape: bf16[64,256], index: 5, kind: input, shape index: {}]   ;;  %s6782_s6 = inlined_call_operand.vmem [shape: bf16[64,64], index: 6, kind: input, shape index: {}]   ;;  %s6783_s7 = inlined_call_operand.vmem [shape: bf16[64,576], index: 7, kind: input, shape index: {}]   ;;  %s6784_s8 = inlined_call_operand.vmem [shape: bf16[64,256], index: 8, kind: input, shape index: {}]   ;;  %s6785_s9 = inlined_call_operand.vmem [shape: f32[2,256], index: 9, kind: input, shape index: {}]   ;;  %s6786_s10 = inlined_call_operand.vmem [shape: bf16[256,512], index: 10, kind: input, shape index: {}]   ;;  %s6787_s11 = inlined_call_operand.vmem [shape: f32[1,512], index: 11, kind: input, shape index: {}]   ;;  %s6788_s12 = inlined_call_operand.vmem [shape: f32[2,1,512], index: 12, kind: output, shape index: {}]  }
   0x1 LB: > { %s4328_s22 = sadd.s32 4294967295, %s5483_s21   ;;  %p4332_p0 = scmp.ge.s32.totalorder %s5483_s21, 1  ;;  %s5483_s21 = sphi %s5553_s21, %s22_s21  }
   0x2   : > { %p362_p1 = scmp.lt.s32.totalorder %s5483_s21, 3 }
   0x4   : > { %p363_p2 = pnand %p4332_p0, %p362_p1 }
   0x6   : > { %366 = sbr.rel (%p363_p2) target bundleno = 2215 (0x8a7), region = 68 }
   0xb   : > { %v5117_v0 = vld [vmem:[%s6777_s1 + $0x78] sm:$0xff]   ;;  %v5119_v2 = vld [vmem:[%s6777_s1 + $0x70] sm:$0xff]   ;;  %p403_p3 = scmp.lt.s32.totalorder %s4328_s22, 1  ;;  %v5121_v4 = vld [vmem:[%s6777_s1 + $0x68] sm:$0xff]   ;;  %v6789_v48 = vmov 0   ;;  %vm1817_vm0 = vcmask 523264  }
   0xc   : > { %v5118_v1 = vld [vmem:[%s6777_s1 + $0x38] sm:$0xff]   ;;  %4730 = vmatprep.subr.bf16.mxu0 %v5117_v0  ;;  %v5120_v3 = vld [vmem:[%s6777_s1 + $0x30] sm:$0xff]   ;;  %v5122_v5 = vld [vmem:[%s6777_s1 + $0x28] sm:$0xff]   ;;  %1342 = vmatprep.subr.bf16.mxu1 %v6789_v48  ;;  %s5486_s17 = smov 64  }
   0xd   : > { %4731 = vmatpush3.bf16.msra.mxu0 %v5118_v1  ;;  %s6817_s22 = smov (!%p403_p3, %s4328_s22), 1  ;;  %v5123_v6 = vld [vmem:[%s6777_s1 + $0x60] sm:$0xff]   ;;  %v5125_v8 = vld [vmem:[%s6777_s1 + $0x58] sm:$0xff]   ;;  %v5127_v10 = vld [vmem:[%s6777_s1 + $0x50] sm:$0xff]  }
   0xe   : > { %4732 = vmatprep.subr.bf16.mxu0 %v5119_v2  ;;  %v5124_v7 = vld [vmem:[%s6777_s1 + $0x20] sm:$0xff]   ;;  %s4729_s23 = sshll.u32 %s6817_s22, 8  ;;  %v5126_v9 = vld [vmem:[%s6777_s1 + $0x18] sm:$0xff]   ;;  %v5128_v12 = vld [vmem:[%s6777_s1 + $0x10] sm:$0xff]   ;;  %s4335_s20 = sshll.u32 %s6817_s22, 2 }
   0xf   : > { %s5594_s28 = scalar_lea.vmem %s6776_s0, %s4729_s23  ;;  %v5129_v13 = vld [vmem:[%s6777_s1 + $0x48] sm:$0xff]   ;;  %v5131_v15 = vld [vmem:[%s6777_s1 + $0x40] sm:$0xff]   ;;  %s411_s25 = scalar_lea.vmem %s6788_s12, %s4335_s20 }
  0x10   : > { %v5135_v11 = vld [vmem:[%s5594_s28 + $0x4] ss:$8 sps:$4 sm:$0xff]   ;;  %v5133_v17 = vld [vmem:[%s5594_s28] ss:$8 sps:$4 sm:$0xff]   ;;  %v5136_v18 = vld [vmem:[%s5594_s28 + $0x14] ss:$8 sps:$4 sm:$0xff]  }
  0x11   : > { %4733 = vmatpush3.bf16.msra.mxu0 %v5120_v3  ;;  %765 = vmatprep.mubr.bf16.mxu0 %v5135_v11  ;;  %v5130_v14 = vld [vmem:[%s6777_s1 + $0x8] sm:$0xff]   ;;  %v5132_v16 = vld [vmem:[%s6777_s1] sm:$0xff]   ;;  %v5138_v19 = vld [vmem:[%s5594_s28 + $0x10] ss:$8 sps:$4 sm:$0xff]  }
  0x12   : > { %4734 = vmatprep.subr.bf16.mxu0 %v5121_v4  ;;  %v5139_v20 = vld [vmem:[%s5594_s28 + $0x24] ss:$8 sps:$4 sm:$0xff]   ;;  %v5141_v21 = vld [vmem:[%s5594_s28 + $0x20] ss:$8 sps:$4 sm:$0xff]   ;;  %v5142_v22 = vld [vmem:[%s5594_s28 + $0x34] ss:$8 sps:$4 sm:$0xff]  }
  0x13   : > { %v5144_v23 = vld [vmem:[%s5594_s28 + $0x30] ss:$8 sps:$4 sm:$0xff]   ;;  %v5145_v24 = vld [vmem:[%s5594_s28 + $0x44] ss:$8 sps:$4 sm:$0xff]   ;;  %v5147_v25 = vld [vmem:[%s5594_s28 + $0x40] ss:$8 sps:$4 sm:$0xff]  }
  0x14   : > { %v5148_v26 = vld [vmem:[%s5594_s28 + $0x54] ss:$8 sps:$4 sm:$0xff]   ;;  %v5150_v27 = vld [vmem:[%s5594_s28 + $0x50] ss:$8 sps:$4 sm:$0xff]   ;;  %v5151_v28 = vld [vmem:[%s5594_s28 + $0x64] ss:$8 sps:$4 sm:$0xff]  }
  0x15   : > { %4735 = vmatpush3.bf16.msra.mxu0 %v5122_v5  ;;  %v5153_v29 = vld [vmem:[%s5594_s28 + $0x60] ss:$8 sps:$4 sm:$0xff]   ;;  %v5154_v30 = vld [vmem:[%s5594_s28 + $0x74] ss:$8 sps:$4 sm:$0xff]   ;;  %v5156_v31 = vld [vmem:[%s5594_s28 + $0x70] ss:$8 sps:$4 sm:$0xff]  }
  0x16   : > { %4736 = vmatprep.subr.bf16.mxu0 %v5123_v6  ;;  %v5157_v32 = vld [vmem:[%s5594_s28 + $0x84] ss:$8 sps:$4 sm:$0xff]   ;;  %v5159_v33 = vld [vmem:[%s5594_s28 + $0x80] ss:$8 sps:$4 sm:$0xff]   ;;  %v5160_v34 = vld [vmem:[%s5594_s28 + $0x94] ss:$8 sps:$4 sm:$0xff]  }
  0x17   : > { %v5162_v35 = vld [vmem:[%s5594_s28 + $0x90] ss:$8 sps:$4 sm:$0xff]   ;;  %v5163_v36 = vld [vmem:[%s5594_s28 + $0xa4] ss:$8 sps:$4 sm:$0xff]   ;;  %v5165_v37 = vld [vmem:[%s5594_s28 + $0xa0] ss:$8 sps:$4 sm:$0xff]  }
  0x18   : > { %v5166_v38 = vld [vmem:[%s5594_s28 + $0xb4] ss:$8 sps:$4 sm:$0xff]   ;;  %v5168_v39 = vld [vmem:[%s5594_s28 + $0xb0] ss:$8 sps:$4 sm:$0xff]   ;;  %v5169_v40 = vld [vmem:[%s5594_s28 + $0xc4] ss:$8 sps:$4 sm:$0xff]  }
  0x19   : > { %4737 = vmatpush3.bf16.msra.mxu0 %v5124_v7  ;;  %v5171_v41 = vld [vmem:[%s5594_s28 + $0xc0] ss:$8 sps:$4 sm:$0xff]   ;;  %v5172_v42 = vld [vmem:[%s5594_s28 + $0xd4] ss:$8 sps:$4 sm:$0xff]   ;;  %v5174_v43 = vld [vmem:[%s5594_s28 + $0xd0] ss:$8 sps:$4 sm:$0xff]  }
  0x1a   : > { %4738 = vmatprep.subr.bf16.mxu0 %v5125_v8  ;;  %v5175_v44 = vld [vmem:[%s5594_s28 + $0xe4] ss:$8 sps:$4 sm:$0xff]   ;;  %v5177_v45 = vld [vmem:[%s5594_s28 + $0xe0] ss:$8 sps:$4 sm:$0xff]   ;;  %v5178_v46 = vld [vmem:[%s5594_s28 + $0xf4] ss:$8 sps:$4 sm:$0xff]  }
  0x1b   : > { %v5180_v47 = vld [vmem:[%s5594_s28 + $0xf0] ss:$8 sps:$4 sm:$0xff]   ;;  %v5183_v8 = vld [vmem:[%s6778_s2 + $0x4] ss:$8 sps:$4 sm:$0xff]  }
  0x1c   : > { %1374 = vmatprep.mubr.bf16.mxu1 %v5183_v8 }
  0x1d   : > { %4739 = vmatpush3.bf16.msra.mxu0 %v5126_v9 }
  0x1e   : > { %4740 = vmatprep.subr.bf16.mxu0 %v5127_v10 }
  0x21   : > { %4741 = vmatpush3.bf16.msra.mxu0 %v5128_v12 }
  0x22   : > { %4742 = vmatprep.subr.bf16.mxu0 %v5129_v13 }
  0x25   : > { %4743 = vmatpush3.bf16.msra.mxu0 %v5130_v14 }
  0x26   : > { %4744 = vmatprep.subr.bf16.mxu0 %v5131_v15 }
  0x29   : > { %4745 = vmatpush3.bf16.msra.mxu0 %v5132_v16 }
  0x2c   : > { %766 = vmatmul.mubr.bf16.vlgmr.msra.gmra.mxu0 %v5133_v17 }
  0x2d   : > { %773 = vmatprep.mubr.bf16.mxu0 %v5136_v18 }
  0x34   : > { %774 = vmatmul.mubr.bf16.gmra.mxu0 %v5138_v19 }
  0x35   : > { %781 = vmatprep.mubr.bf16.mxu0 %v5139_v20 }
  0x3c   : > { %782 = vmatmul.mubr.bf16.gmra.mxu0 %v5141_v21 }
  0x3d   : > { %789 = vmatprep.mubr.bf16.mxu0 %v5142_v22 }
  0x44   : > { %790 = vmatmul.mubr.bf16.gmra.mxu0 %v5144_v23 }
  0x45   : > { %797 = vmatprep.mubr.bf16.mxu0 %v5145_v24 }
  0x4c   : > { %798 = vmatmul.mubr.bf16.gmra.mxu0 %v5147_v25 }
  0x4d   : > { %805 = vmatprep.mubr.bf16.mxu0 %v5148_v26 }
  0x54   : > { %806 = vmatmul.mubr.bf16.gmra.mxu0 %v5150_v27 }
  0x55   : > { %813 = vmatprep.mubr.bf16.mxu0 %v5151_v28 }
  0x5c   : > { %814 = vmatmul.mubr.bf16.gmra.mxu0 %v5153_v29 }
  0x5d   : > { %821 = vmatprep.mubr.bf16.mxu0 %v5154_v30 }
  0x64   : > { %822 = vmatmul.mubr.bf16.gmra.mxu0 %v5156_v31 }
  0x65   : > { %829 = vmatprep.mubr.bf16.mxu0 %v5157_v32 }
  0x6c   : > { %830 = vmatmul.mubr.bf16.gmra.mxu0 %v5159_v33 }
  0x6d   : > { %837 = vmatprep.mubr.bf16.mxu0 %v5160_v34 }
  0x74   : > { %838 = vmatmul.mubr.bf16.gmra.mxu0 %v5162_v35 }
  0x75   : > { %845 = vmatprep.mubr.bf16.mxu0 %v5163_v36 }
  0x7c   : > { %846 = vmatmul.mubr.bf16.gmra.mxu0 %v5165_v37 }
  0x7d   : > { %853 = vmatprep.mubr.bf16.mxu0 %v5166_v38 }
  0x84   : > { %854 = vmatmul.mubr.bf16.gmra.mxu0 %v5168_v39 }
  0x85   : > { %861 = vmatprep.mubr.bf16.mxu0 %v5169_v40 }
  0x8c   : > { %862 = vmatmul.mubr.bf16.gmra.mxu0 %v5171_v41 }
  0x8d   : > { %869 = vmatprep.mubr.bf16.mxu0 %v5172_v42 }
  0x94   : > { %870 = vmatmul.mubr.bf16.gmra.mxu0 %v5174_v43 }
  0x95   : > { %877 = vmatprep.mubr.bf16.mxu0 %v5175_v44 }
  0x9c   : > { %878 = vmatmul.mubr.bf16.gmra.mxu0 %v5177_v45 }
  0x9d   : > { %885 = vmatprep.mubr.bf16.mxu0 %v5178_v46 }
  0xa4   : > { %886 = vmatmul.mubr.bf16.gmra.mxu0 %v5180_v47 }
  0xa5   : > { %1862 = vmatprep.mubr.bf16.mxu0 %v6789_v48 }
  0xec   : > { %v4746_v49 = vpop.f32.mrf.mxu0 }
  0xee   : > { %v4747_v50 = vpop.f32.mrf.mxu0 }
  0xef   : > { %v5651_v51 = vadd.f32 %v4747_v50, %v4746_v49 }
  0xf0   : > { %v4749_v52 = vpop.f32.mrf.mxu0 }
  0xf2   : > { %v4750_v53 = vpop.f32.mrf.mxu0 }
  0xf3   : > { %v5653_v54 = vadd.f32 %v4750_v53, %v4749_v52 }
  0xf4   : > { %v4752_v55 = vpop.f32.mrf.mxu0 }
  0xf5   : > { %v894_v56 = vpack.c.bf16 %v5653_v54, %v5651_v51 }
  0xf6   : > { %v4753_v57 = vpop.f32.mrf.mxu0 }
  0xf7   : > { %v5657_v58 = vadd.f32 %v4753_v57, %v4752_v55 }
  0xf8   : > { %v4755_v59 = vpop.f32.mrf.mxu0 }
  0xfa   : > { %v4756_v60 = vpop.f32.mrf.mxu0 }
  0xfb   : > { %v5659_v61 = vadd.f32 %v4756_v60, %v4755_v59 }
  0xfc   : > { %v4758_v62 = vpop.f32.mrf.mxu0 }
  0xfd   : > { %v895_v63 = vpack.c.bf16 %v5659_v61, %v5657_v58 }
  0xfe   : > { %v4759_v0 = vpop.f32.mrf.mxu0 }
  0xff   : > { %v5663_v1 = vadd.f32 %v4759_v0, %v4758_v62 }
 0x100   : > { %v4761_v2 = vpop.f32.mrf.mxu0 }
 0x102   : > { %v4762_v3 = vpop.f32.mrf.mxu0 }
 0x103   : > { %v4763_v57 = vadd.f32 %v4762_v3, %v4761_v2 }
 0x104   : > { %v4764_v4 = vpop.f32.mrf.mxu0 }
 0x106   : > { %v4765_v5 = vpop.f32.mrf.mxu0 }
 0x107   : > { %v4766_v52 = vadd.f32 %v4765_v5, %v4764_v4 }
 0x108   : > { %v4767_v6 = vpop.f32.mrf.mxu0 }
 0x10a   : > { %v4768_v7 = vpop.f32.mrf.mxu0 }
 0x10b   : > { %v4769_v47 = vadd.f32 %v4768_v7, %v4767_v6  ;;  %v896_v6 = vpack.c.bf16 %v4763_v57, %v5663_v1  ;;  %v5210_v57 = vld [vmem:[%s6778_s2 + $0x90] ss:$8 sps:$4 sm:$0xff]  }
 0x10c   : > { %v4770_v9 = vpop.f32.mrf.mxu0 }
 0x10d   : > { %v897_v59 = vpack.c.bf16 %v4769_v47, %v4766_v52  ;;  %v5201_v47 = vld [vmem:[%s6778_s2 + $0x60] ss:$8 sps:$4 sm:$0xff]   ;;  %v5205_v52 = vld [vmem:[%s6778_s2 + $0x84] ss:$8 sps:$4 sm:$0xff]  }
 0x10e   : > { %v4771_v10 = vpop.f32.mrf.mxu0 }
 0x10f   : > { %v4772_v44 = vadd.f32 %v4771_v10, %v4770_v9 }
 0x110   : > { %v4773_v11 = vpop.f32.mrf.mxu0 }
 0x112   : > { %v4774_v12 = vpop.f32.mrf.mxu0 }
 0x113   : > { %v4775_v40 = vadd.f32 %v4774_v12, %v4773_v11 }
 0x114   : > { %v4776_v13 = vpop.f32.mrf.mxu0 }
 0x115   : > { %v898_v49 = vpack.c.bf16 %v4775_v40, %v4772_v44  ;;  %v5187_v40 = vld [vmem:[%s6778_s2 + $0x24] ss:$8 sps:$4 sm:$0xff]   ;;  %v5196_v44 = vld [vmem:[%s6778_s2 + $0x54] ss:$8 sps:$4 sm:$0xff]  }
 0x116   : > { %v4777_v14 = vpop.f32.mrf.mxu0 }
 0x117   : > { %v4778_v37 = vadd.f32 %v4777_v14, %v4776_v13 }
 0x118   : > { %v4779_v15 = vpop.f32.mrf.mxu0 }
 0x11a   : > { %v4780_v16 = vpop.f32.mrf.mxu0 }
 0x11b   : > { %v4781_v34 = vadd.f32 %v4780_v16, %v4779_v15 }
 0x11c   : > { %v4782_v17 = vpop.f32.mrf.mxu0 }
 0x11d   : > { %v899_v41 = vpack.c.bf16 %v4781_v34, %v4778_v37  ;;  %v5184_v37 = vld [vmem:[%s6778_s2 + $0x14] ss:$8 sps:$4 sm:$0xff]  }
 0x11e   : > { %v4783_v18 = vpop.f32.mrf.mxu0 }
 0x11f   : > { %v4784_v31 = vadd.f32 %v4783_v18, %v4782_v17 }
 0x120   : > { %v4785_v19 = vpop.f32.mrf.mxu0 }
 0x122   : > { %v4786_v20 = vpop.f32.mrf.mxu0 }
 0x123   : > { %v4787_v28 = vadd.f32 %v4786_v20, %v4785_v19 }
 0x124   : > { %v4788_v21 = vpop.f32.mrf.mxu0 }
 0x125   : > { %v900_v35 = vpack.c.bf16 %v4787_v28, %v4784_v31 }
 0x126   : > { %v4789_v22 = vpop.f32.mrf.mxu0 }
 0x127   : > { %v4790_v25 = vadd.f32 %v4789_v22, %v4788_v21 }
 0x128   : > { %v4791_v23 = vpop.f32.mrf.mxu0 }
 0x12a   : > { %v4792_v24 = vpop.f32.mrf.mxu0 }
 0x12b   : > { %v4793_v26 = vadd.f32 %v4792_v24, %v4791_v23 }
 0x12c   : > { %v4794_v27 = vpop.f32.mrf.mxu0 }
 0x12d   : > { %v901_v29 = vpack.c.bf16 %v4793_v26, %v4790_v25 }
 0x12e   : > { %v4795_v30 = vpop.f32.mrf.mxu0 }
 0x12f   : > { %v5668_v32 = vadd.f32 %v4795_v30, %v4794_v27  ;;  %1343 = vmatpush1.bf16.msra.mxu1 %v901_v29 }
 0x130   : > { %v4797_v33 = vpop.f32.mrf.mxu0  ;;  %1344 = vmatprep.subr.bf16.mxu1 %v6789_v48 }
 0x132   : > { %v4798_v36 = vpop.f32.mrf.mxu0 }
 0x133   : > { %v5671_v38 = vadd.f32 %v4798_v36, %v4797_v33  ;;  %1345 = vmatpush1.bf16.msra.mxu1 %v900_v35  ;;  %v5181_v36 = vld [vmem:[%s6778_s2] ss:$8 sps:$4 sm:$0xff]  }
 0x134   : > { %v4800_v39 = vpop.f32.mrf.mxu0  ;;  %1346 = vmatprep.subr.bf16.mxu1 %v6789_v48 }
 0x135   : > { %v902_v42 = vpack.c.bf16 %v5671_v38, %v5668_v32  ;;  %v5189_v32 = vld [vmem:[%s6778_s2 + $0x20] ss:$8 sps:$4 sm:$0xff]   ;;  %v5190_v38 = vld [vmem:[%s6778_s2 + $0x34] ss:$8 sps:$4 sm:$0xff]  }
 0x136   : > { %v4801_v43 = vpop.f32.mrf.mxu0 }
 0x137   : > { %v5676_v45 = vadd.f32 %v4801_v43, %v4800_v39  ;;  %1347 = vmatpush1.bf16.msra.mxu1 %v899_v41  ;;  %v5186_v39 = vld [vmem:[%s6778_s2 + $0x10] ss:$8 sps:$4 sm:$0xff]   ;;  %v5195_v43 = vld [vmem:[%s6778_s2 + $0x40] ss:$8 sps:$4 sm:$0xff]  }
 0x138   : > { %v4803_v46 = vpop.f32.mrf.mxu0  ;;  %1348 = vmatprep.subr.bf16.mxu1 %v6789_v48  ;;  %v5192_v41 = vld [vmem:[%s6778_s2 + $0x30] ss:$8 sps:$4 sm:$0xff]  }
 0x13a   : > { %v4804_v50 = vpop.f32.mrf.mxu0 }
 0x13b   : > { %v5679_v53 = vadd.f32 %v4804_v50, %v4803_v46  ;;  %1349 = vmatpush1.bf16.msra.mxu1 %v898_v49  ;;  %v5199_v46 = vld [vmem:[%s6778_s2 + $0x64] ss:$8 sps:$4 sm:$0xff]   ;;  %v5202_v49 = vld [vmem:[%s6778_s2 + $0x74] ss:$8 sps:$4 sm:$0xff]   ;;  %v5204_v50 = vld [vmem:[%s6778_s2 + $0x70] ss:$8 sps:$4 sm:$0xff]  }
 0x13c   : > { %v4806_v55 = vpop.f32.mrf.mxu0  ;;  %1350 = vmatprep.subr.bf16.mxu1 %v6789_v48 }
 0x13d   : > { %v903_v60 = vpack.c.bf16 %v5679_v53, %v5676_v45  ;;  %v5198_v45 = vld [vmem:[%s6778_s2 + $0x50] ss:$8 sps:$4 sm:$0xff]   ;;  %v5207_v53 = vld [vmem:[%s6778_s2 + $0x80] ss:$8 sps:$4 sm:$0xff]  }
 0x13e   : > { %v4807_v62 = vpop.f32.mrf.mxu0 }
 0x13f   : > { %v4808_v0 = vadd.f32 %v4807_v62, %v4806_v55  ;;  %1351 = vmatpush1.bf16.msra.mxu1 %v897_v59  ;;  %v5208_v55 = vld [vmem:[%s6778_s2 + $0x94] ss:$8 sps:$4 sm:$0xff]   ;;  %v5211_v59 = vld [vmem:[%s6778_s2 + $0xa4] ss:$8 sps:$4 sm:$0xff]  }
 0x140   : > { %v4809_v8 = vpop.f32.mrf.mxu0  ;;  %1352 = vmatprep.subr.bf16.mxu1 %v6789_v48  ;;  %v5214_v62 = vld [vmem:[%s6778_s2 + $0xb4] ss:$8 sps:$4 sm:$0xff]  }
 0x142   : > { %v4810_v4 = vpop.f32.mrf.mxu0 }
 0x143   : > { %1353 = vmatpush1.bf16.msra.mxu1 %v896_v6  ;;  %v4811_v33 = vadd.f32 %v4810_v4, %v4809_v8  ;;  %v5217_v8 = vld [vmem:[%s6778_s2 + $0xc4] ss:$8 sps:$4 sm:$0xff]   ;;  %v5219_v6 = vld [vmem:[%s6778_s2 + $0xc0] ss:$8 sps:$4 sm:$0xff]   ;;  %v5220_v4 = vld [vmem:[%s6778_s2 + $0xd4] ss:$8 sps:$4 sm:$0xff]  }
 0x144   : > { %v4812_v5 = vpop.f32.mrf.mxu0  ;;  %1354 = vmatprep.subr.bf16.mxu1 %v6789_v48 }
 0x145   : > { %v904_v35 = vpack.c.bf16 %v4811_v33, %v4808_v0  ;;  %v5216_v0 = vld [vmem:[%s6778_s2 + $0xb0] ss:$8 sps:$4 sm:$0xff]   ;;  %v5262_v33 = vld [vmem:[%s6778_s2 + $0x1b4] ss:$8 sps:$4 sm:$0xff]  }
 0x146   : > { %v4813_v7 = vpop.f32.mrf.mxu0 }
 0x147   : > { %1355 = vmatpush1.bf16.msra.mxu1 %v895_v63  ;;  %v4814_v31 = vadd.f32 %v4813_v7, %v4812_v5  ;;  %v5222_v5 = vld [vmem:[%s6778_s2 + $0xd0] ss:$8 sps:$4 sm:$0xff]   ;;  %v5223_v7 = vld [vmem:[%s6778_s2 + $0xe4] ss:$8 sps:$4 sm:$0xff]  }
 0x148   : > { %v4815_v2 = vpop.f32.mrf.mxu0  ;;  %1356 = vmatprep.subr.bf16.mxu1 %v6789_v48 }
 0x14a   : > { %v4816_v3 = vpop.f32.mrf.mxu0 }
 0x14b   : > { %1357 = vmatpush1.bf16.msra.mxu1 %v894_v56  ;;  %v4817_v29 = vadd.f32 %v4816_v3, %v4815_v2  ;;  %v5225_v2 = vld [vmem:[%s6778_s2 + $0xe0] ss:$8 sps:$4 sm:$0xff]   ;;  %v5226_v3 = vld [vmem:[%s6778_s2 + $0xf4] ss:$8 sps:$4 sm:$0xff]  }
 0x14c   : > { %v4818_v9 = vpop.f32.mrf.mxu0  ;;  %1358 = vmatprep.subr.bf16.mxu1 %v6789_v48 }
 0x14d   : > { %v905_v34 = vpack.c.bf16 %v4817_v29, %v4814_v31  ;;  %v5261_v31 = vld [vmem:[%s6778_s2 + $0x1a0] ss:$8 sps:$4 sm:$0xff]  }
 0x14e   : > { %v4819_v1 = vpop.f32.mrf.mxu0 }
 0x14f   : > { %v4820_v28 = vadd.f32 %v4819_v1, %v4818_v9  ;;  %v5228_v9 = vld [vmem:[%s6778_s2 + $0xf0] ss:$8 sps:$4 sm:$0xff]   ;;  %v5229_v1 = vld [vmem:[%s6778_s2 + $0x104] ss:$8 sps:$4 sm:$0xff]  }
 0x150   : > { %v4821_v10 = vpop.f32.mrf.mxu0 }
 0x152   : > { %v4822_v11 = vpop.f32.mrf.mxu0 }
 0x153   : > { %v4823_v26 = vadd.f32 %v4822_v11, %v4821_v10  ;;  %v5231_v10 = vld [vmem:[%s6778_s2 + $0x100] ss:$8 sps:$4 sm:$0xff]   ;;  %v5232_v11 = vld [vmem:[%s6778_s2 + $0x114] ss:$8 sps:$4 sm:$0xff]  }
 0x154   : > { %v4824_v12 = vpop.f32.mrf.mxu0 }
 0x155   : > { %v906_v30 = vpack.c.bf16 %v4823_v26, %v4820_v28  ;;  %v5259_v26 = vld [vmem:[%s6778_s2 + $0x1a4] ss:$8 sps:$4 sm:$0xff]  }
 0x156   : > { %v4825_v13 = vpop.f32.mrf.mxu0 }
 0x157   : > { %v4826_v25 = vadd.f32 %v4825_v13, %v4824_v12  ;;  %v5234_v12 = vld [vmem:[%s6778_s2 + $0x110] ss:$8 sps:$4 sm:$0xff]   ;;  %v5235_v13 = vld [vmem:[%s6778_s2 + $0x124] ss:$8 sps:$4 sm:$0xff]  }
 0x158   : > { %v4827_v14 = vpop.f32.mrf.mxu0 }
 0x15a   : > { %v4828_v15 = vpop.f32.mrf.mxu0 }
 0x15b   : > { %v4829_v23 = vadd.f32 %v4828_v15, %v4827_v14  ;;  %v5237_v14 = vld [vmem:[%s6778_s2 + $0x120] ss:$8 sps:$4 sm:$0xff]   ;;  %v5238_v15 = vld [vmem:[%s6778_s2 + $0x134] ss:$8 sps:$4 sm:$0xff]  }
 0x15c   : > { %v4830_v58 = vpop.f32.mrf.mxu0 }
 0x15d   : > { %v907_v27 = vpack.c.bf16 %v4829_v23, %v4826_v25  ;;  %v5258_v25 = vld [vmem:[%s6778_s2 + $0x190] ss:$8 sps:$4 sm:$0xff]  }
 0x15e   : > { %v4831_v61 = vpop.f32.mrf.mxu0 }
 0x15f   : > { %v4832_v22 = vadd.f32 %v4831_v61, %v4830_v58  ;;  %v5240_v58 = vld [vmem:[%s6778_s2 + $0x130] ss:$8 sps:$4 sm:$0xff]   ;;  %v5241_v61 = vld [vmem:[%s6778_s2 + $0x144] ss:$8 sps:$4 sm:$0xff]  }
 0x160   : > { %v4833_v63 = vpop.f32.mrf.mxu0 }
 0x162   : > { %v4834_v16 = vpop.f32.mrf.mxu0 }
 0x163   : > { %v4835_v56 = vadd.f32 %v4834_v16, %v4833_v63  ;;  %v5243_v63 = vld [vmem:[%s6778_s2 + $0x140] ss:$8 sps:$4 sm:$0xff]   ;;  %v5244_v16 = vld [vmem:[%s6778_s2 + $0x154] ss:$8 sps:$4 sm:$0xff]  }
 0x164   : > { %v4836_v17 = vpop.f32.mrf.mxu0 }
 0x165   : > { %v908_v24 = vpack.c.bf16 %v4835_v56, %v4832_v22  ;;  %v5255_v56 = vld [vmem:[%s6778_s2 + $0x180] ss:$8 sps:$4 sm:$0xff]  }
 0x166   : > { %v4837_v18 = vpop.f32.mrf.mxu0 }
 0x167   : > { %v4838_v51 = vadd.f32 %v4837_v18, %v4836_v17  ;;  %v5246_v17 = vld [vmem:[%s6778_s2 + $0x150] ss:$8 sps:$4 sm:$0xff]   ;;  %v5247_v18 = vld [vmem:[%s6778_s2 + $0x164] ss:$8 sps:$4 sm:$0xff]  }
 0x168   : > { %v4839_v19 = vpop.f32.mrf.mxu0 }
 0x16a   : > { %v4840_v20 = vpop.f32.mrf.mxu0 }
 0x16b   : > { %v4841_v54 = vadd.f32 %v4840_v20, %v4839_v19  ;;  %v5249_v19 = vld [vmem:[%s6778_s2 + $0x160] ss:$8 sps:$4 sm:$0xff]   ;;  %v5250_v20 = vld [vmem:[%s6778_s2 + $0x174] ss:$8 sps:$4 sm:$0xff]  }
 0x16d   : > { %v909_v21 = vpack.c.bf16 %v4841_v54, %v4838_v51  ;;  %v5252_v51 = vld [vmem:[%s6778_s2 + $0x170] ss:$8 sps:$4 sm:$0xff]   ;;  %v5253_v54 = vld [vmem:[%s6778_s2 + $0x184] ss:$8 sps:$4 sm:$0xff]  }
 0x16f   : > { %1359 = vmatpush2.bf16.msra.mxu1 %v909_v21  ;;  %v5256_v21 = vld [vmem:[%s6778_s2 + $0x194] ss:$8 sps:$4 sm:$0xff]  }
 0x170   : > { %1360 = vmatprep.subr.bf16.mxu1 %v6789_v48 }
 0x173   : > { %1361 = vmatpush2.bf16.msra.mxu1 %v908_v24 }
 0x174   : > { %1362 = vmatprep.subr.bf16.mxu1 %v6789_v48 }
 0x177   : > { %1363 = vmatpush2.bf16.msra.mxu1 %v907_v27 }
 0x178   : > { %1364 = vmatprep.subr.bf16.mxu1 %v6789_v48 }
 0x17b   : > { %1365 = vmatpush2.bf16.msra.mxu1 %v906_v30 }
 0x17c   : > { %1366 = vmatprep.subr.bf16.mxu1 %v6789_v48 }
 0x17f   : > { %1367 = vmatpush2.bf16.msra.mxu1 %v905_v34 }
 0x180   : > { %1368 = vmatprep.subr.bf16.mxu1 %v6789_v48 }
 0x183   : > { %1369 = vmatpush2.bf16.msra.mxu1 %v904_v35 }
 0x184   : > { %1370 = vmatprep.subr.bf16.mxu1 %v6789_v48 }
 0x187   : > { %1371 = vmatpush2.bf16.msra.mxu1 %v903_v60  ;;  %v5213_v60 = vld [vmem:[%s6778_s2 + $0xa0] ss:$8 sps:$4 sm:$0xff]  }
 0x188   : > { %1372 = vmatprep.subr.bf16.mxu1 %v6789_v48 }
 0x18b   : > { %1373 = vmatpush2.bf16.msra.mxu1 %v902_v42  ;;  %v5193_v42 = vld [vmem:[%s6778_s2 + $0x44] ss:$8 sps:$4 sm:$0xff]  }
 0x18e   : > { %1375 = vmatmul.mubr.bf16.vlgmr.msra.gmra.mxu1 %v5181_v36 }
 0x18f   : > { %1382 = vmatprep.mubr.bf16.mxu1 %v5184_v37 }
 0x196   : > { %1383 = vmatmul.mubr.bf16.gmra.mxu1 %v5186_v39  ;;  %v5264_v39 = vld [vmem:[%s6778_s2 + $0x1b0] ss:$8 sps:$4 sm:$0xff]  }
 0x197   : > { %1390 = vmatprep.mubr.bf16.mxu1 %v5187_v40  ;;  %v5267_v40 = vld [vmem:[%s6778_s2 + $0x1c4] ss:$8 sps:$4 sm:$0xff]  }
 0x19e   : > { %1391 = vmatmul.mubr.bf16.gmra.mxu1 %v5189_v32 }
 0x19f   : > { %1398 = vmatprep.mubr.bf16.mxu1 %v5190_v38 }
 0x1a6   : > { %1399 = vmatmul.mubr.bf16.gmra.mxu1 %v5192_v41 }
 0x1a7   : > { %1406 = vmatprep.mubr.bf16.mxu1 %v5193_v42 }
 0x1ae   : > { %1407 = vmatmul.mubr.bf16.gmra.mxu1 %v5195_v43  ;;  %v5265_v43 = vld [vmem:[%s6778_s2 + $0x1c0] ss:$8 sps:$4 sm:$0xff]  }
 0x1af   : > { %1414 = vmatprep.mubr.bf16.mxu1 %v5196_v44  ;;  %v5270_v44 = vld [vmem:[%s6778_s2 + $0x1d4] ss:$8 sps:$4 sm:$0xff]  }
 0x1b6   : > { %1415 = vmatmul.mubr.bf16.gmra.mxu1 %v5198_v45 }
 0x1b7   : > { %1422 = vmatprep.mubr.bf16.mxu1 %v5199_v46 }
 0x1be   : > { %1423 = vmatmul.mubr.bf16.gmra.mxu1 %v5201_v47 }
 0x1bf   : > { %1430 = vmatprep.mubr.bf16.mxu1 %v5202_v49 }
 0x1c6   : > { %1431 = vmatmul.mubr.bf16.gmra.mxu1 %v5204_v50 }
 0x1c7   : > { %1438 = vmatprep.mubr.bf16.mxu1 %v5205_v52  ;;  %v5268_v52 = vld [vmem:[%s6778_s2 + $0x1d0] ss:$8 sps:$4 sm:$0xff]  }
 0x1ce   : > { %1439 = vmatmul.mubr.bf16.gmra.mxu1 %v5207_v53 }
 0x1cf   : > { %1446 = vmatprep.mubr.bf16.mxu1 %v5208_v55  ;;  %v5273_v55 = vld [vmem:[%s6778_s2 + $0x1e4] ss:$8 sps:$4 sm:$0xff]  }
 0x1d6   : > { %1447 = vmatmul.mubr.bf16.gmra.mxu1 %v5210_v57 }
 0x1d7   : > { %1454 = vmatprep.mubr.bf16.mxu1 %v5211_v59 }
 0x1de   : > { %1455 = vmatmul.mubr.bf16.gmra.mxu1 %v5213_v60 }
 0x1df   : > { %1462 = vmatprep.mubr.bf16.mxu1 %v5214_v62 }
 0x1e6   : > { %1463 = vmatmul.mubr.bf16.gmra.mxu1 %v5216_v0 }
 0x1e7   : > { %1470 = vmatprep.mubr.bf16.mxu1 %v5217_v8  ;;  %v5271_v8 = vld [vmem:[%s6778_s2 + $0x1e0] ss:$8 sps:$4 sm:$0xff]  }
 0x1ee   : > { %1471 = vmatmul.mubr.bf16.gmra.mxu1 %v5219_v6 }
 0x1ef   : > { %1478 = vmatprep.mubr.bf16.mxu1 %v5220_v4  ;;  %v5276_v4 = vld [vmem:[%s6778_s2 + $0x1f4] ss:$8 sps:$4 sm:$0xff]  }
 0x1f6   : > { %1479 = vmatmul.mubr.bf16.gmra.mxu1 %v5222_v5 }
 0x1f7   : > { %1486 = vmatprep.mubr.bf16.mxu1 %v5223_v7 }
 0x1fe   : > { %1487 = vmatmul.mubr.bf16.gmra.mxu1 %v5225_v2 }
 0x1ff   : > { %1494 = vmatprep.mubr.bf16.mxu1 %v5226_v3 }
 0x206   : > { %1495 = vmatmul.mubr.bf16.gmra.mxu1 %v5228_v9 }
 0x207   : > { %1502 = vmatprep.mubr.bf16.mxu1 %v5229_v1  ;;  %v5274_v1 = vld [vmem:[%s6778_s2 + $0x1f0] ss:$8 sps:$4 sm:$0xff]  }
 0x20e   : > { %1503 = vmatmul.mubr.bf16.gmra.mxu1 %v5231_v10 }
 0x20f   : > { %1510 = vmatprep.mubr.bf16.mxu1 %v5232_v11  ;;  %v5279_v11 = vld [vmem:[%s6778_s2 + $0x204] ss:$8 sps:$4 sm:$0xff]  }
 0x216   : > { %1511 = vmatmul.mubr.bf16.gmra.mxu1 %v5234_v12 }
 0x217   : > { %1518 = vmatprep.mubr.bf16.mxu1 %v5235_v13 }
 0x21e   : > { %1519 = vmatmul.mubr.bf16.gmra.mxu1 %v5237_v14 }
 0x21f   : > { %1526 = vmatprep.mubr.bf16.mxu1 %v5238_v15 }
 0x226   : > { %1527 = vmatmul.mubr.bf16.gmra.mxu1 %v5240_v58 }
 0x227   : > { %1534 = vmatprep.mubr.bf16.mxu1 %v5241_v61  ;;  %v5277_v61 = vld [vmem:[%s6778_s2 + $0x200] ss:$8 sps:$4 sm:$0xff]  }
 0x22e   : > { %1535 = vmatmul.mubr.bf16.gmra.mxu1 %v5243_v63 }
 0x22f   : > { %1542 = vmatprep.mubr.bf16.mxu1 %v5244_v16  ;;  %v5282_v16 = vld [vmem:[%s6778_s2 + $0x214] ss:$8 sps:$4 sm:$0xff]  }
 0x236   : > { %1543 = vmatmul.mubr.bf16.gmra.mxu1 %v5246_v17 }
 0x237   : > { %1550 = vmatprep.mubr.bf16.mxu1 %v5247_v18 }
 0x23e   : > { %1551 = vmatmul.mubr.bf16.gmra.mxu1 %v5249_v19 }
 0x23f   : > { %1558 = vmatprep.mubr.bf16.mxu1 %v5250_v20 }
 0x246   : > { %1559 = vmatmul.mubr.bf16.gmra.mxu1 %v5252_v51 }
 0x247   : > { %1566 = vmatprep.mubr.bf16.mxu1 %v5253_v54  ;;  %v5280_v54 = vld [vmem:[%s6778_s2 + $0x210] ss:$8 sps:$4 sm:$0xff]  }
 0x24e   : > { %v5855_v22 = vpop.f32.mrf.mxu1  ;;  %1567 = vmatmul.mubr.bf16.gmra.mxu1 %v5255_v56 }
 0x24f   : > { %1574 = vmatprep.mubr.bf16.mxu1 %v5256_v21  ;;  %v5285_v21 = vld [vmem:[%s6778_s2 + $0x224] ss:$8 sps:$4 sm:$0xff]  }
 0x250   : > { %v1378_v23 = vpop.f32.mrf.mxu1 }
 0x252   : > { %v5857_v24 = vpop.f32.mrf.mxu1 }
 0x254   : > { %v1381_v27 = vpop.f32.mrf.mxu1 }
 0x255   : > { %v5283_v27 = vld [vmem:[%s6778_s2 + $0x220] ss:$8 sps:$4 sm:$0xff]  }
 0x256   : > { %v5865_v28 = vpop.f32.mrf.mxu1  ;;  %1575 = vmatmul.mubr.bf16.gmra.mxu1 %v5258_v25 }
 0x257   : > { %1582 = vmatprep.mubr.bf16.mxu1 %v5259_v26 }
 0x258   : > { %v1386_v29 = vpop.f32.mrf.mxu1 }
 0x259   : > { %v5288_v29 = vld [vmem:[%s6778_s2 + $0x234] ss:$8 sps:$4 sm:$0xff]  }
 0x25a   : > { %v5867_v30 = vpop.f32.mrf.mxu1 }
 0x25c   : > { %v1389_v34 = vpop.f32.mrf.mxu1 }
 0x25e   : > { %v5875_v35 = vpop.f32.mrf.mxu1  ;;  %1583 = vmatmul.mubr.bf16.gmra.mxu1 %v5261_v31 }
 0x25f   : > { %1590 = vmatprep.mubr.bf16.mxu1 %v5262_v33 }
 0x260   : > { %v1394_v36 = vpop.f32.mrf.mxu1 }
 0x261   : > { %v5286_v36 = vld [vmem:[%s6778_s2 + $0x230] ss:$8 sps:$4 sm:$0xff]  }
 0x262   : > { %v5877_v37 = vpop.f32.mrf.mxu1 }
 0x264   : > { %v1397_v32 = vpop.f32.mrf.mxu1 }
 0x266   : > { %v5885_v38 = vpop.f32.mrf.mxu1  ;;  %1591 = vmatmul.mubr.bf16.gmra.mxu1 %v5264_v39 }
 0x267   : > { %1598 = vmatprep.mubr.bf16.mxu1 %v5267_v40 }
 0x268   : > { %v1402_v41 = vpop.f32.mrf.mxu1 }
 0x26a   : > { %v5887_v42 = vpop.f32.mrf.mxu1 }
 0x26c   : > { %v1405_v45 = vpop.f32.mrf.mxu1 }
 0x26e   : > { %v1408_v46 = vpop.f32.mrf.mxu1  ;;  %1599 = vmatmul.mubr.bf16.gmra.mxu1 %v5265_v43 }
 0x26f   : > { %v1663_v47 = vmax.f32 %v5855_v22, %v1408_v46  ;;  %1606 = vmatprep.mubr.bf16.mxu1 %v5270_v44 }
 0x270   : > { %v1410_v49 = vpop.f32.mrf.mxu1 }
 0x272   : > { %v1411_v50 = vpop.f32.mrf.mxu1 }
 0x273   : > { %v1664_v53 = vmax.f32 %v5857_v24, %v1411_v50 }
 0x274   : > { %v1413_v57 = vpop.f32.mrf.mxu1 }
 0x276   : > { %v1416_v59 = vpop.f32.mrf.mxu1  ;;  %1607 = vmatmul.mubr.bf16.gmra.mxu1 %v5268_v52 }
 0x277   : > { %v1665_v60 = vmax.f32 %v5865_v28, %v1416_v59  ;;  %1614 = vmatprep.mubr.bf16.mxu1 %v5273_v55 }
 0x278   : > { %v1418_v62 = vpop.f32.mrf.mxu1 }
 0x27a   : > { %v1419_v0 = vpop.f32.mrf.mxu1 }
 0x27b   : > { %v1666_v6 = vmax.f32 %v5867_v30, %v1419_v0 }
 0x27c   : > { %v1421_v5 = vpop.f32.mrf.mxu1 }
 0x27e   : > { %v1424_v7 = vpop.f32.mrf.mxu1  ;;  %1615 = vmatmul.mubr.bf16.gmra.mxu1 %v5271_v8 }
 0x27f   : > { %v1667_v2 = vmax.f32 %v5875_v35, %v1424_v7  ;;  %1622 = vmatprep.mubr.bf16.mxu1 %v5276_v4 }
 0x280   : > { %v1426_v3 = vpop.f32.mrf.mxu1 }
 0x282   : > { %v1427_v9 = vpop.f32.mrf.mxu1 }
 0x283   : > { %v1668_v10 = vmax.f32 %v5877_v37, %v1427_v9 }
 0x284   : > { %v1429_v12 = vpop.f32.mrf.mxu1 }
 0x285   : > { %v5289_v12 = vld [vmem:[%s6781_s5 + $0x30] ss:$8 sps:$4 sm:$0xff]  }
 0x286   : > { %v1432_v13 = vpop.f32.mrf.mxu1  ;;  %1623 = vmatmul.mubr.bf16.gmra.mxu1 %v5274_v1 }
 0x287   : > { %v1669_v14 = vmax.f32 %v5885_v38, %v1432_v13  ;;  %1630 = vmatprep.mubr.bf16.mxu1 %v5279_v11 }
 0x288   : > { %v1434_v15 = vpop.f32.mrf.mxu1 }
 0x289   : > { %v5294_v15 = vld [vmem:[%s6781_s5 + $0x24] ss:$8 sps:$4 sm:$0xff]  }
 0x28a   : > { %v1435_v58 = vpop.f32.mrf.mxu1 }
 0x28b   : > { %v1670_v63 = vmax.f32 %v5887_v42, %v1435_v58 }
 0x28c   : > { %v1437_v17 = vpop.f32.mrf.mxu1 }
 0x28d   : > { %v5297_v17 = vld [vmem:[%s6781_s5 + $0x14] ss:$8 sps:$4 sm:$0xff]  }
 0x28e   : > { %v1440_v18 = vpop.f32.mrf.mxu1  ;;  %1631 = vmatmul.mubr.bf16.gmra.mxu1 %v5277_v61  ;;  %v5292_v61 = vld [vmem:[%s6781_s5 + $0x20] ss:$8 sps:$4 sm:$0xff]  }
 0x28f   : > { %v5927_v19 = vmax.f32 %v1663_v47, %v1440_v18  ;;  %1638 = vmatprep.mubr.bf16.mxu1 %v5282_v16 }
 0x290   : > { %v1442_v20 = vpop.f32.mrf.mxu1 }
 0x292   : > { %v1443_v51 = vpop.f32.mrf.mxu1 }
 0x293   : > { %v5932_v56 = vmax.f32 %v1664_v53, %v1443_v51 }
 0x294   : > { %v1445_v22 = vpop.f32.mrf.mxu1 }
 0x296   : > { %v1448_v23 = vpop.f32.mrf.mxu1  ;;  %1639 = vmatmul.mubr.bf16.gmra.mxu1 %v5280_v54  ;;  %v5300_v54 = vld [vmem:[%s6781_s5 + $0x4] ss:$8 sps:$4 sm:$0xff]  }
 0x297   : > { %v5937_v24 = vmax.f32 %v1665_v60, %v1448_v23  ;;  %1646 = vmatprep.mubr.bf16.mxu1 %v5285_v21  ;;  %v5298_v21 = vld [vmem:[%s6781_s5] ss:$8 sps:$4 sm:$0xff]  }
 0x298   : > { %v1450_v25 = vpop.f32.mrf.mxu1 }
 0x29a   : > { %v1451_v26 = vpop.f32.mrf.mxu1 }
 0x29b   : > { %v5942_v28 = vmax.f32 %v1666_v6, %v1451_v26 }
 0x29c   : > { %v1453_v30 = vpop.f32.mrf.mxu1 }
 0x29e   : > { %v1456_v31 = vpop.f32.mrf.mxu1  ;;  %1647 = vmatmul.mubr.bf16.gmra.mxu1 %v5283_v27 }
 0x29f   : > { %v5947_v33 = vmax.f32 %v1667_v2, %v1456_v31  ;;  %1654 = vmatprep.mubr.bf16.mxu1 %v5288_v29 }
 0x2a0   : > { %v1458_v34 = vpop.f32.mrf.mxu1 }
 0x2a2   : > { %v1459_v35 = vpop.f32.mrf.mxu1 }
 0x2a3   : > { %v5952_v37 = vmax.f32 %v1668_v10, %v1459_v35  ;;  %v5291_v10 = vld [vmem:[%s6781_s5 + $0x34] ss:$8 sps:$4 sm:$0xff]  }
 0x2a4   : > { %v1461_v39 = vpop.f32.mrf.mxu1  ;;  %1838 = vmatprep.subr.bf16.mxu0 %v5291_v10 }
 0x2a5   : > { %1839 = vmatpush1.bf16.msra.mxu0 %v5289_v12 }
 0x2a6   : > { %v1464_v40 = vpop.f32.mrf.mxu1  ;;  %1655 = vmatmul.mubr.bf16.gmra.mxu1 %v5286_v36  ;;  %1840 = vmatprep.subr.bf16.mxu0 %v5294_v15 }
 0x2a7   : > { %v5954_v32 = vmax.f32 %v1669_v14, %v1464_v40 }
 0x2a8   : > { %v1466_v38 = vpop.f32.mrf.mxu1 }
 0x2a9   : > { %1841 = vmatpush1.bf16.msra.mxu0 %v5292_v61 }
 0x2aa   : > { %v1467_v41 = vpop.f32.mrf.mxu1  ;;  %1842 = vmatprep.subr.bf16.mxu0 %v5297_v17 }
 0x2ab   : > { %v5956_v42 = vmax.f32 %v1670_v63, %v1467_v41 }
 0x2ac   : > { %v1469_v43 = vpop.f32.mrf.mxu1 }
 0x2ae   : > { %v1472_v44 = vpop.f32.mrf.mxu1 }
 0x2af   : > { %v1679_v45 = vmax.f32 %v5927_v19, %v1472_v44  ;;  %v5295_v19 = vld [vmem:[%s6781_s5 + $0x10] ss:$8 sps:$4 sm:$0xff]  }
 0x2b0   : > { %v1474_v46 = vpop.f32.mrf.mxu1  ;;  %1843 = vmatpush1.bf16.msra.mxu0 %v5295_v19 }
 0x2b1   : > { %1844 = vmatprep.subr.bf16.mxu0 %v5300_v54 }
 0x2b2   : > { %v1475_v47 = vpop.f32.mrf.mxu1 }
 0x2b3   : > { %v1680_v49 = vmax.f32 %v5932_v56, %v1475_v47 }
 0x2b4   : > { %v1477_v50 = vpop.f32.mrf.mxu1  ;;  %1845 = vmatpush1.bf16.msra.mxu0 %v5298_v21 }
 0x2b6   : > { %v1480_v52 = vpop.f32.mrf.mxu1 }
 0x2b7   : > { %v1681_v53 = vmax.f32 %v5937_v24, %v1480_v52 }
 0x2b8   : > { %v1482_v55 = vpop.f32.mrf.mxu1 }
 0x2ba   : > { %v1483_v57 = vpop.f32.mrf.mxu1 }
 0x2bb   : > { %v1682_v59 = vmax.f32 %v5942_v28, %v1483_v57 }
 0x2bc   : > { %v1485_v60 = vpop.f32.mrf.mxu1 }
 0x2be   : > { %v1488_v62 = vpop.f32.mrf.mxu1 }
 0x2bf   : > { %v1683_v0 = vmax.f32 %v5947_v33, %v1488_v62 }
 0x2c0   : > { %v1490_v8 = vpop.f32.mrf.mxu1 }
 0x2c2   : > { %v1491_v6 = vpop.f32.mrf.mxu1 }
 0x2c3   : > { %v1684_v4 = vmax.f32 %v5952_v37, %v1491_v6  ;;  %v6003_v37 = vld [vmem:[%s6782_s6 + $0x18] sm:$0xff]  }
 0x2c4   : > { %v1493_v5 = vpop.f32.mrf.mxu1  ;;  %4930 = vmatprep.subr.bf16.mxu0 %v6003_v37 }
 0x2c6   : > { %v1496_v7 = vpop.f32.mrf.mxu1 }
 0x2c7   : > { %v1685_v2 = vmax.f32 %v5954_v32, %v1496_v7 }
 0x2c8   : > { %v1498_v3 = vpop.f32.mrf.mxu1 }
 0x2ca   : > { %v1499_v9 = vpop.f32.mrf.mxu1 }
 0x2cb   : > { %v1686_v1 = vmax.f32 %v5956_v42, %v1499_v9 }
 0x2cc   : > { %v1501_v11 = vpop.f32.mrf.mxu1 }
 0x2ce   : > { %v1504_v13 = vpop.f32.mrf.mxu1 }
 0x2cf   : > { %v5972_v14 = vmax.f32 %v1679_v45, %v1504_v13 }
 0x2d0   : > { %v1506_v58 = vpop.f32.mrf.mxu1 }
 0x2d2   : > { %v1507_v63 = vpop.f32.mrf.mxu1 }
 0x2d3   : > { %v5980_v16 = vmax.f32 %v1680_v49, %v1507_v63 }
 0x2d4   : > { %v1509_v18 = vpop.f32.mrf.mxu1 }
 0x2d6   : > { %v1512_v20 = vpop.f32.mrf.mxu1 }
 0x2d7   : > { %v1689_v51 = vmax.f32 %v1681_v53, %v1512_v20 }
 0x2d8   : > { %v1514_v56 = vpop.f32.mrf.mxu1 }
 0x2da   : > { %v1515_v22 = vpop.f32.mrf.mxu1 }
 0x2db   : > { %v5994_v23 = vmax.f32 %v1682_v59, %v1515_v22 }
 0x2dc   : > { %v1517_v24 = vpop.f32.mrf.mxu1 }
 0x2de   : > { %v1520_v25 = vpop.f32.mrf.mxu1 }
 0x2df   : > { %v1691_v26 = vmax.f32 %v1683_v0, %v1520_v25 }
 0x2e0   : > { %v1522_v27 = vpop.f32.mrf.mxu1 }
 0x2e2   : > { %v1523_v28 = vpop.f32.mrf.mxu1 }
 0x2e3   : > { %v5996_v29 = vmax.f32 %v1684_v4, %v1523_v28 }
 0x2e4   : > { %v1525_v30 = vpop.f32.mrf.mxu1 }
 0x2e6   : > { %v1528_v31 = vpop.f32.mrf.mxu1 }
 0x2e7   : > { %v1693_v33 = vmax.f32 %v1685_v2, %v1528_v31 }
 0x2e8   : > { %v1530_v34 = vpop.f32.mrf.mxu1 }
 0x2ea   : > { %v1531_v35 = vpop.f32.mrf.mxu1 }
 0x2eb   : > { %v5998_v36 = vmax.f32 %v1686_v1, %v1531_v35 }
 0x2ec   : > { %v1533_v39 = vpop.f32.mrf.mxu1 }
 0x2ee   : > { %v1536_v40 = vpop.f32.mrf.mxu1 }
 0x2ef   : > { %v1695_v32 = vmax.f32 %v5972_v14, %v1536_v40 }
 0x2f0   : > { %v1538_v38 = vpop.f32.mrf.mxu1 }
 0x2f2   : > { %v1539_v41 = vpop.f32.mrf.mxu1 }
 0x2f3   : > { %v1696_v42 = vmax.f32 %v5980_v16, %v1539_v41  ;;  %v6033_v41 = vld [vmem:[%s6780_s4] ss:$0 sm:$0xff] }
 0x2f4   : > { %v1541_v43 = vpop.f32.mrf.mxu1 }
 0x2f6   : > { %v1544_v44 = vpop.f32.mrf.mxu1 }
 0x2f7   : > { %v1697_v45 = vmax.f32 %v1689_v51, %v1544_v44 }
 0x2f8   : > { %v1546_v46 = vpop.f32.mrf.mxu1 }
 0x2fa   : > { %v6008_v47 = vpop.f32.mrf.mxu1 }
 0x2fb   : > { %v1698_v49 = vmax.f32 %v5994_v23, %v6008_v47 }
 0x2fc   : > { %v1549_v50 = vpop.f32.mrf.mxu1 }
 0x2fe   : > { %v1552_v52 = vpop.f32.mrf.mxu1 }
 0x2ff   : > { %v1699_v53 = vmax.f32 %v1691_v26, %v1552_v52  ;;  %v6039_v52 = vld [vmem:[%s6780_s4 + $0x1] ss:$0 sm:$0xff] }
 0x300   : > { %v1554_v55 = vpop.f32.mrf.mxu1 }
 0x302   : > { %v6012_v57 = vpop.f32.mrf.mxu1 }
 0x303   : > { %v1700_v59 = vmax.f32 %v5996_v29, %v6012_v57  ;;  %v5304_v29 = vld [vmem:[%s6782_s6] sm:$0xff]  }
 0x304   : > { %v1557_v60 = vpop.f32.mrf.mxu1 }
 0x306   : > { %v1560_v62 = vpop.f32.mrf.mxu1 }
 0x307   : > { %v1701_v0 = vmax.f32 %v1693_v33, %v1560_v62 }
 0x308   : > { %v1562_v8 = vpop.f32.mrf.mxu1 }
 0x30a   : > { %v6016_v6 = vpop.f32.mrf.mxu1 }
 0x30b   : > { %v1702_v4 = vmax.f32 %v5998_v36, %v6016_v6 }
 0x30c   : > { %v1565_v5 = vpop.f32.mrf.mxu1 }
 0x30e   : > { %v1568_v7 = vpop.f32.mrf.mxu1 }
 0x30f   : > { %v1703_v2 = vmax.f32 %v1695_v32, %v1568_v7 }
 0x310   : > { %v1570_v3 = vpop.f32.mrf.mxu1 }
 0x312   : > { %v1571_v9 = vpop.f32.mrf.mxu1 }
 0x313   : > { %v1704_v43 = vmax.f32 %v1696_v42, %v1571_v9 }
 0x314   : > { %v1573_v1 = vpop.f32.mrf.mxu1 }
 0x316   : > { %v1576_v10 = vpop.f32.mrf.mxu1 }
 0x317   : > { %v1705_v11 = vmax.f32 %v1697_v45, %v1576_v10 }
 0x318   : > { %v1578_v12 = vpop.f32.mrf.mxu1 }
 0x31a   : > { %v1579_v13 = vpop.f32.mrf.mxu1 }
 0x31b   : > { %v1706_v42 = vmax.f32 %v1698_v49, %v1579_v13 }
 0x31c   : > { %v1581_v14 = vpop.f32.mrf.mxu1 }
 0x31e   : > { %v1584_v15 = vpop.f32.mrf.mxu1 }
 0x31f   : > { %v6020_v58 = vmax.f32 %v1699_v53, %v1584_v15 }
 0x320   : > { %v1586_v61 = vpop.f32.mrf.mxu1 }
 0x321   : > { %v5302_v61 = vld [vmem:[%s6782_s6 + $0x10] sm:$0xff]  }
 0x322   : > { %v1587_v63 = vpop.f32.mrf.mxu1 }
 0x324   : > { %v1589_v16 = vpop.f32.mrf.mxu1 }
 0x326   : > { %v1592_v17 = vpop.f32.mrf.mxu1 }
 0x327   : > { %v6022_v18 = vmax.f32 %v1701_v0, %v1592_v17  ;;  %v1708_v17 = vmax.f32 %v1700_v59, %v1587_v63 }
 0x328   : > { %v1594_v19 = vpop.f32.mrf.mxu1 }
 0x32a   : > { %v6024_v20 = vpop.f32.mrf.mxu1 }
 0x32c   : > { %v1597_v51 = vpop.f32.mrf.mxu1 }
 0x32e   : > { %v1600_v54 = vpop.f32.mrf.mxu1 }
 0x32f   : > { %v1711_v32 = vmax.f32 %v1703_v2, %v1600_v54 }
 0x330   : > { %v1602_v56 = vpop.f32.mrf.mxu1 }
 0x332   : > { %v1603_v21 = vpop.f32.mrf.mxu1 }
 0x333   : > { %v1712_v46 = vmax.f32 %v1704_v43, %v1603_v21 }
 0x334   : > { %v1605_v22 = vpop.f32.mrf.mxu1 }
 0x336   : > { %v1608_v24 = vpop.f32.mrf.mxu1 }
 0x337   : > { %v1713_v62 = vmax.f32 %v1705_v11, %v1608_v24 }
 0x338   : > { %v1610_v25 = vpop.f32.mrf.mxu1 }
 0x33a   : > { %v1611_v26 = vpop.f32.mrf.mxu1 }
 0x33b   : > { %v1714_v9 = vmax.f32 %v1706_v42, %v1611_v26 }
 0x33c   : > { %v1613_v27 = vpop.f32.mrf.mxu1 }
 0x33e   : > { %v1616_v28 = vpop.f32.mrf.mxu1 }
 0x33f   : > { %v1715_v23 = vmax.f32 %v6020_v58, %v1616_v28  ;;  %v5303_v58 = vld [vmem:[%s6782_s6 + $0x8] sm:$0xff]  }
 0x340   : > { %v1618_v30 = vpop.f32.mrf.mxu1 }
 0x341   : > { %v1710_v30 = vmax.f32 %v1702_v4, %v6024_v20 }
 0x342   : > { %v1619_v31 = vpop.f32.mrf.mxu1 }
 0x343   : > { %v1716_v56 = vmax.f32 %v1708_v17, %v1619_v31 }
 0x344   : > { %v1621_v33 = vpop.f32.mrf.mxu1 }
 0x346   : > { %v6026_v34 = vpop.f32.mrf.mxu1 }
 0x347   : > { %v1717_v59 = vmax.f32 %v6022_v18, %v6026_v34 }
 0x348   : > { %v1626_v35 = vpop.f32.mrf.mxu1 }
 0x34a   : > { %v6028_v39 = vpop.f32.mrf.mxu1 }
 0x34b   : > { %v1718_v34 = vmax.f32 %v1710_v30, %v6028_v39  ;;  %v5322_v30 = vld [vmem:[%s6783_s7 + $0x5c] ss:$20 sps:$4 sm:$0xff]  }
 0x34c   : > { %v1629_v40 = vpop.f32.mrf.mxu1 }
 0x34e   : > { %v1632_v38 = vpop.f32.mrf.mxu1 }
 0x34f   : > { %v1719_v44 = vmax.f32 %v1711_v32, %v1632_v38 }
 0x350   : > { %v1634_v45 = vpop.f32.mrf.mxu1 }
 0x351   : > { %v1737_v50 = vmul.f32 %v6033_v41, %v1719_v44 }
 0x352   : > { %v1635_v53 = vpop.f32.mrf.mxu1 }
 0x353   : > { %v1720_v55 = vmax.f32 %v1712_v46, %v1635_v53  ;;  %v1749_v0 = vadd.f32 %v6039_v52, %v1737_v50  ;;  %v5305_v50 = vld [vmem:[%s6783_s7 + $0x78] ss:$20 sps:$4 sm:$0xff]   ;;  %v5308_v53 = vld [vmem:[%s6783_s7 + $0x50] ss:$20 sps:$4 sm:$0xff]  }
 0x354   : > { %v1637_v60 = vpop.f32.mrf.mxu1 }
 0x355   : > { %v1738_v8 = vmul.f32 %v6033_v41, %v1720_v55  ;;  %v1757_v1 = vmax.f32 %v1749_v0, 0.0  ;;  %v5313_v55 = vld [vmem:[%s6783_s7 + $0x2c] ss:$20 sps:$4 sm:$0xff]   ;;  %v5311_v60 = vld [vmem:[%s6783_s7 + $0x28] ss:$20 sps:$4 sm:$0xff]  }
 0x356   : > { %v1640_v5 = vpop.f32.mrf.mxu1  ;;  %v5314_v0 = vld [vmem:[%s6783_s7] ss:$20 sps:$4 sm:$0xff]  }
 0x357   : > { %v1750_v7 = vadd.f32 %v6039_v52, %v1738_v8  ;;  %v1721_v2 = vmax.f32 %v1713_v62, %v1640_v5  ;;  %v5316_v62 = vld [vmem:[%s6783_s7 + $0x4] ss:$20 sps:$4 sm:$0xff]  }
 0x358   : > { %v1642_v3 = vpop.f32.mrf.mxu1  ;;  %v5319_v8 = vld [vmem:[%s6783_s7 + $0x84] ss:$20 sps:$4 sm:$0xff]  }
 0x359   : > { %v1758_v10 = vmax.f32 %v1750_v7, 0.0  ;;  %v1739_v12 = vmul.f32 %v6033_v41, %v1721_v2 }
 0x35a   : > { %v1643_v14 = vpop.f32.mrf.mxu1 }
 0x35b   : > { %v1765_v11 = vpack.c.bf16 %v1758_v10, %v1757_v1  ;;  %v1722_v15 = vmax.f32 %v1714_v9, %v1643_v14  ;;  %v1751_v47 = vadd.f32 %v6039_v52, %v1739_v12 }
 0x35c   : > { %v1645_v16 = vpop.f32.mrf.mxu1 }
 0x35d   : > { %v1740_v49 = vmul.f32 %v6033_v41, %v1722_v15  ;;  %4466 = vmatmul.mubr.msk.bf16.vlgmr.msra.gmra.mxu0 %vm1817_vm0, %v1765_v11  ;;  %v1759_v21 = vmax.f32 %v1751_v47, 0.0 }
 0x35e   : > { %v1648_v13 = vpop.f32.mrf.mxu1  ;;  %1872 = vmatprep.mubr.bf16.mxu0 %v6789_v48  ;;  %4931 = vmatpush3.bf16.msra.mxu0 %v6003_v37 }
 0x35f   : > { %v1752_v19 = vadd.f32 %v6039_v52, %v1740_v49  ;;  %v1723_v51 = vmax.f32 %v1715_v23, %v1648_v13  ;;  %4932 = vmatprep.subr.bf16.mxu0 %v5302_v61  ;;  %v4478_v13 = vld [vmem:[%s6780_s4 + $0x2] ss:$0 sm:$0xff] }
 0x360   : > { %v1650_v54 = vpop.f32.mrf.mxu1 }
 0x361   : > { %v1760_v22 = vmax.f32 %v1752_v19, 0.0  ;;  %v1741_v24 = vmul.f32 %v6033_v41, %v1723_v51 }
 0x362   : > { %v1651_v25 = vpop.f32.mrf.mxu1  ;;  %4933 = vmatpush3.bf16.msra.mxu0 %v5302_v61 }
 0x363   : > { %v1766_v37 = vpack.c.bf16 %v1760_v22, %v1759_v21  ;;  %v1724_v26 = vmax.f32 %v1716_v56, %v1651_v25  ;;  %4934 = vmatprep.subr.bf16.mxu0 %v5303_v58  ;;  %v1753_v63 = vadd.f32 %v6039_v52, %v1741_v24 }
 0x364   : > { %v1653_v57 = vpop.f32.mrf.mxu1 }
 0x365   : > { %v1742_v27 = vmul.f32 %v6033_v41, %v1724_v26  ;;  %4467 = vmatmul.mubr.msk.bf16.gmra.mxu0 %vm1817_vm0, %v1766_v37  ;;  %v1761_v35 = vmax.f32 %v1753_v63, 0.0  ;;  %v5317_v63 = vld [vmem:[%s6783_s7 + $0x80] ss:$20 sps:$4 sm:$0xff]  }
 0x366   : > { %v1656_v28 = vpop.f32.mrf.mxu1  ;;  %1882 = vmatprep.mubr.bf16.mxu0 %v6789_v48  ;;  %4935 = vmatpush3.bf16.msra.mxu0 %v5303_v58  ;;  %v4479_v58 = vld [vmem:[%s6780_s4 + $0x3] ss:$0 sm:$0xff] }
 0x367   : > { %v1754_v31 = vadd.f32 %v6039_v52, %v1742_v27  ;;  %v1725_v33 = vmax.f32 %v1717_v59, %v1656_v28  ;;  %4936 = vmatprep.subr.bf16.mxu0 %v5304_v29 }
 0x368   : > { %v1658_v18 = vpop.f32.mrf.mxu1 }
 0x369   : > { %v1762_v40 = vmax.f32 %v1754_v31, 0.0  ;;  %v1743_v32 = vmul.f32 %v6033_v41, %v1725_v33  ;;  %v5320_v18 = vld [vmem:[%s6783_s7 + $0x58] ss:$20 sps:$4 sm:$0xff]  }
 0x36a   : > { %v1659_v38 = vpop.f32.mrf.mxu1  ;;  %4937 = vmatpush3.bf16.msra.mxu0 %v5304_v29 }
 0x36b   : > { %v1767_v43 = vpack.c.bf16 %v1762_v40, %v1761_v35  ;;  %v1726_v44 = vmax.f32 %v1718_v34, %v1659_v38  ;;  %v1755_v46 = vadd.f32 %v6039_v52, %v1743_v32  ;;  %v5325_v40 = vld [vmem:[%s6783_s7 + $0x34] ss:$20 sps:$4 sm:$0xff]  }
 0x36c   : > { %v1661_v45 = vpop.f32.mrf.mxu1 }
 0x36d   : > { %v1744_v36 = vmul.f32 %v6033_v41, %v1726_v44  ;;  %4468 = vmatmul.mubr.msk.bf16.gmra.mxu0 %vm1817_vm0, %v1767_v43  ;;  %v1763_v4 = vmax.f32 %v1755_v46, 0.0  ;;  %v5307_v41 = vld [vmem:[%s6783_s7 + $0x7c] ss:$20 sps:$4 sm:$0xff]   ;;  %v5328_v46 = vld [vmem:[%s6783_s7 + $0xc] ss:$20 sps:$4 sm:$0xff]  }
 0x36e   : > { %1892 = vmatprep.mubr.bf16.mxu0 %v6789_v48  ;;  %2184 = vmatprep.subr.bf16.mxu0 %v5307_v41 }
 0x36f   : > { %v1756_v6 = vadd.f32 %v6039_v52, %v1744_v36  ;;  %v5310_v52 = vld [vmem:[%s6783_s7 + $0x54] ss:$20 sps:$4 sm:$0xff]  }
 0x371   : > { %v1764_v20 = vmax.f32 %v1756_v6, 0.0  ;;  %v5326_v6 = vld [vmem:[%s6783_s7 + $0x8] ss:$20 sps:$4 sm:$0xff]  }
 0x373   : > { %v1768_v39 = vpack.c.bf16 %v1764_v20, %v1763_v4 }
 0x375   : > { %4469 = vmatmul.mubr.msk.bf16.gmra.mxu0 %vm1817_vm0, %v1768_v39 }
 0x376   : > { %4938 = vmatprep.mubr.msk.bf16.mxu0 %vm1817_vm0, %v1765_v11 }
 0x37d   : > { %4939 = vmatmul.mubr.msk.bf16.vlgmr.msra.gmra.mxu0 %vm1817_vm0, %v1766_v37 }
 0x37e   : > { %4942 = vmatprep.mubr.msk.bf16.mxu0 %vm1817_vm0, %v1767_v43  ;;  %2185 = vmatpush1.bf16.msra.mxu0 %v5305_v50  ;;  %v5323_v43 = vld [vmem:[%s6783_s7 + $0x30] ss:$20 sps:$4 sm:$0xff]  }
 0x37f   : > { %2186 = vmatprep.subr.bf16.mxu0 %v5310_v52 }
 0x382   : > { %2187 = vmatpush1.bf16.msra.mxu0 %v5308_v53 }
 0x383   : > { %2188 = vmatprep.subr.bf16.mxu0 %v5313_v55 }
 0x385   : > { %4943 = vmatmul.mubr.msk.bf16.gmra.mxu0 %vm1817_vm0, %v1768_v39  ;;  %v5329_v39 = vld [vmem:[%s6783_s7 + $0x88] ss:$20 sps:$4 sm:$0xff]  }
 0x386   : > { %2208 = vmatprep.mubr.bf16.mxu0 %v6789_v48  ;;  %2189 = vmatpush1.bf16.msra.mxu0 %v5311_v60 }
 0x387   : > { %2190 = vmatprep.subr.bf16.mxu0 %v5316_v62 }
 0x38a   : > { %2191 = vmatpush1.bf16.msra.mxu0 %v5314_v0 }
 0x38b   : > { %2257 = vmatprep.subr.bf16.mxu0 %v5319_v8  ;;  %v5330_v8 = vld [vmem:[%s6783_s7 + $0x60] ss:$20 sps:$4 sm:$0xff]  }
 0x41d   : > { %v6119_v5 = vpop.f32.mrf.mxu0 }
 0x41f   : > { %v6121_v42 = vpop.f32.mrf.mxu0 }
 0x420   : > { %6791 = vst [vmem:[#allocation2_spill] sm:$0xff] %v6121_v42 }
 0x421   : > { %v6123_v7 = vpop.f32.mrf.mxu0 }
 0x423   : > { %v6125_v2 = vpop.f32.mrf.mxu0 }
 0x425   : > { %v6127_v3 = vpop.f32.mrf.mxu0 }
 0x427   : > { %v6129_v9 = vpop.f32.mrf.mxu0 }
 0x428   : > { %6792 = vst [vmem:[#allocation3_spill] sm:$0xff] %v6129_v9 }
 0x429   : > { %v6131_v1 = vpop.f32.mrf.mxu0 }
 0x42a   : > { %6793 = vst [vmem:[#allocation4_spill] sm:$0xff] %v6131_v1 }
 0x42b   : > { %v6133_v10 = vpop.f32.mrf.mxu0 }
 0x42c   : > { %6794 = vst [vmem:[#allocation5_spill] sm:$0xff] %v6133_v10 }
 0x42d   : > { %v6135_v12 = vpop.f32.mrf.mxu0 }
 0x42e   : > { %6795 = vst [vmem:[#allocation6_spill] sm:$0xff] %v6135_v12 }
 0x42f   : > { %v6137_v14 = vpop.f32.mrf.mxu0 }
 0x430   : > { %6796 = vst [vmem:[#allocation7_spill] sm:$0xff] %v6137_v14 }
 0x431   : > { %v6139_v11 = vpop.f32.mrf.mxu0 }
 0x432   : > { %6797 = vst [vmem:[#allocation8_spill] sm:$0xff] %v6139_v11 }
 0x433   : > { %v6141_v15 = vpop.f32.mrf.mxu0 }
 0x434   : > { %6798 = vst [vmem:[#allocation9_spill] sm:$0xff] %v6141_v15 }
 0x435   : > { %v6143_v61 = vpop.f32.mrf.mxu0 }
 0x436   : > { %6799 = vst [vmem:[#allocation10_spill] sm:$0xff] %v6143_v61 }
 0x437   : > { %v6145_v16 = vpop.f32.mrf.mxu0 }
 0x438   : > { %6800 = vst [vmem:[#allocation11_spill] sm:$0xff] %v6145_v16 }
 0x439   : > { %v6147_v23 = vpop.f32.mrf.mxu0 }
 0x43a   : > { %6801 = vst [vmem:[#allocation12_spill] sm:$0xff] %v6147_v23 }
 0x43b   : > { %v6149_v47 = vpop.f32.mrf.mxu0 }
 0x43c   : > { %6802 = vst [vmem:[#allocation13_spill] sm:$0xff] %v6149_v47 }
 0x43d   : > { %v4940_v49 = vpop.f32.mrf.mxu0 }
 0x43e   : > { %v2006_v26 = vmul.f32 %v4940_v49, %v4478_v13  ;;  %v5331_v49 = vld [vmem:[%s6783_s7 + $0x38] ss:$20 sps:$4 sm:$0xff]  }
 0x43f   : > { %v1969_v17 = vpop.f32.mrf.mxu0 }
 0x440   : > { %v2004_v19 = vmul.f32 %v4478_v13, %v1969_v17  ;;  %v2018_v33 = vadd.f32 %v4479_v58, %v2006_v26 }
 0x441   : > { %v4941_v51 = vpop.f32.mrf.mxu0 }
 0x442   : > { %v2016_v56 = vadd.f32 %v4479_v58, %v2004_v19  ;;  %v2007_v24 = vmul.f32 %v4941_v51, %v4478_v13  ;;  %v2026_v32 = vmax.f32 %v2018_v33, 0.0 }
 0x443   : > { %v1972_v54 = vpop.f32.mrf.mxu0 }
 0x444   : > { %v2005_v21 = vmul.f32 %v4478_v13, %v1972_v54  ;;  %v2024_v29 = vmax.f32 %v2016_v56, 0.0  ;;  %v2019_v27 = vadd.f32 %v4479_v58, %v2007_v24 }
 0x445   : > { %v4944_v22 = vpop.f32.mrf.mxu0 }
 0x446   : > { %v2017_v25 = vadd.f32 %v4479_v58, %v2005_v21  ;;  %v2027_v34 = vmax.f32 %v2019_v27, 0.0  ;;  %v2010_v41 = vmul.f32 %v4944_v22, %v4478_v13 }
 0x447   : > { %v1985_v37 = vpop.f32.mrf.mxu0 }
 0x448   : > { %v2025_v57 = vmax.f32 %v2017_v25, 0.0  ;;  %v2008_v38 = vmul.f32 %v4478_v13, %v1985_v37  ;;  %v2033_v44 = vpack.c.bf16 %v2027_v34, %v2026_v32  ;;  %v2022_v55 = vadd.f32 %v4479_v58, %v2010_v41 }
 0x449   : > { %v4945_v59 = vpop.f32.mrf.mxu0 }
 0x44a   : > { %v2032_v28 = vpack.c.bf16 %v2025_v57, %v2024_v29  ;;  %v2020_v36 = vadd.f32 %v4479_v58, %v2008_v38  ;;  %v2011_v4 = vmul.f32 %v4945_v59, %v4478_v13  ;;  %v2030_v62 = vmax.f32 %v2022_v55, 0.0 }
 0x44b   : > { %v1988_v31 = vpop.f32.mrf.mxu0 }
 0x44c   : > { %4500 = vmatmul.mubr.msk.bf16.vlgmr.msra.gmra.mxu0 %vm1817_vm0, %v2032_v28  ;;  %v2009_v35 = vmul.f32 %v4478_v13, %v1988_v31  ;;  %v2028_v50 = vmax.f32 %v2020_v36, 0.0  ;;  %v2023_v52 = vadd.f32 %v4479_v58, %v2011_v4  ;;  %v5332_v13 = vld [vmem:[%s6783_s7 + $0x10] ss:$20 sps:$4 sm:$0xff]  }
 0x44d   : > { %2218 = vmatprep.mubr.bf16.mxu0 %v6789_v48  ;;  %2258 = vmatpush1.bf16.msra.mxu0 %v5317_v63 }
 0x44e   : > { %2259 = vmatprep.subr.bf16.mxu0 %v5322_v30  ;;  %v2021_v45 = vadd.f32 %v4479_v58, %v2009_v35  ;;  %v2031_v60 = vmax.f32 %v2023_v52, 0.0 }
 0x450   : > { %v2029_v20 = vmax.f32 %v2021_v45, 0.0  ;;  %v2035_v0 = vpack.c.bf16 %v2031_v60, %v2030_v62 }
 0x451   : > { %2260 = vmatpush1.bf16.msra.mxu0 %v5320_v18  ;;  %v5333_v18 = vld [vmem:[%s6779_s3 + $0x20] sm:$0xff]  }
 0x452   : > { %2261 = vmatprep.subr.bf16.mxu0 %v5325_v40  ;;  %v2034_v53 = vpack.c.bf16 %v2029_v20, %v2028_v50 }
 0x454   : > { %4501 = vmatmul.mubr.msk.bf16.gmra.mxu0 %vm1817_vm0, %v2033_v44 }
 0x455   : > { %2228 = vmatprep.mubr.bf16.mxu0 %v6789_v48  ;;  %2262 = vmatpush1.bf16.msra.mxu0 %v5323_v43 }
 0x456   : > { %2263 = vmatprep.subr.bf16.mxu0 %v5328_v46 }
 0x459   : > { %2264 = vmatpush1.bf16.msra.mxu0 %v5326_v6 }
 0x45a   : > { %4946 = vmatprep.subr.bf16.mxu0 %v5329_v39 }
 0x45c   : > { %4502 = vmatmul.mubr.msk.bf16.gmra.mxu0 %vm1817_vm0, %v2034_v53 }
 0x45d   : > { %2238 = vmatprep.mubr.bf16.mxu0 %v6789_v48 }
 0x464   : > { %4503 = vmatmul.mubr.msk.bf16.gmra.mxu0 %vm1817_vm0, %v2035_v0 }
 0x465   : > { %2281 = vmatprep.mubr.bf16.mxu0 %v6789_v48 }
 0x46c   : > { %4504 = vmatmul.mubr.msk.bf16.vlgmr.msra.gmra.mxu0 %vm1817_vm0, %v2032_v28 }
 0x46d   : > { %2291 = vmatprep.mubr.bf16.mxu0 %v6789_v48  ;;  %4947 = vmatpush3.bf16.msra.mxu0 %v5329_v39 }
 0x46e   : > { %4948 = vmatprep.subr.bf16.mxu0 %v5330_v8 }
 0x471   : > { %4949 = vmatpush3.bf16.msra.mxu0 %v5330_v8  ;;  %v5343_v8 = vld [vmem:[%s6779_s3 + $0xa0] sm:$0xff]  }
 0x472   : > { %4950 = vmatprep.subr.bf16.mxu0 %v5331_v49  ;;  %5050 = vmatprep.mubr.msk.bf16.mxu1 %vm1817_vm0, %v5343_v8  ;;  %v5350_v8 = vld [vmem:[%s6779_s3 + $0x78] sm:$0xff]  }
 0x474   : > { %4505 = vmatmul.mubr.msk.bf16.gmra.mxu0 %vm1817_vm0, %v2033_v44 }
 0x475   : > { %2301 = vmatprep.mubr.bf16.mxu0 %v6789_v48  ;;  %4951 = vmatpush3.bf16.msra.mxu0 %v5331_v49 }
 0x476   : > { %4952 = vmatprep.subr.bf16.mxu0 %v5332_v13 }
 0x479   : > { %4953 = vmatpush3.bf16.msra.mxu0 %v5332_v13 }
 0x47c   : > { %4506 = vmatmul.mubr.msk.bf16.gmra.mxu0 %vm1817_vm0, %v2034_v53 }
 0x47d   : > { %2311 = vmatprep.mubr.bf16.mxu0 %v6789_v48 }
 0x484   : > { %4507 = vmatmul.mubr.msk.bf16.gmra.mxu0 %vm1817_vm0, %v2035_v0 }
 0x485   : > { %4954 = vmatprep.mubr.msk.bf16.mxu0 %vm1817_vm0, %v2032_v28 }
 0x48c   : > { %4955 = vmatmul.mubr.msk.bf16.vlgmr.msra.gmra.mxu0 %vm1817_vm0, %v2033_v44 }
 0x48d   : > { %4958 = vmatprep.mubr.msk.bf16.mxu0 %vm1817_vm0, %v2034_v53 }
 0x494   : > { %4959 = vmatmul.mubr.msk.bf16.gmra.mxu0 %vm1817_vm0, %v2035_v0 }
 0x495   : > { %4970 = vmatprep.mubr.msk.bf16.mxu0 %vm1817_vm0, %v5333_v18 }
 0x50c   : > { %v2210_v17 = vpop.f32.mrf.mxu0 }
 0x50e   : > { %v2212_v19 = vpop.f32.mrf.mxu0 }
 0x510   : > { %v2214_v51 = vpop.f32.mrf.mxu0 }
 0x511   : > { %v6213_v37 = vpack.c.bf16 %v2214_v51, %v2210_v17 }
 0x512   : > { %v2216_v58 = vpop.f32.mrf.mxu0 }
 0x513   : > { %v6221_v28 = vpack.c.bf16 %v2216_v58, %v2212_v19 }
 0x514   : > { %v2220_v54 = vpop.f32.mrf.mxu0 }
 0x516   : > { %v2222_v56 = vpop.f32.mrf.mxu0 }
 0x518   : > { %v2224_v21 = vpop.f32.mrf.mxu0 }
 0x519   : > { %v6209_v22 = vpack.c.bf16 %v2224_v21, %v2220_v54 }
 0x51a   : > { %v2226_v24 = vpop.f32.mrf.mxu0 }
 0x51b   : > { %2450 = vrot.lane.b32.xlu1 %v6209_v22, %s5486_s17  ;;  %v6235_v45 = vpack.c.bf16 %v2226_v24, %v2222_v56  ;;  %v5334_v24 = vld [vmem:[%s6779_s3 + $0x28] sm:$0xff]  }
 0x51c   : > { %v2230_v25 = vpop.f32.mrf.mxu0 }
 0x51e   : > { %v2232_v26 = vpop.f32.mrf.mxu0 }
 0x51f   : > { %2448 = vrot.lane.b32.xlu1 %v6213_v37, %s5486_s17 }
 0x520   : > { %v2234_v29 = vpop.f32.mrf.mxu0 }
 0x521   : > { %v2397_v35 = vpack.c.bf16 %v2234_v29, %v2230_v25  ;;  %v5335_v25 = vld [vmem:[%s6779_s3 + $0x30] sm:$0xff]  }
 0x522   : > { %v2236_v57 = vpop.f32.mrf.mxu0 }
 0x523   : > { %v6217_v59 = vpack.c.bf16 %v2236_v57, %v2232_v26  ;;  %v5336_v26 = vld [vmem:[%s6779_s3 + $0x38] sm:$0xff]   ;;  %v5337_v57 = vld [vmem:[%s6779_s3] sm:$0xff]  }
 0x524   : > { %v2240_v63 = vpop.f32.mrf.mxu0 }
 0x525   : > { %2785 = vrot.lane.b32.xlu1 %v6217_v59, %s5486_s17 }
 0x526   : > { %v2242_v27 = vpop.f32.mrf.mxu0 }
 0x528   : > { %v2244_v30 = vpop.f32.mrf.mxu0 }
 0x529   : > { %v2402_v31 = vpack.c.bf16 %v2244_v30, %v2240_v63  ;;  %2781 = vrot.lane.b32.xlu1 %v6221_v28, %s5486_s17  ;;  %v5338_v30 = vld [vmem:[%s6779_s3 + $0x8] sm:$0xff]  }
 0x52a   : > { %v2246_v33 = vpop.f32.mrf.mxu0 }
 0x52b   : > { %2454 = vrot.lane.b32.xlu0 %v2402_v31, %s5486_s17  ;;  %v6231_v38 = vpack.c.bf16 %v2246_v33, %v2242_v27 }
 0x52c   : > { %v2283_v34 = vpop.f32.mrf.mxu0 }
 0x52e   : > { %v2285_v40 = vpop.f32.mrf.mxu0 }
 0x52f   : > { %2452 = vrot.lane.b32.xlu0 %v2397_v35, %s5486_s17 }
 0x530   : > { %v2287_v32 = vpop.f32.mrf.mxu0 }
 0x531   : > { %v6243_v53 = vpack.c.bf16 %v2287_v32, %v2283_v34  ;;  %v5344_v32 = vld [vmem:[%s6779_s3 + $0xa8] sm:$0xff]  }
 0x532   : > { %v2289_v43 = vpop.f32.mrf.mxu0 }
 0x533   : > { %2787 = vrot.lane.b32.xlu0 %v6231_v38, %s5486_s17  ;;  %v6258_v49 = vpack.c.bf16 %v2289_v43, %v2285_v40  ;;  %v5345_v43 = vld [vmem:[%s6779_s3 + $0x50] sm:$0xff]  }
 0x534   : > { %v2293_v44 = vpop.f32.mrf.mxu0 }
 0x536   : > { %v2295_v46 = vpop.f32.mrf.mxu0 }
 0x537   : > { %2783 = vrot.lane.b32.xlu0 %v6235_v45, %s5486_s17 }
 0x538   : > { %v2297_v36 = vpop.f32.mrf.mxu0 }
 0x539   : > { %v6260_v13 = vpack.c.bf16 %v2297_v36, %v2293_v44  ;;  %v5357_v44 = vld [vmem:[%s6779_s3 + $0xb0] sm:$0xff]  }
 0x53a   : > { %v2299_v6 = vpop.f32.mrf.mxu0 }
 0x53b   : > { %v6271_v51 = vpack.c.bf16 %v2299_v6, %v2295_v46  ;;  %v5358_v46 = vld [vmem:[%s6779_s3 + $0xb8] sm:$0xff]   ;;  %v5347_v6 = vld [vmem:[%s6779_s3 + $0x60] sm:$0xff]  }
 0x53c   : > { %v2303_v4 = vpop.f32.mrf.mxu0 }
 0x53e   : > { %v2305_v20 = vpop.f32.mrf.mxu0 }
 0x540   : > { %v2307_v39 = vpop.f32.mrf.mxu0 }
 0x541   : > { %v6239_v41 = vpack.c.bf16 %v2307_v39, %v2303_v4  ;;  %v5361_v4 = vld [vmem:[%s6779_s3 + $0xe0] sm:$0xff]   ;;  %v5348_v39 = vld [vmem:[%s6779_s3 + $0x68] sm:$0xff]  }
 0x542   : > { %v2309_v50 = vpop.f32.mrf.mxu0 }
 0x543   : > { %3029 = vrot.lane.b32.xlu1 %v6239_v41, %s5486_s17  ;;  %v6247_v62 = vpack.c.bf16 %v2309_v50, %v2305_v20  ;;  %v5362_v50 = vld [vmem:[%s6779_s3 + $0xe8] sm:$0xff]  }
 0x544   : > { %v2313_v52 = vpop.f32.mrf.mxu0 }
 0x546   : > { %v2315_v55 = vpop.f32.mrf.mxu0 }
 0x547   : > { %3025 = vrot.lane.b32.xlu1 %v6243_v53, %s5486_s17 }
 0x548   : > { %v2317_v60 = vpop.f32.mrf.mxu0 }
 0x549   : > { %v6249_v0 = vpack.c.bf16 %v2317_v60, %v2313_v52  ;;  %v5349_v52 = vld [vmem:[%s6779_s3 + $0x70] sm:$0xff]  }
 0x54a   : > { %v2319_v17 = vpop.f32.mrf.mxu0 }
 0x54b   : > { %3273 = vrot.lane.b32.xlu1 %v6247_v62, %s5486_s17  ;;  %3031 = vrot.lane.b32.xlu0 %v6249_v0, %s5486_s17  ;;  %v6267_v19 = vpack.c.bf16 %v2319_v17, %v2315_v55  ;;  %v5365_v55 = vld [vmem:[%s6779_s3 + $0xf0] sm:$0xff]   ;;  %v5366_v17 = vld [vmem:[%s6779_s3 + $0xf8] sm:$0xff]  }
 0x54c   : > { %v4956_v60 = vpop.f32.mrf.mxu0 }
 0x54f   : > { %3269 = vrot.lane.b32.xlu1 %v6258_v49, %s5486_s17  ;;  %3027 = vrot.lane.b32.xlu0 %v6260_v13, %s5486_s17 }
 0x553   : > { %3275 = vrot.lane.b32.xlu0 %v6267_v19, %s5486_s17 }
 0x557   : > { %3271 = vrot.lane.b32.xlu0 %v6271_v51, %s5486_s17 }
 0x58d   : > { %v2451_v54 = vpop.permute.xlu1 %2450 }
 0x591   : > { %v2449_v21 = vpop.permute.xlu1 %2448 }
 0x597   : > { %v2786_v63 = vpop.permute.xlu1 %2785 }
 0x59d   : > { %v2455_v58 = vpop.permute.xlu0 %2454 }
 0x59e   : > { %4962 = vmatprep.subr.bf16.mxu0 %v2455_v58 }
 0x59f   : > { %4963 = vmatpush3.bf16.msra.mxu0 %v2455_v58  ;;  %v2356_v58 = vpop.f32.mrf.mxu0 }
 0x5a1   : > { %v2453_v56 = vpop.permute.xlu0 %2452 }
 0x5a2   : > { %4964 = vmatprep.subr.bf16.mxu0 %v2453_v56 }
 0x5a3   : > { %4965 = vmatpush3.bf16.msra.mxu0 %v2453_v56 }
 0x5a4   : > { %4966 = vmatprep.subr.bf16.mxu0 %v2451_v54 }
 0x5a5   : > { %v2788_v29 = vpop.permute.xlu0 %2787 }
 0x5a7   : > { %4967 = vmatpush3.bf16.msra.mxu0 %v2451_v54  ;;  %v4957_v54 = vpop.f32.mrf.mxu0 }
 0x5a8   : > { %4968 = vmatprep.subr.bf16.mxu0 %v2449_v21 }
 0x5a9   : > { %v2784_v27 = vpop.permute.xlu0 %2783  ;;  %v2359_v56 = vpop.f32.mrf.mxu0 }
 0x5ab   : > { %4969 = vmatpush3.bf16.msra.mxu0 %v2449_v21  ;;  %v5353_v21 = vld [vmem:[%s6779_s3 + $0x90] sm:$0xff]  }
 0x5ac   : > { %4978 = vmatprep.subr.bf16.mxu0 %v2402_v31 }
 0x5ae   : > { %4971 = vmatmul.mubr.msk.bf16.vlgmr.msra.gmra.mxu0 %vm1817_vm0, %v5334_v24  ;;  %v5354_v24 = vld [vmem:[%s6779_s3 + $0x98] sm:$0xff]  }
 0x5af   : > { %4979 = vmatpush3.bf16.msra.mxu0 %v2402_v31  ;;  %4974 = vmatprep.mubr.msk.bf16.mxu0 %vm1817_vm0, %v5335_v25  ;;  %v6297_v31 = vpop.permute.xlu1 %2781  ;;  %v5355_v25 = vld [vmem:[%s6779_s3 + $0xc0] sm:$0xff]  }
 0x5b0   : > { %4980 = vmatprep.subr.bf16.mxu0 %v2397_v35 }
 0x5b3   : > { %4981 = vmatpush3.bf16.msra.mxu0 %v2397_v35  ;;  %v5341_v35 = vld [vmem:[%s6779_s3 + $0x40] sm:$0xff]  }
 0x5b4   : > { %4982 = vmatprep.subr.bf16.mxu0 %v6209_v22 }
 0x5b5   : > { %v3030_v18 = vpop.permute.xlu1 %3029 }
 0x5b6   : > { %4975 = vmatmul.mubr.msk.bf16.gmra.mxu0 %vm1817_vm0, %v5336_v26 }
 0x5b7   : > { %4983 = vmatpush3.bf16.msra.mxu0 %v6209_v22  ;;  %4986 = vmatprep.mubr.msk.bf16.mxu0 %vm1817_vm0, %v5337_v57  ;;  %v5339_v22 = vld [vmem:[%s6779_s3 + $0x10] sm:$0xff]  }
 0x5b8   : > { %4984 = vmatprep.subr.bf16.mxu0 %v6213_v37  ;;  %v5359_v57 = vld [vmem:[%s6779_s3 + $0xd0] sm:$0xff]  }
 0x5b9   : > { %v3026_v40 = vpop.permute.xlu1 %3025 }
 0x5bb   : > { %4985 = vmatpush3.bf16.msra.mxu0 %v6213_v37  ;;  %v5340_v37 = vld [vmem:[%s6779_s3 + $0x18] sm:$0xff]  }
 0x5bc   : > { %4994 = vmatprep.subr.bf16.mxu0 %v6231_v38 }
 0x5bd   : > { %v3032_v33 = vpop.permute.xlu0 %3031 }
 0x5be   : > { %4987 = vmatmul.mubr.msk.bf16.vlgmr.msra.gmra.mxu0 %vm1817_vm0, %v5338_v30  ;;  %5042 = vmatprep.subr.bf16.mxu1 %v3032_v33  ;;  %v2391_v30 = vpack.c.bf16 %v2359_v56, %v2356_v58 }
 0x5bf   : > { %4995 = vmatpush3.bf16.msra.mxu0 %v6231_v38  ;;  %5043 = vmatpush3.bf16.msra.mxu1 %v3032_v33  ;;  %v5367_v33 = vld [vmem:[%s6779_s3 + $0x110] sm:$0xff]  }
 0x5c0   : > { %4996 = vmatprep.subr.bf16.mxu0 %v6217_v59  ;;  %5044 = vmatprep.subr.bf16.mxu1 %v3030_v18 }
 0x5c1   : > { %4990 = vmatprep.mubr.msk.bf16.mxu0 %vm1817_vm0, %v5339_v22  ;;  %v3028_v34 = vpop.permute.xlu0 %3027  ;;  %v5368_v22 = vld [vmem:[%s6779_s3 + $0x118] sm:$0xff]  }
 0x5c3   : > { %4997 = vmatpush3.bf16.msra.mxu0 %v6217_v59  ;;  %5045 = vmatpush3.bf16.msra.mxu1 %v3030_v18  ;;  %v5342_v59 = vld [vmem:[%s6779_s3 + $0x48] sm:$0xff]   ;;  %v5371_v18 = vld [vmem:[%s6784_s8 + $0x34] ss:$8 sps:$4 sm:$0xff]  }
 0x5c4   : > { %4998 = vmatprep.subr.bf16.mxu0 %v6235_v45  ;;  %5046 = vmatprep.subr.bf16.mxu1 %v3028_v34 }
 0x5c5   : > { %v3276_v38 = vpop.permute.xlu0 %3275 }
 0x5c6   : > { %4991 = vmatmul.mubr.msk.bf16.gmra.mxu0 %vm1817_vm0, %v5340_v37  ;;  %v5369_v37 = vld [vmem:[%s6784_s8 + $0x30] ss:$8 sps:$4 sm:$0xff]  }
 0x5c7   : > { %4999 = vmatpush3.bf16.msra.mxu0 %v6235_v45  ;;  %5047 = vmatpush3.bf16.msra.mxu1 %v3028_v34  ;;  %v3274_v45 = vpop.permute.xlu1 %3273  ;;  %v5374_v34 = vld [vmem:[%s6784_s8 + $0x24] ss:$8 sps:$4 sm:$0xff]  }
 0x5c8   : > { %5000 = vmatprep.subr.bf16.mxu0 %v6221_v28  ;;  %5048 = vmatprep.subr.bf16.mxu1 %v3026_v40 }
 0x5c9   : > { %5002 = vmatprep.mubr.msk.bf16.mxu0 %vm1817_vm0, %v5341_v35  ;;  %v3272_v36 = vpop.permute.xlu0 %3271  ;;  %v5372_v35 = vld [vmem:[%s6784_s8 + $0x20] ss:$8 sps:$4 sm:$0xff]  }
 0x5cb   : > { %5001 = vmatpush3.bf16.msra.mxu0 %v6221_v28  ;;  %5049 = vmatpush3.bf16.msra.mxu1 %v3026_v40  ;;  %v5346_v28 = vld [vmem:[%s6779_s3 + $0x58] sm:$0xff]   ;;  %v3270_v20 = vpop.permute.xlu1 %3269 }
 0x5cc   : > { %5010 = vmatprep.subr.bf16.mxu0 %v2788_v29  ;;  %5074 = vmatprep.subr.bf16.mxu1 %v3276_v38  ;;  %v5377_v40 = vld [vmem:[%s6784_s8 + $0x14] ss:$8 sps:$4 sm:$0xff]  }
 0x5ce   : > { %5003 = vmatmul.mubr.msk.bf16.vlgmr.msra.gmra.mxu0 %vm1817_vm0, %v5342_v59  ;;  %5051 = vmatmul.mubr.msk.bf16.vlgmr.msra.gmra.mxu1 %vm1817_vm0, %v5344_v32  ;;  %v5375_v59 = vld [vmem:[%s6784_s8 + $0x10] ss:$8 sps:$4 sm:$0xff]   ;;  %v5380_v32 = vld [vmem:[%s6784_s8 + $0x4] ss:$8 sps:$4 sm:$0xff]  }
 0x5cf   : > { %5011 = vmatpush3.bf16.msra.mxu0 %v2788_v29  ;;  %5075 = vmatpush3.bf16.msra.mxu1 %v3276_v38  ;;  %v5378_v38 = vld [vmem:[%s6784_s8] ss:$8 sps:$4 sm:$0xff]  }
 0x5d0   : > { %5012 = vmatprep.subr.bf16.mxu0 %v2786_v63  ;;  %5076 = vmatprep.subr.bf16.mxu1 %v3274_v45 }
 0x5d1   : > { %5006 = vmatprep.mubr.msk.bf16.mxu0 %vm1817_vm0, %v5345_v43  ;;  %5054 = vmatprep.mubr.msk.bf16.mxu1 %vm1817_vm0, %v5357_v44 }
 0x5d3   : > { %5013 = vmatpush3.bf16.msra.mxu0 %v2786_v63  ;;  %5077 = vmatpush3.bf16.msra.mxu1 %v3274_v45 }
 0x5d4   : > { %5014 = vmatprep.subr.bf16.mxu0 %v2784_v27  ;;  %5078 = vmatprep.subr.bf16.mxu1 %v3272_v36 }
 0x5d6   : > { %5007 = vmatmul.mubr.msk.bf16.gmra.mxu0 %vm1817_vm0, %v5346_v28  ;;  %5055 = vmatmul.mubr.msk.bf16.gmra.mxu1 %vm1817_vm0, %v5358_v46 }
 0x5d7   : > { %5015 = vmatpush3.bf16.msra.mxu0 %v2784_v27  ;;  %5079 = vmatpush3.bf16.msra.mxu1 %v3272_v36  ;;  %v5360_v27 = vld [vmem:[%s6779_s3 + $0xd8] sm:$0xff]   ;;  %v5381_v36 = vld [vmem:[%s6786_s10 + $0xe0] ss:$16 sps:$4 sm:$0xff]  }
 0x5d8   : > { %5016 = vmatprep.subr.bf16.mxu0 %v6297_v31  ;;  %5080 = vmatprep.subr.bf16.mxu1 %v3270_v20 }
 0x5d9   : > { %5018 = vmatprep.mubr.msk.bf16.mxu0 %vm1817_vm0, %v5347_v6  ;;  %5082 = vmatprep.mubr.msk.bf16.mxu1 %vm1817_vm0, %v5361_v4  ;;  %v5383_v6 = vld [vmem:[%s6786_s10 + $0xe4] ss:$16 sps:$4 sm:$0xff]  }
 0x5db   : > { %5017 = vmatpush3.bf16.msra.mxu0 %v6297_v31  ;;  %5081 = vmatpush3.bf16.msra.mxu1 %v3270_v20  ;;  %v5364_v31 = vld [vmem:[%s6779_s3 + $0x108] sm:$0xff]  }
 0x5dc   : > { %5026 = vmatprep.subr.bf16.mxu0 %v6249_v0  ;;  %3584 = vmatprep.subr.bf16.mxu1 %v5371_v18  ;;  %v5386_v20 = vld [vmem:[%s6786_s10 + $0xec] ss:$16 sps:$4 sm:$0xff]  }
 0x5de   : > { %5019 = vmatmul.mubr.msk.bf16.vlgmr.msra.gmra.mxu0 %vm1817_vm0, %v5348_v39  ;;  %5083 = vmatmul.mubr.msk.bf16.vlgmr.msra.gmra.mxu1 %vm1817_vm0, %v5362_v50  ;;  %v5389_v39 = vld [vmem:[%s6786_s10 + $0xc4] ss:$16 sps:$4 sm:$0xff]  }
 0x5df   : > { %5027 = vmatpush3.bf16.msra.mxu0 %v6249_v0  ;;  %5022 = vmatprep.mubr.msk.bf16.mxu0 %vm1817_vm0, %v5349_v52  ;;  %v5351_v0 = vld [vmem:[%s6779_s3 + $0x80] sm:$0xff]  }
 0x5e0   : > { %5028 = vmatprep.subr.bf16.mxu0 %v6239_v41  ;;  %5086 = vmatprep.mubr.msk.bf16.mxu1 %vm1817_vm0, %v5365_v55  ;;  %v5387_v52 = vld [vmem:[%s6786_s10 + $0xc0] ss:$16 sps:$4 sm:$0xff]  }
 0x5e1   : > { %3585 = vmatpush1.bf16.msra.mxu1 %v5369_v37 }
 0x5e2   : > { %3586 = vmatprep.subr.bf16.mxu1 %v5374_v34 }
 0x5e3   : > { %5029 = vmatpush3.bf16.msra.mxu0 %v6239_v41  ;;  %v5352_v41 = vld [vmem:[%s6779_s3 + $0x88] sm:$0xff]  }
 0x5e4   : > { %5030 = vmatprep.subr.bf16.mxu0 %v6260_v13 }
 0x5e5   : > { %3587 = vmatpush1.bf16.msra.mxu1 %v5372_v35 }
 0x5e6   : > { %5023 = vmatmul.mubr.msk.bf16.gmra.mxu0 %vm1817_vm0, %v5350_v8  ;;  %5087 = vmatmul.mubr.msk.bf16.gmra.mxu1 %vm1817_vm0, %v5366_v17 }
 0x5e7   : > { %5031 = vmatpush3.bf16.msra.mxu0 %v6260_v13  ;;  %5034 = vmatprep.mubr.msk.bf16.mxu0 %vm1817_vm0, %v5351_v0  ;;  %v4960_v13 = vpop.f32.mrf.mxu0 }
 0x5e8   : > { %5032 = vmatprep.subr.bf16.mxu0 %v6243_v53  ;;  %3608 = vmatprep.mubr.bf16.mxu1 %v6789_v48 }
 0x5e9   : > { %3588 = vmatprep.subr.bf16.mxu1 %v5377_v40 }
 0x5ea   : > { %3589 = vmatpush1.bf16.msra.mxu1 %v5375_v59 }
 0x5eb   : > { %5033 = vmatpush3.bf16.msra.mxu0 %v6243_v53  ;;  %v2372_v53 = vpop.f32.mrf.mxu0  ;;  %3590 = vmatprep.subr.bf16.mxu1 %v5380_v32 }
 0x5ec   : > { %5058 = vmatprep.subr.bf16.mxu0 %v6267_v19 }
 0x5ee   : > { %5035 = vmatmul.mubr.msk.bf16.vlgmr.msra.gmra.mxu0 %vm1817_vm0, %v5352_v41  ;;  %3591 = vmatpush1.bf16.msra.mxu1 %v5378_v38 }
 0x5ef   : > { %5059 = vmatpush3.bf16.msra.mxu0 %v6267_v19  ;;  %5038 = vmatprep.mubr.msk.bf16.mxu0 %vm1817_vm0, %v5353_v21  ;;  %v4961_v19 = vpop.f32.mrf.mxu0 }
 0x5f0   : > { %5060 = vmatprep.subr.bf16.mxu0 %v6247_v62  ;;  %v2406_v26 = vpack.c.bf16 %v4961_v19, %v4960_v13  ;;  %4200 = vmatprep.subr.bf16.mxu1 %v5386_v20 }
 0x5f1   : > { %v2375_v29 = vpop.f32.mrf.mxu0 }
 0x5f2   : > { %v2401_v63 = vpack.c.bf16 %v2375_v29, %v2372_v53 }
 0x5f3   : > { %5061 = vmatpush3.bf16.msra.mxu0 %v6247_v62  ;;  %v5356_v62 = vld [vmem:[%s6779_s3 + $0xc8] sm:$0xff]  }
 0x5f4   : > { %5062 = vmatprep.subr.bf16.mxu0 %v6271_v51 }
 0x5f6   : > { %5039 = vmatmul.mubr.msk.bf16.gmra.mxu0 %vm1817_vm0, %v5354_v24 }
 0x5f7   : > { %5063 = vmatpush3.bf16.msra.mxu0 %v6271_v51  ;;  %5066 = vmatprep.mubr.msk.bf16.mxu0 %vm1817_vm0, %v5355_v25  ;;  %v2396_v51 = vpack.c.bf16 %v4957_v54, %v4956_v60 }
 0x5f8   : > { %5064 = vmatprep.subr.bf16.mxu0 %v6258_v49 }
 0x5fb   : > { %5065 = vmatpush3.bf16.msra.mxu0 %v6258_v49  ;;  %v5363_v49 = vld [vmem:[%s6779_s3 + $0x100] sm:$0xff]  }
 0x5fc   : > { %5090 = vmatprep.subr.bf16.mxu0 %v2406_v26 }
 0x5fe   : > { %5067 = vmatmul.mubr.msk.bf16.vlgmr.msra.gmra.mxu0 %vm1817_vm0, %v5356_v62 }
 0x5ff   : > { %5091 = vmatpush3.bf16.msra.mxu0 %v2406_v26  ;;  %5070 = vmatprep.mubr.msk.bf16.mxu0 %vm1817_vm0, %v5359_v57 }
 0x600   : > { %5092 = vmatprep.subr.bf16.mxu0 %v2401_v63 }
 0x603   : > { %5093 = vmatpush3.bf16.msra.mxu0 %v2401_v63 }
 0x604   : > { %5094 = vmatprep.subr.bf16.mxu0 %v2396_v51 }
 0x606   : > { %5071 = vmatmul.mubr.msk.bf16.gmra.mxu0 %vm1817_vm0, %v5360_v27 }
 0x607   : > { %5095 = vmatpush3.bf16.msra.mxu0 %v2396_v51  ;;  %5098 = vmatprep.mubr.msk.bf16.mxu0 %vm1817_vm0, %v5363_v49 }
 0x608   : > { %5096 = vmatprep.subr.bf16.mxu0 %v2391_v30 }
 0x60b   : > { %5097 = vmatpush3.bf16.msra.mxu0 %v2391_v30 }
 0x60c   : > { %4159 = vmatprep.subr.bf16.mxu0 %v5383_v6 }
 0x60e   : > { %5099 = vmatmul.mubr.msk.bf16.vlgmr.msra.gmra.mxu0 %vm1817_vm0, %v5364_v31 }
 0x60f   : > { %5102 = vmatprep.mubr.msk.bf16.mxu0 %vm1817_vm0, %v5367_v33  ;;  %4160 = vmatpush1.bf16.msra.mxu0 %v5381_v36 }
 0x610   : > { %4161 = vmatprep.subr.bf16.mxu0 %v5389_v39 }
 0x613   : > { %4162 = vmatpush1.bf16.msra.mxu0 %v5387_v52 }
 0x616   : > { %5103 = vmatmul.mubr.msk.bf16.gmra.mxu0 %vm1817_vm0, %v5368_v22 }
 0x66e   : > { %v4972_v43 = vpop.f32.mrf.mxu0 }
 0x670   : > { %v2506_v44 = vpop.f32.mrf.mxu0 }
 0x672   : > { %v4973_v45 = vpop.f32.mrf.mxu0 }
 0x674   : > { %v2509_v28 = vpop.f32.mrf.mxu0 }
 0x676   : > { %v4976_v46 = vpop.f32.mrf.mxu0 }
 0x678   : > { %v2522_v4 = vpop.f32.mrf.mxu0 }
 0x67a   : > { %v4977_v50 = vpop.f32.mrf.mxu0 }
 0x67c   : > { %v2525_v55 = vpop.f32.mrf.mxu0 }
 0x67e   : > { %v4988_v60 = vpop.f32.mrf.mxu0 }
 0x67f   : > { %v2612_v8 = vadd.f32 %v4988_v60, %v4972_v43 }
 0x680   : > { %v2603_v17 = vpop.f32.mrf.mxu0 }
 0x681   : > { %v2604_v58 = vadd.f32 %v2603_v17, %v2506_v44 }
 0x682   : > { %v4989_v0 = vpop.f32.mrf.mxu0 }
 0x683   : > { %v2615_v54 = vadd.f32 %v4989_v0, %v4973_v45 }
 0x684   : > { %v2606_v41 = vpop.f32.mrf.mxu0 }
 0x685   : > { %v2607_v56 = vadd.f32 %v2606_v41, %v2509_v28 }
 0x686   : > { %v4992_v21 = vpop.f32.mrf.mxu0 }
 0x687   : > { %v2628_v13 = vadd.f32 %v4992_v21, %v4976_v46 }
 0x688   : > { %v2619_v24 = vpop.f32.mrf.mxu0 }
 0x689   : > { %v2620_v53 = vadd.f32 %v2619_v24, %v2522_v4 }
 0x68a   : > { %v4993_v25 = vpop.f32.mrf.mxu0 }
 0x68b   : > { %v2631_v19 = vadd.f32 %v4993_v25, %v4977_v50 }
 0x68c   : > { %v2622_v26 = vpop.f32.mrf.mxu0 }
 0x68d   : > { %v6483_v62 = vadd.f32 %v2622_v26, %v2525_v55 }
 0x68e   : > { %v5004_v29 = vpop.f32.mrf.mxu0  ;;  %v5052_v37 = vpop.f32.mrf.mxu1 }
 0x68f   : > { %v2742_v57 = vadd.f32 %v5004_v29, %v2612_v8 }
 0x690   : > { %v2709_v63 = vpop.f32.mrf.mxu0  ;;  %v3083_v40 = vpop.f32.mrf.mxu1 }
 0x691   : > { %v2740_v25 = vadd.f32 %v2709_v63, %v2604_v58 }
 0x692   : > { %v5005_v51 = vpop.f32.mrf.mxu0  ;;  %v5053_v38 = vpop.f32.mrf.mxu1 }
 0x693   : > { %v2743_v29 = vadd.f32 %v5005_v51, %v2615_v54 }
 0x694   : > { %v2712_v27 = vpop.f32.mrf.mxu0  ;;  %v3086_v45 = vpop.f32.mrf.mxu1 }
 0x695   : > { %v2741_v47 = vadd.f32 %v2712_v27, %v2607_v56 }
 0x696   : > { %v5008_v49 = vpop.f32.mrf.mxu0  ;;  %v5056_v36 = vpop.f32.mrf.mxu1 }
 0x697   : > { %v2746_v30 = vadd.f32 %v5008_v49, %v2628_v13 }
 0x698   : > { %v2725_v31 = vpop.f32.mrf.mxu0  ;;  %v3099_v20 = vpop.f32.mrf.mxu1 }
 0x699   : > { %v2744_v33 = vadd.f32 %v2725_v31, %v2620_v53 }
 0x69a   : > { %v5009_v22 = vpop.f32.mrf.mxu0  ;;  %v6487_v52 = vpop.f32.mrf.mxu1 }
 0x69b   : > { %v6485_v18 = vadd.f32 %v5009_v22, %v2631_v19 }
 0x69c   : > { %v2728_v34 = vpop.f32.mrf.mxu0  ;;  %v6489_v8 = vpop.f32.mrf.mxu1 }
 0x69d   : > { %v2745_v56 = vadd.f32 %v2728_v34, %v6483_v62 }
 0x69e   : > { %v5020_v35 = vpop.f32.mrf.mxu0  ;;  %v5084_v41 = vpop.f32.mrf.mxu1 }
 0x69f   : > { %v2872_v19 = vadd.f32 %v5020_v35, %v2742_v57 }
 0x6a0   : > { %v2839_v59 = vpop.f32.mrf.mxu0  ;;  %v3327_v24 = vpop.f32.mrf.mxu1 }
 0x6a1   : > { %v2870_v49 = vadd.f32 %v2839_v59, %v2740_v25 }
 0x6a2   : > { %v5021_v32 = vpop.f32.mrf.mxu0  ;;  %v5085_v22 = vpop.f32.mrf.mxu1 }
 0x6a3   : > { %v2873_v23 = vadd.f32 %v5021_v32, %v2743_v29 }
 0x6a4   : > { %v2842_v43 = vpop.f32.mrf.mxu0  ;;  %v3330_v12 = vpop.f32.mrf.mxu1 }
 0x6a5   : > { %v2871_v15 = vadd.f32 %v2842_v43, %v2741_v47 }
 0x6a6   : > { %v5024_v44 = vpop.f32.mrf.mxu0  ;;  %v5088_v59 = vpop.f32.mrf.mxu1 }
 0x6a7   : > { %v2876_v1 = vadd.f32 %v5024_v44, %v2746_v30 }
 0x6a8   : > { %v2855_v28 = vpop.f32.mrf.mxu0  ;;  %v3343_v30 = vpop.f32.mrf.mxu1 }
 0x6a9   : > { %v2874_v57 = vadd.f32 %v2855_v28, %v2744_v33  ;;  %v4649_v28 = vld [vmem:[%s6780_s4 + $0x5] ss:$0 sm:$0xff] }
 0x6aa   : > { %v5025_v46 = vpop.f32.mrf.mxu0 }
 0x6ac   : > { %v2858_v6 = vpop.f32.mrf.mxu0 }
 0x6ad   : > { %v2875_v43 = vadd.f32 %v2858_v6, %v2745_v56 }
 0x6ae   : > { %v5036_v4 = vpop.f32.mrf.mxu0 }
 0x6af   : > { %v2986_v31 = vadd.f32 %v5036_v4, %v2872_v19 }
 0x6b0   : > { %v2953_v39 = vpop.f32.mrf.mxu0 }
 0x6b1   : > { %v2984_v16 = vadd.f32 %v2953_v39, %v2870_v49  ;;  %v3116_v14 = vadd.f32 %v5052_v37, %v2986_v31  ;;  %v2877_v37 = vadd.f32 %v5025_v46, %v6485_v18  ;;  %v5089_v39 = vpop.f32.mrf.mxu1 }
 0x6b2   : > { %v5037_v50 = vpop.f32.mrf.mxu0 }
 0x6b3   : > { %v2987_v11 = vadd.f32 %v5037_v50, %v2873_v23  ;;  %v3114_v42 = vadd.f32 %v3083_v40, %v2984_v16 }
 0x6b4   : > { %v2956_v55 = vpop.f32.mrf.mxu0 }
 0x6b5   : > { %v2985_v9 = vadd.f32 %v2956_v55, %v2871_v15  ;;  %v3117_v51 = vadd.f32 %v5053_v38, %v2987_v11 }
 0x6b6   : > { %v5040_v60 = vpop.f32.mrf.mxu0 }
 0x6b7   : > { %v2990_v54 = vadd.f32 %v5040_v60, %v2876_v1  ;;  %v3115_v4 = vadd.f32 %v3086_v45, %v2985_v9 }
 0x6b8   : > { %v2969_v17 = vpop.f32.mrf.mxu0 }
 0x6b9   : > { %v2988_v27 = vadd.f32 %v2969_v17, %v2874_v57  ;;  %v3120_v16 = vadd.f32 %v5056_v36, %v2990_v54 }
 0x6ba   : > { %v5041_v0 = vpop.f32.mrf.mxu0 }
 0x6bb   : > { %v2991_v33 = vadd.f32 %v5041_v0, %v2877_v37  ;;  %v3118_v34 = vadd.f32 %v3099_v20, %v2988_v27  ;;  %v5384_v27 = vld [vmem:[%s6786_s10 + $0xe8] ss:$16 sps:$4 sm:$0xff]  }
 0x6bc   : > { %v2972_v21 = vpop.f32.mrf.mxu0 }
 0x6bd   : > { %v2989_v62 = vadd.f32 %v2972_v21, %v2875_v43  ;;  %v3121_v50 = vadd.f32 %v6487_v52, %v2991_v33 }
 0x6be   : > { %v5068_v13 = vpop.f32.mrf.mxu0 }
 0x6bf   : > { %v3230_v58 = vadd.f32 %v5068_v13, %v3116_v14  ;;  %v4648_v14 = vld [vmem:[%s6780_s4 + $0x4] ss:$0 sm:$0xff]  ;;  %v3119_v55 = vadd.f32 %v6489_v8, %v2989_v62 }
 0x6c0   : > { %v3197_v53 = vpop.f32.mrf.mxu0 }
 0x6c1   : > { %v3228_v35 = vadd.f32 %v3197_v53, %v3114_v42  ;;  %v3360_v23 = vadd.f32 %v5084_v41, %v3230_v58 }
 0x6c2   : > { %v5069_v26 = vpop.f32.mrf.mxu0 }
 0x6c3   : > { %v3231_v47 = vadd.f32 %v5069_v26, %v3117_v51  ;;  %v3358_v11 = vadd.f32 %v3327_v24, %v3228_v35 }
 0x6c4   : > { %v3200_v48 = vpop.f32.mrf.mxu0 }
 0x6c5   : > { %v3229_v1 = vadd.f32 %v3200_v48, %v3115_v4  ;;  %v3361_v44 = vadd.f32 %v5085_v22, %v3231_v47  ;;  %v5392_v47 = vld [vmem:[%s6786_s10 + $0xcc] ss:$16 sps:$4 sm:$0xff]  }
 0x6c6   : > { %v5072_v61 = vpop.f32.mrf.mxu0 }
 0x6c7   : > { %v3234_v9 = vadd.f32 %v5072_v61, %v3120_v16  ;;  %v3359_v36 = vadd.f32 %v3330_v12, %v3229_v1  ;;  %v3346_v12 = vpop.f32.mrf.mxu1  ;;  %v6803_v1 = vmov 0  }
 0x6c8   : > { %v3213_v10 = vpop.f32.mrf.mxu0 }
 0x6c9   : > { %v3232_v18 = vadd.f32 %v3213_v10, %v3118_v34  ;;  %v3364_v0 = vadd.f32 %v5088_v59, %v3234_v9 }
 0x6ca   : > { %v5073_v63 = vpop.f32.mrf.mxu0 }
 0x6cb   : > { %v3235_v41 = vadd.f32 %v5073_v63, %v3121_v50  ;;  %v3362_v21 = vadd.f32 %v3343_v30, %v3232_v18  ;;  %v5401_v18 = vld [vmem:[%s6786_s10 + $0x84] ss:$16 sps:$4 sm:$0xff]   ;;  %v5408_v50 = vld [vmem:[%s6786_s10 + $0x68] ss:$16 sps:$4 sm:$0xff]  }
 0x6cc   : > { %v3216_v32 = vpop.f32.mrf.mxu0 }
 0x6cd   : > { %v3233_v10 = vadd.f32 %v3216_v32, %v3119_v55  ;;  %v3365_v22 = vadd.f32 %v5089_v39, %v3235_v41  ;;  %v5405_v39 = vld [vmem:[%s6786_s10 + $0x60] ss:$16 sps:$4 sm:$0xff]   ;;  %v5413_v55 = vld [vmem:[%s6786_s10 + $0x44] ss:$16 sps:$4 sm:$0xff]  }
 0x6ce   : > { %v5100_v15 = vpop.f32.mrf.mxu0  ;;  %v5417_v41 = vld [vmem:[%s6786_s10 + $0x20] ss:$16 sps:$4 sm:$0xff]  }
 0x6cf   : > { %v3474_v42 = vadd.f32 %v5100_v15, %v3360_v23  ;;  %v3363_v58 = vadd.f32 %v3346_v12, %v3233_v10  ;;  %v5420_v10 = vld [vmem:[%s6786_s10 + $0x28] ss:$16 sps:$4 sm:$0xff]   ;;  %v5429_v12 = vld [vmem:[%s6786_s10 + $0x1e0] ss:$16 sps:$4 sm:$0xff]  }
 0x6d0   : > { %v3441_v40 = vpop.f32.mrf.mxu0 }
 0x6d1   : > { %v3486_v38 = vmul.f32 %v4648_v14, %v3474_v42  ;;  %v3472_v45 = vadd.f32 %v3441_v40, %v3358_v11  ;;  %v5390_v11 = vld [vmem:[%s6786_s10 + $0xc8] ss:$16 sps:$4 sm:$0xff]  }
 0x6d2   : > { %v5101_v46 = vpop.f32.mrf.mxu0 }
 0x6d3   : > { %v3484_v6 = vmul.f32 %v4648_v14, %v3472_v45  ;;  %v3475_v48 = vadd.f32 %v5101_v46, %v3361_v44  ;;  %v3498_v60 = vadd.f32 %v4649_v28, %v3486_v38  ;;  %v5395_v38 = vld [vmem:[%s6786_s10 + $0xa4] ss:$16 sps:$4 sm:$0xff]   ;;  %v5396_v44 = vld [vmem:[%s6786_s10 + $0xa8] ss:$16 sps:$4 sm:$0xff]   ;;  %v5398_v45 = vld [vmem:[%s6786_s10 + $0xac] ss:$16 sps:$4 sm:$0xff]  }
 0x6d4   : > { %v3444_v20 = vpop.f32.mrf.mxu0  ;;  %4163 = vmatprep.subr.bf16.mxu0 %v5395_v38  ;;  %v5399_v46 = vld [vmem:[%s6786_s10 + $0x80] ss:$16 sps:$4 sm:$0xff]  }
 0x6d5   : > { %v3487_v61 = vmul.f32 %v4648_v14, %v3475_v48  ;;  %v3473_v17 = vadd.f32 %v3444_v20, %v3359_v36  ;;  %v3496_v24 = vadd.f32 %v4649_v28, %v3484_v6  ;;  %v3506_v29 = vmax.f32 %v3498_v60, 0.0  ;;  %v5402_v6 = vld [vmem:[%s6786_s10 + $0x88] ss:$16 sps:$4 sm:$0xff]   ;;  %v5407_v36 = vld [vmem:[%s6786_s10 + $0x64] ss:$16 sps:$4 sm:$0xff]  }
 0x6d6   : > { %v5104_v13 = vpop.f32.mrf.mxu0  ;;  %v5410_v48 = vld [vmem:[%s6786_s10 + $0x6c] ss:$16 sps:$4 sm:$0xff]   ;;  %v5411_v60 = vld [vmem:[%s6786_s10 + $0x40] ss:$16 sps:$4 sm:$0xff]  }
 0x6d7   : > { %v3499_v53 = vadd.f32 %v4649_v28, %v3487_v61  ;;  %v3485_v25 = vmul.f32 %v4648_v14, %v3473_v17  ;;  %v3478_v19 = vadd.f32 %v5104_v13, %v3364_v0  ;;  %v3504_v54 = vmax.f32 %v3496_v24, 0.0  ;;  %v5416_v20 = vld [vmem:[%s6786_s10 + $0x4c] ss:$16 sps:$4 sm:$0xff]   ;;  %v5414_v61 = vld [vmem:[%s6786_s10 + $0x48] ss:$16 sps:$4 sm:$0xff]  }
 0x6d8   : > { %v3457_v26 = vpop.f32.mrf.mxu0  ;;  %v5419_v17 = vld [vmem:[%s6786_s10 + $0x24] ss:$16 sps:$4 sm:$0xff]   ;;  %v5422_v0 = vld [vmem:[%s6786_s10 + $0x2c] ss:$16 sps:$4 sm:$0xff]   ;;  %v5423_v24 = vld [vmem:[%s6786_s10] ss:$16 sps:$4 sm:$0xff]  }
 0x6d9   : > { %v3507_v49 = vmax.f32 %v3499_v53, 0.0  ;;  %v3497_v52 = vadd.f32 %v4649_v28, %v3485_v25  ;;  %v3476_v31 = vadd.f32 %v3457_v26, %v3362_v21  ;;  %v3490_v8 = vmul.f32 %v4648_v14, %v3478_v19  ;;  %v5425_v21 = vld [vmem:[%s6786_s10 + $0x4] ss:$16 sps:$4 sm:$0xff]   ;;  %v5428_v13 = vld [vmem:[%s6786_s10 + $0xc] ss:$16 sps:$4 sm:$0xff]  }
 0x6da   : > { %v5105_v57 = vpop.f32.mrf.mxu0  ;;  %v5426_v53 = vld [vmem:[%s6786_s10 + $0x8] ss:$16 sps:$4 sm:$0xff]   ;;  %v5431_v25 = vld [vmem:[%s6786_s10 + $0x1e4] ss:$16 sps:$4 sm:$0xff]   ;;  %v5434_v19 = vld [vmem:[%s6786_s10 + $0x1ec] ss:$16 sps:$4 sm:$0xff]  }
 0x6db   : > { %v3513_v51 = vpack.c.bf16 %v3507_v49, %v3506_v29  ;;  %v3505_v63 = vmax.f32 %v3497_v52, 0.0  ;;  %v3488_v35 = vmul.f32 %v4648_v14, %v3476_v31  ;;  %v3479_v59 = vadd.f32 %v5105_v57, %v3365_v22  ;;  %v5432_v26 = vld [vmem:[%s6786_s10 + $0x1e8] ss:$16 sps:$4 sm:$0xff]   ;;  %v5437_v29 = vld [vmem:[%s6786_s10 + $0x1c4] ss:$16 sps:$4 sm:$0xff]  }
 0x6dc   : > { %v3460_v56 = vpop.f32.mrf.mxu0  ;;  %v3502_v23 = vadd.f32 %v4649_v28, %v3490_v8  ;;  %v5440_v49 = vld [vmem:[%s6786_s10 + $0x1cc] ss:$16 sps:$4 sm:$0xff]   ;;  %v5435_v52 = vld [vmem:[%s6786_s10 + $0x1c0] ss:$16 sps:$4 sm:$0xff]   ;;  %v5438_v31 = vld [vmem:[%s6786_s10 + $0x1c8] ss:$16 sps:$4 sm:$0xff]  }
 0x6dd   : > { %v3512_v32 = vpack.c.bf16 %v3505_v63, %v3504_v54  ;;  %v3477_v4 = vadd.f32 %v3460_v56, %v3363_v58  ;;  %v3491_v37 = vmul.f32 %v4648_v14, %v3479_v59  ;;  %v3500_v43 = vadd.f32 %v4649_v28, %v3488_v35  ;;  %v5443_v8 = vld [vmem:[%s6786_s10 + $0x1a4] ss:$16 sps:$4 sm:$0xff]   ;;  %v5446_v22 = vld [vmem:[%s6786_s10 + $0x1ac] ss:$16 sps:$4 sm:$0xff]   ;;  %v5441_v58 = vld [vmem:[%s6786_s10 + $0x1a0] ss:$16 sps:$4 sm:$0xff]  }
 0x6de   : > { %v3510_v30 = vmax.f32 %v3502_v23, 0.0  ;;  %v5444_v57 = vld [vmem:[%s6786_s10 + $0x1a8] ss:$16 sps:$4 sm:$0xff]   ;;  %v5449_v54 = vld [vmem:[%s6786_s10 + $0x184] ss:$16 sps:$4 sm:$0xff]  }
 0x6df   : > { %4658 = vmatmul.mubr.msk.bf16.vlgmr.msra.gmra.mxu1 %vm1817_vm0, %v3512_v32  ;;  %v3489_v15 = vmul.f32 %v4648_v14, %v3477_v4  ;;  %v3503_v16 = vadd.f32 %v4649_v28, %v3491_v37  ;;  %v3508_v62 = vmax.f32 %v3500_v43, 0.0  ;;  %v5393_v14 = vld [vmem:[%s6786_s10 + $0xa0] ss:$16 sps:$4 sm:$0xff]   ;;  %v5450_v35 = vld [vmem:[%s6786_s10 + $0x188] ss:$16 sps:$4 sm:$0xff]  }
 0x6e0   : > { %3618 = vmatprep.mubr.bf16.mxu1 %v6803_v1  ;;  %4201 = vmatpush1.bf16.msra.mxu1 %v5384_v27  ;;  %v5447_v63 = vld [vmem:[%s6786_s10 + $0x180] ss:$16 sps:$4 sm:$0xff]   ;;  %v5455_v59 = vld [vmem:[%s6786_s10 + $0x164] ss:$16 sps:$4 sm:$0xff]   ;;  %v5458_v56 = vld [vmem:[%s6786_s10 + $0x16c] ss:$16 sps:$4 sm:$0xff]  }
 0x6e1   : > { %v3501_v42 = vadd.f32 %v4649_v28, %v3489_v15  ;;  %4202 = vmatprep.subr.bf16.mxu1 %v5392_v47  ;;  %v3511_v33 = vmax.f32 %v3503_v16, 0.0  ;;  %4164 = vmatpush1.bf16.msra.mxu0 %v5393_v14  ;;  %v5404_v28 = vld [vmem:[%s6786_s10 + $0x8c] ss:$16 sps:$4 sm:$0xff]   ;;  %v5453_v27 = vld [vmem:[%s6786_s10 + $0x160] ss:$16 sps:$4 sm:$0xff]  }
 0x6e2   : > { %4165 = vmatprep.subr.bf16.mxu0 %v5401_v18  ;;  %v5456_v32 = vld [vmem:[%s6786_s10 + $0x168] ss:$16 sps:$4 sm:$0xff]   ;;  %v5461_v4 = vld [vmem:[%s6786_s10 + $0x144] ss:$16 sps:$4 sm:$0xff]   ;;  %v5464_v47 = vld [vmem:[%s6786_s10 + $0x14c] ss:$16 sps:$4 sm:$0xff]  }
 0x6e3   : > { %v3509_v34 = vmax.f32 %v3501_v42, 0.0  ;;  %v3515_v40 = vpack.c.bf16 %v3511_v33, %v3510_v30  ;;  %v5459_v23 = vld [vmem:[%s6786_s10 + $0x140] ss:$16 sps:$4 sm:$0xff]   ;;  %v5462_v37 = vld [vmem:[%s6786_s10 + $0x148] ss:$16 sps:$4 sm:$0xff]  }
 0x6e4   : > { %4203 = vmatpush1.bf16.msra.mxu1 %v5390_v11  ;;  %v5467_v43 = vld [vmem:[%s6786_s10 + $0x124] ss:$16 sps:$4 sm:$0xff]   ;;  %v5470_v15 = vld [vmem:[%s6786_s10 + $0x12c] ss:$16 sps:$4 sm:$0xff]   ;;  %v5465_v16 = vld [vmem:[%s6786_s10 + $0x120] ss:$16 sps:$4 sm:$0xff]  }
 0x6e5   : > { %v3514_v9 = vpack.c.bf16 %v3509_v34, %v3508_v62  ;;  %4204 = vmatprep.subr.bf16.mxu1 %v5398_v45  ;;  %4166 = vmatpush1.bf16.msra.mxu0 %v5399_v46  ;;  %v5471_v11 = vld [vmem:[%s6786_s10 + $0x100] ss:$16 sps:$4 sm:$0xff]   ;;  %v5473_v42 = vld [vmem:[%s6786_s10 + $0x104] ss:$16 sps:$4 sm:$0xff]   ;;  %v5474_v30 = vld [vmem:[%s6786_s10 + $0x108] ss:$16 sps:$4 sm:$0xff]   ;;  %v3653_v62 = vlaneseq }
 0x6e6   : > { %4167 = vmatprep.subr.bf16.mxu0 %v5407_v36  ;;  %v5476_v33 = vld [vmem:[%s6786_s10 + $0x10c] ss:$16 sps:$4 sm:$0xff]  }
 0x6e7   : > { %4659 = vmatmul.mubr.msk.bf16.gmra.mxu1 %vm1817_vm0, %v3513_v51  ;;  %v5452_v51 = vld [vmem:[%s6786_s10 + $0x18c] ss:$16 sps:$4 sm:$0xff]   ;;  %vm4272_vm1 = vcmp.lt.s32.totalorder %v3653_v62, 512 }
 0x6e8   : > { %3628 = vmatprep.mubr.bf16.mxu1 %v6803_v1  ;;  %4205 = vmatpush1.bf16.msra.mxu1 %v5396_v44  ;;  %v3649_v44 = vld [vmem:[%s6785_s9] ss:$2 sm:$0x3] }
 0x6e9   : > { %4206 = vmatprep.subr.bf16.mxu1 %v5404_v28  ;;  %4168 = vmatpush1.bf16.msra.mxu0 %v5405_v39  ;;  %v4662_v39 = vld [vmem:[%s6785_s9 + $0x1] ss:$2 sm:$0x3] }
 0x6ea   : > { %4169 = vmatprep.subr.bf16.mxu0 %v5413_v55 }
 0x6ec   : > { %4207 = vmatpush1.bf16.msra.mxu1 %v5402_v6 }
 0x6ed   : > { %4208 = vmatprep.subr.bf16.mxu1 %v5410_v48  ;;  %4170 = vmatpush1.bf16.msra.mxu0 %v5411_v60 }
 0x6ee   : > { %4171 = vmatprep.subr.bf16.mxu0 %v5419_v17 }
 0x6ef   : > { %4660 = vmatmul.mubr.msk.bf16.gmra.mxu1 %vm1817_vm0, %v3514_v9 }
 0x6f0   : > { %3638 = vmatprep.mubr.bf16.mxu1 %v6803_v1  ;;  %4209 = vmatpush1.bf16.msra.mxu1 %v5408_v50  ;;  %v5468_v1 = vld [vmem:[%s6786_s10 + $0x128] ss:$16 sps:$4 sm:$0xff]  }
 0x6f1   : > { %4210 = vmatprep.subr.bf16.mxu1 %v5416_v20  ;;  %4172 = vmatpush1.bf16.msra.mxu0 %v5417_v41  ;;  %v6804_v20 = vld [vmem:[#allocation2_spill] sm:$0xff] }
 0x6f2   : > { %4173 = vmatprep.subr.bf16.mxu0 %v5425_v21  ;;  %v6806_v21 = vld [vmem:[#allocation4_spill] sm:$0xff] }
 0x6f4   : > { %4211 = vmatpush1.bf16.msra.mxu1 %v5414_v61 }
 0x6f5   : > { %4212 = vmatprep.subr.bf16.mxu1 %v5422_v0  ;;  %4174 = vmatpush1.bf16.msra.mxu0 %v5423_v24 }
 0x6f6   : > { %4175 = vmatprep.subr.bf16.mxu0 %v5431_v25 }
 0x6f7   : > { %4661 = vmatmul.mubr.msk.bf16.gmra.mxu1 %vm1817_vm0, %v3515_v40  ;;  %v6686_v40 = vshrl.u32 %v3653_v62, 7 }
 0x6f8   : > { %4213 = vmatpush1.bf16.msra.mxu1 %v5420_v10 }
 0x6f9   : > { %4214 = vmatprep.subr.bf16.mxu1 %v5428_v13  ;;  %4176 = vmatpush2.bf16.msra.mxu0 %v5429_v12  ;;  %v6689_v38 = vsub.s32 0, %v6686_v40  ;;  %v6695_v18 = vsub.s32 1, %v6686_v40  ;;  %v6807_v12 = vld [vmem:[#allocation5_spill] sm:$0xff] }
 0x6fa   : > { %4177 = vmatprep.subr.bf16.mxu0 %v5437_v29 }
 0x6fb   : > { %v6700_v36 = vrot.slane %v3649_v44, %v6689_v38  ;;  %v6709_v61 = vrot.slane %v3649_v44, %v6695_v18  ;;  %v6722_v25 = vrot.slane %v4662_v39, %v6695_v18 }
 0x6fc   : > { %4215 = vmatpush1.bf16.msra.mxu1 %v5426_v53 }
 0x6fd   : > { %4216 = vmatprep.subr.bf16.mxu1 %v5434_v19  ;;  %4178 = vmatpush2.bf16.msra.mxu0 %v5435_v52 }
 0x6fe   : > { %4179 = vmatprep.subr.bf16.mxu0 %v5443_v8 }
 0x700   : > { %4217 = vmatpush2.bf16.msra.mxu1 %v5432_v26 }
 0x701   : > { %4218 = vmatprep.subr.bf16.mxu1 %v5440_v49  ;;  %4180 = vmatpush2.bf16.msra.mxu0 %v5441_v58 }
 0x702   : > { %4181 = vmatprep.subr.bf16.mxu0 %v5449_v54 }
 0x704   : > { %4219 = vmatpush2.bf16.msra.mxu1 %v5438_v31 }
 0x705   : > { %4220 = vmatprep.subr.bf16.mxu1 %v5446_v22  ;;  %4182 = vmatpush2.bf16.msra.mxu0 %v5447_v63  ;;  %v6808_v22 = vld [vmem:[#allocation6_spill] sm:$0xff] }
 0x706   : > { %4183 = vmatprep.subr.bf16.mxu0 %v5455_v59 }
 0x708   : > { %4221 = vmatpush2.bf16.msra.mxu1 %v5444_v57 }
 0x709   : > { %4222 = vmatprep.subr.bf16.mxu1 %v5452_v51  ;;  %4184 = vmatpush2.bf16.msra.mxu0 %v5453_v27 }
 0x70a   : > { %4185 = vmatprep.subr.bf16.mxu0 %v5461_v4 }
 0x70c   : > { %4223 = vmatpush2.bf16.msra.mxu1 %v5450_v35 }
 0x70d   : > { %4224 = vmatprep.subr.bf16.mxu1 %v5458_v56  ;;  %4186 = vmatpush2.bf16.msra.mxu0 %v5459_v23  ;;  %v6809_v56 = vld [vmem:[#allocation7_spill] sm:$0xff] }
 0x70e   : > { %4187 = vmatprep.subr.bf16.mxu0 %v5467_v43 }
 0x710   : > { %4225 = vmatpush2.bf16.msra.mxu1 %v5456_v32 }
 0x711   : > { %4226 = vmatprep.subr.bf16.mxu1 %v5464_v47  ;;  %4188 = vmatpush2.bf16.msra.mxu0 %v5465_v16 }
 0x712   : > { %4189 = vmatprep.subr.bf16.mxu0 %v5473_v42 }
 0x714   : > { %4227 = vmatpush2.bf16.msra.mxu1 %v5462_v37 }
 0x715   : > { %4228 = vmatprep.subr.bf16.mxu1 %v5470_v15  ;;  %4190 = vmatpush2.bf16.msra.mxu0 %v5471_v11  ;;  %v6810_v15 = vld [vmem:[#allocation8_spill] sm:$0xff] }
 0x718   : > { %4229 = vmatpush2.bf16.msra.mxu1 %v5468_v1 }
 0x719   : > { %4230 = vmatprep.subr.bf16.mxu1 %v5476_v33 }
 0x71c   : > { %4231 = vmatpush2.bf16.msra.mxu1 %v5474_v30 }
 0x79f   : > { %v3610_v34 = vpop.f32.mrf.mxu1 }
 0x7a0   : > { %v3611_v6 = vadd.f32 %v3610_v34, %v6119_v5  ;;  %v6805_v5 = vld [vmem:[#allocation3_spill] sm:$0xff] }
 0x7a1   : > { %v3612_v9 = vpop.f32.mrf.mxu1 }
 0x7a2   : > { %v3613_v60 = vadd.f32 %v3612_v9, %v6804_v20  ;;  %v3663_v41 = vmul.f32 %v6700_v36, %v3611_v6 }
 0x7a3   : > { %v3614_v14 = vpop.f32.mrf.mxu1 }
 0x7a4   : > { %v3615_v28 = vadd.f32 %v3614_v14, %v6123_v7  ;;  %v3664_v53 = vmul.f32 %v6709_v61, %v3613_v60 }
 0x7a5   : > { %v3616_v45 = vpop.f32.mrf.mxu1 }
 0x7a6   : > { %v3617_v48 = vadd.f32 %v3616_v45, %v6125_v2  ;;  %v3665_v7 = vmul.f32 %v6700_v36, %v3615_v28  ;;  %v6715_v2 = vrot.slane %v4662_v39, %v6689_v38  ;;  %v3691_v63 = vadd.f32 %v6722_v25, %v3664_v53  ;;  %v6811_v28 = vld [vmem:[#allocation9_spill] sm:$0xff] }
 0x7a7   : > { %v3620_v46 = vpop.f32.mrf.mxu1 }
 0x7a8   : > { %v3621_v50 = vadd.f32 %v3620_v46, %v6127_v3  ;;  %v3666_v10 = vmul.f32 %v6709_v61, %v3617_v48  ;;  %v3692_v19 = vadd.f32 %v6715_v2, %v3665_v7  ;;  %v3690_v31 = vadd.f32 %v6715_v2, %v3663_v41  ;;  %v6813_v41 = vld [vmem:[#allocation11_spill] sm:$0xff] }
 0x7a9   : > { %v3622_v55 = vpop.f32.mrf.mxu1  ;;  %v3707_v33 = vmax.f32 %v3691_v63, 0.0 }
 0x7aa   : > { %v3623_v17 = vadd.f32 %v3622_v55, %v6805_v5  ;;  %v3667_v3 = vmul.f32 %v6700_v36, %v3621_v50  ;;  %v3693_v8 = vadd.f32 %v6722_v25, %v3666_v10  ;;  %v3708_v35 = vmax.f32 %v3692_v19, 0.0  ;;  %v6812_v50 = vld [vmem:[#allocation10_spill] sm:$0xff] }
 0x7ab   : > { %v3624_v0 = vpop.f32.mrf.mxu1  ;;  %v3706_v23 = vmax.f32 %v3690_v31, 0.0 }
 0x7ac   : > { %v3625_v13 = vadd.f32 %v3624_v0, %v6806_v21  ;;  %v3668_v29 = vmul.f32 %v6709_v61, %v3623_v17  ;;  %v3694_v57 = vadd.f32 %v6715_v2, %v3667_v3  ;;  %v3709_v37 = vmax.f32 %v3693_v8, 0.0 }
 0x7ad   : > { %v3626_v24 = vpop.f32.mrf.mxu1  ;;  %v3722_v34 = vadd.f32 %v3708_v35, %v3706_v23 }
 0x7ae   : > { %v3627_v26 = vadd.f32 %v3626_v24, %v6807_v12  ;;  %v3669_v49 = vmul.f32 %v6700_v36, %v3625_v13  ;;  %v3695_v32 = vadd.f32 %v6722_v25, %v3668_v29  ;;  %v3710_v1 = vmax.f32 %v3694_v57, 0.0  ;;  %v6814_v29 = vld [vmem:[#allocation12_spill] sm:$0xff] }
 0x7af   : > { %v3630_v52 = vpop.f32.mrf.mxu1  ;;  %v3735_v48 = vadd.f32 %v3709_v37, %v3707_v33 }
 0x7b0   : > { %v3631_v58 = vadd.f32 %v3630_v52, %v6808_v22  ;;  %v3670_v54 = vmul.f32 %v6709_v61, %v3627_v26  ;;  %v3696_v4 = vadd.f32 %v6715_v2, %v3669_v49  ;;  %v3711_v14 = vmax.f32 %v3695_v32, 0.0 }
 0x7b1   : > { %v3632_v51 = vpop.f32.mrf.mxu1  ;;  %v3723_v20 = vadd.f32 %v3722_v34, %v3710_v1 }
 0x7b2   : > { %v3671_v59 = vmul.f32 %v6700_v36, %v3631_v58  ;;  %v3633_v27 = vadd.f32 %v3632_v51, %v6809_v56  ;;  %v3697_v11 = vadd.f32 %v6722_v25, %v3670_v54  ;;  %v3712_v44 = vmax.f32 %v3696_v4, 0.0  ;;  %v6815_v51 = vld [vmem:[#allocation13_spill] sm:$0xff] }
 0x7b3   : > { %v3634_v47 = vpop.f32.mrf.mxu1  ;;  %v3736_v3 = vadd.f32 %v3735_v48, %v3711_v14  ;;  %v5487_v48 = vmov 1966171168  }
 0x7b4   : > { %v3672_v43 = vmul.f32 %v6709_v61, %v3633_v27  ;;  %v3635_v16 = vadd.f32 %v3634_v47, %v6810_v15  ;;  %v3698_v42 = vadd.f32 %v6715_v2, %v3671_v59  ;;  %v3713_v60 = vmax.f32 %v3697_v11, 0.0 }
 0x7b5   : > { %v3636_v30 = vpop.f32.mrf.mxu1  ;;  %v3724_v21 = vadd.f32 %v3723_v20, %v3712_v44  ;;  %v3817_v20 = vld [vmem:[%s6787_s11] sm:$0xf] }
 0x7b6   : > { %v3673_v9 = vmul.f32 %v6700_v36, %v3635_v16  ;;  %v3699_v45 = vadd.f32 %v6722_v25, %v3672_v43  ;;  %v3637_v46 = vadd.f32 %v3636_v30, %v6811_v28  ;;  %v3714_v7 = vmax.f32 %v3698_v42, 0.0 }
 0x7b7   : > { %v3640_v6 = vpop.f32.mrf.mxu1  ;;  %v3737_v52 = vadd.f32 %v3736_v3, %v3713_v60 }
 0x7b8   : > { %v3700_v39 = vadd.f32 %v6715_v2, %v3673_v9  ;;  %v3641_v55 = vadd.f32 %v3640_v6, %v6812_v50  ;;  %v3674_v5 = vmul.f32 %v6709_v61, %v3637_v46  ;;  %v3715_v13 = vmax.f32 %v3699_v45, 0.0 }
 0x7b9   : > { %v3642_v17 = vpop.f32.mrf.mxu1  ;;  %v3725_v31 = vadd.f32 %v3724_v21, %v3714_v7  ;;  %v4149_v50 = vsub.s32 2, %v6686_v40  ;;  %v4142_v7 = vrot.slane %v3817_v20, %v6689_v38 }
 0x7ba   : > { %v3675_v0 = vmul.f32 %v6700_v36, %v3641_v55  ;;  %v3643_v10 = vadd.f32 %v3642_v17, %v6813_v41  ;;  %v3701_v24 = vadd.f32 %v6722_v25, %v3674_v5  ;;  %v3716_v19 = vmax.f32 %v3700_v39, 0.0 }
 0x7bb   : > { %v3644_v53 = vpop.f32.mrf.mxu1  ;;  %v3738_v35 = vadd.f32 %v3737_v52, %v3715_v13  ;;  %v4248_v39 = vunpack.c.l.s4 %v5487_v48  ;;  %v4153_v55 = vsub.s32 3, %v6686_v40  ;;  %v4150_v5 = vrot.slane %v3817_v20, %v4149_v50 }
 0x7bc   : > { %v3702_v12 = vadd.f32 %v6715_v2, %v3675_v0  ;;  %v3676_v26 = vmul.f32 %v6709_v61, %v3643_v10  ;;  %v3645_v49 = vadd.f32 %v3644_v53, %v6814_v29  ;;  %v3717_v8 = vmax.f32 %v3701_v24, 0.0 }
 0x7bd   : > { %v3646_v22 = vpop.f32.mrf.mxu1  ;;  %v3726_v59 = vadd.f32 %v3725_v31, %v3716_v19  ;;  %v4249_v60 = vunpack.c.0.s8 %v4248_v39  ;;  %v4146_v17 = vrot.slane %v3817_v20, %v6695_v18  ;;  %v4154_v0 = vrot.slane %v3817_v20, %v4153_v55 }
 0x7be   : > { %v3718_v58 = vmax.f32 %v3702_v12, 0.0  ;;  %v3703_v57 = vadd.f32 %v6722_v25, %v3676_v26  ;;  %v3677_v54 = vmul.f32 %v6700_v36, %v3645_v49  ;;  %v3647_v63 = vadd.f32 %v3646_v22, %v6815_v51 }
 0x7bf   : > { %v3739_v4 = vadd.f32 %v3738_v35, %v3717_v8  ;;  %v4252_v21 = vsub.s32 %v4249_v60, %v6686_v40 }
 0x7c0   : > { %v3719_v56 = vmax.f32 %v3703_v57, 0.0  ;;  %v3704_v27 = vadd.f32 %v6715_v2, %v3677_v54  ;;  %v3678_v32 = vmul.f32 %v6709_v61, %v3647_v63  ;;  %v3727_v47 = vadd.f32 %v3726_v59, %v3718_v58 }
 0x7c2   : > { %v3720_v23 = vmax.f32 %v3704_v27, 0.0  ;;  %v3705_v37 = vadd.f32 %v6722_v25, %v3678_v32  ;;  %v3740_v43 = vadd.f32 %v3739_v4, %v3719_v56 }
 0x7c4   : > { %v3728_v15 = vadd.f32 %v3727_v47, %v3720_v23  ;;  %v3721_v16 = vmax.f32 %v3705_v37, 0.0 }
 0x7c6   : > { %v3729_v1 = vrot.slane %v3728_v15, 4  ;;  %v3741_v11 = vadd.f32 %v3740_v43, %v3721_v16 }
 0x7c8   : > { %v3730_v36 = vadd.f32 %v3729_v1, %v3728_v15  ;;  %v3742_v42 = vrot.slane %v3741_v11, 4 }
 0x7ca   : > { %v3731_v30 = vrot.slane %v3730_v36, 2  ;;  %v3743_v33 = vadd.f32 %v3742_v42, %v3741_v11 }
 0x7cc   : > { %v3732_v34 = vadd.f32 %v3731_v30, %v3730_v36  ;;  %v3744_v9 = vrot.slane %v3743_v33, 2 }
 0x7ce   : > { %v3733_v14 = vrot.slane %v3732_v34, 1  ;;  %v3745_v2 = vadd.f32 %v3744_v9, %v3743_v33 }
 0x7d0   : > { %v3734_v44 = vadd.f32 %v3733_v14, %v3732_v34  ;;  %v3746_v61 = vrot.slane %v3745_v2, 1 }
 0x7d2   : > { %v3747_v45 = vadd.f32 %v3746_v61, %v3745_v2  ;;  %v3749_v28 = vmul.f32 0.015625, %v3734_v44 }
 0x7d4   : > { %v3750_v46 = vmul.f32 0.015625, %v3747_v45  ;;  %v3751_v25 = vpack.c.bf16 %v3749_v28, %v3749_v28 }
 0x7d6   : > { %v3752_v6 = vpack.c.bf16 %v3750_v46, %v3750_v46 }
 0x7d8   : > { %4191 = vmatprep.mubr.bf16.mxu0 %v3752_v6  ;;  %4232 = vmatprep.mubr.bf16.mxu1 %v3752_v6 }
 0x7d9   : > { %4192 = vmatmul.mubr.bf16.vlgmr.msra.gmra.mxu0 %v3751_v25  ;;  %4233 = vmatmul.mubr.bf16.vlgmr.msra.gmra.mxu1 %v3751_v25 }
 0x899   : > { %v4193_v41 = vpop.f32.mrf.mxu0  ;;  %v4234_v10 = vpop.f32.mrf.mxu1 }
 0x89a   : > { %v4194_v24 = vadd.f32 %v4193_v41, %v4142_v7  ;;  %v4235_v53 = vadd.f32 %v4234_v10, %v4150_v5 }
 0x89b   : > { %v4195_v3 = vpop.f32.mrf.mxu0  ;;  %v4236_v13 = vpop.f32.mrf.mxu1 }
 0x89c   : > { %v4196_v19 = vadd.f32 %v4195_v3, %v4146_v17  ;;  %v4237_v12 = vadd.f32 %v4236_v13, %v4154_v0 }
 0x89d   : > { %v4197_v26 = vpop.f32.mrf.mxu0  ;;  %v4238_v29 = vpop.f32.mrf.mxu1 }
 0x89e   : > { %v4245_v49 = vcombine.low %v4194_v24, %v4196_v19  ;;  %v4246_v52 = vcombine.low %v4235_v53, %v4237_v12 }
 0x89f   : > { %v4198_v38 = vpop.f32.mrf.mxu0  ;;  %v4239_v31 = vpop.f32.mrf.mxu1 }
 0x8a0   : > { %v4253_v8 = vrot.slane %v4245_v49, %v4252_v21  ;;  %v4260_v18 = vrot.slane %v4246_v52, %v4252_v21 }
 0x8a2   : > { %v4261_v22 = vcombine.low %v4253_v8, %v4260_v18 }
 0x8a4   : > { %v4268_v40 = vrot.slane %v4261_v22, %v4252_v21 }
 0x8a6   : > { %4274 = vst.msk [vmem:[%s411_s25] sm:$0xf] %vm4272_vm1, %v4268_v40 }
 0x8a7 PF: > { %s22_s21 = sadd.s32 1, %s5483_s21  }
 0x8a8   : > { %p19_p4 = scmp.ge.s32.totalorder %s22_s21, 4  }
 0x8aa   :  { %21 = sbr.rel (!%p19_p4) target bundleno = 1 (0x1), region = 107 }

</bundles_post_ra>
